<compile_context>
chip_gen: v5e
topology: v5e:2x2
jax: 0.10.0
libtpu: 0.0.40
codegen_flags: <defaults>
</compile_context>

<pallas_src>
import functools

import jax
import jax.numpy as jnp
from jax.experimental import pallas as pl
from jax.experimental.pallas import tpu as pltpu


# -------------------- Pallas kernel --------------------
def _fused_kernel(x_ref, w_ref, o_ref, *, th, c2, kk):
    # x_ref : (th, M, WK)      expanded input rows (kron-with-I trick + bias rows)
    # w_ref : (c2*8, M)        folded weight, rows ordered (c2, ki) with ki padded to 8
    # o_ref : (c2, th, kk, WK) output block (NCHW-compatible patch layout)
    wk = o_ref.shape[-1]
    for h in range(th):                       # small static unroll (th = 4)
        y = jnp.dot(w_ref[...], x_ref[h],
                    preferred_element_type=jnp.float32)      # (c2*8, WK)
        y = y.reshape(c2, 8, wk)[:, :kk, :]                   # tile-aligned split+slice
        o_ref[:, h, :, :] = jnp.tanh(y)


def _fused_pallas(xaug, waug, *, N, H, C2, K, WK, th, m_dim):
    grid = (N, H // th)
    nrows = waug.shape[0]                      # C2 * 8

    flops = int(2 * N * H * nrows * m_dim * WK)
    trans = int(N * C2 * H * K * WK)
    bytes_acc = int(N * C2 * H * K * WK * 4 + xaug.size * 4 + waug.size * 4)

    kernel = functools.partial(_fused_kernel, th=th, c2=C2, kk=K)
    return pl.pallas_call(
        kernel,
        out_shape=jax.ShapeDtypeStruct((N, C2, H, K, WK), jnp.float32),
        grid=grid,
        in_specs=[
            pl.BlockSpec((None, th, m_dim, WK), lambda n, hb: (n, hb, 0, 0)),
            pl.BlockSpec((nrows, m_dim), lambda n, hb: (0, 0)),
        ],
        out_specs=pl.BlockSpec((None, C2, th, K, WK),
                               lambda n, hb: (n, 0, hb, 0, 0)),
        compiler_params=pltpu.CompilerParams(
            dimension_semantics=("parallel", "parallel"),
            vmem_limit_bytes=16 * 1024 * 1024,
        ),
        cost_estimate=pl.CostEstimate(
            flops=flops, transcendentals=trans, bytes_accessed=bytes_acc),
    )(xaug, waug)


# -------------------- parameter folding (call ONCE, outside jit) --------------------
def fold_params(conv_w, conv_b, convt_w, *, groups=2, K=7, cin=4):
    """Fold grouped 1x1 conv + stride-K/kernel-K conv_transpose + bias into one
    (C2*8, M) weight matrix.  Row r = c2*8 + ki (ki padded 7->8 with zeros).
    Column m: [cin*K + kj']  -> w_eff[cin, c2, ki, kj'];  [cin*K + kj''] bias rows."""
    C1 = conv_w.shape[0]
    C2 = convt_w.shape[1]
    hi = jax.lax.Precision.HIGHEST
    cin_g = cin // groups
    c1_g = C1 // groups

    # grouped 1x1 conv as dense block-diagonal (cin, C1)
    w1 = jnp.zeros((cin, C1), jnp.float32)
    for g in range(groups):
        blk = conv_w[g * c1_g:(g + 1) * c1_g, :, 0, 0]        # (c1_g, cin_g)
        w1 = w1.at[g * cin_g:(g + 1) * cin_g,
                   g * c1_g:(g + 1) * c1_g].set(blk.T)

    w_eff = jnp.einsum('ic,cokl->iokl', w1, convt_w, precision=hi)   # (cin, C2, K, K)
    b_eff = jnp.einsum('c,cokl->okl', conv_b, convt_w, precision=hi)  # (C2, K, K)

    m_raw = cin * K + K                                        # 35
    m_dim = ((m_raw + 7) // 8) * 8                             # 40 (8-aligned)

    waug = jnp.zeros((C2, 8, m_dim), jnp.float32)
    wpart = jnp.transpose(w_eff, (1, 2, 0, 3)).reshape(C2, K, cin * K)
    waug = waug.at[:, :K, :cin * K].set(wpart)                 # x-terms
    waug = waug.at[:, :K, cin * K:m_raw].set(b_eff)            # bias terms
    return waug.reshape(C2 * 8, m_dim)


# -------------------- jitted forward (prologue + kernel + free reshape) --------------------
def model_forward(x, waug, *, K=7, th=4):
    """x: (N, Cin, H, W) f32, waug: folded (C2*8, M) weight -> (N, C2, H*K, W*K)."""
    N, Cin, H, W = x.shape
    C2 = waug.shape[0] // 8
    m_dim = waug.shape[1]
    WK = W * K
    assert H % th == 0, "tile th must divide H"

    # --- tiny XLA prologue (~0.6 MB): expanded RHS so the (w,kj) interleave is
    #     absorbed into the MXU contraction ---
    eye = jnp.eye(K, dtype=jnp.float32)
    # x2[n,h, cin*K+kj', w*K+kj] = x[n,cin,h,w] * delta(kj,kj')
    x2 = jnp.einsum('nchw,pq->nhcpwq', x, eye).reshape(N, H, Cin * K, WK)
    # bias rows: delta(kj, kj'') tiled over w
    bias_rows = jnp.broadcast_to(jnp.tile(eye, (1, W))[None, None], (N, H, K, WK))
    xaug = jnp.concatenate([x2, bias_rows], axis=2)            # (N, H, Cin*K+K, WK)
    pad = m_dim - (Cin * K + K)
    if pad:
        xaug = jnp.pad(xaug, ((0, 0), (0, 0), (0, pad), (0, 0)))

    out5 = _fused_pallas(xaug, waug, N=N, H=H, C2=C2, K=K, WK=WK,
                         th=th, m_dim=m_dim)                   # (N, C2, H, K, WK)
    # contiguous collapse -> NCHW (free, no data movement)
    return out5.reshape(N, C2, H * K, WK)


# -------------------- pure-jnp reference (independent of the fold) --------------------
def reference_forward(x, conv_w, conv_b, convt_w, *, groups=2, K=7):
    N, Cin, H, W = x.shape
    C1 = conv_w.shape[0]
    C2 = convt_w.shape[1]
    hi = jax.lax.Precision.HIGHEST
    cin_g = Cin // groups
    c1_g = C1 // groups
    outs = []
    for g in range(groups):
        xg = x[:, g * cin_g:(g + 1) * cin_g]                   # (N, cin_g, H, W)
        wg = conv_w[g * c1_g:(g + 1) * c1_g, :, 0, 0]          # (c1_g, cin_g)
        outs.append(jnp.einsum('nchw,oc->nohw', xg, wg, precision=hi))
    v1 = jnp.concatenate(outs, axis=1) + conv_b[None, :, None, None]
    # stride-K / kernel-K transposed conv (non-overlapping)
    v2 = jnp.einsum('nchw,cokl->nohwkl', v1, convt_w, precision=hi)  # (N,C2,H,W,K,K)
    v2 = jnp.transpose(v2, (0, 1, 2, 4, 3, 5)).reshape(N, C2, H * K, W * K)
    return jnp.tanh(v2)


if __name__ == "__main__":
    key = jax.random.PRNGKey(0)
    k_x, k_w1, k_b1, k_w2 = jax.random.split(key, 4)

    # small shapes consistent with the module
    N, Cin, H, W = 2, 4, 16, 16
    C1, C2, K = 98, 100, 7
    groups = 2

    x = jax.random.normal(k_x, (N, Cin, H, W), jnp.float32)

    fan1 = (Cin // groups) * 1 * 1
    conv_w = jax.random.uniform(k_w1, (C1, Cin // groups, 1, 1), jnp.float32,
                                -1.0, 1.0) / jnp.sqrt(fan1)
    conv_b = jax.random.uniform(k_b1, (C1,), jnp.float32,
                                -1.0, 1.0) / jnp.sqrt(fan1)
    fan2 = C1 * K * K
    convt_w = jax.random.uniform(k_w2, (C1, C2, K, K), jnp.float32,
                                 -1.0, 1.0) / jnp.sqrt(fan2)

    # fold weights ONCE (outside the per-call jitted path)
    waug = jax.block_until_ready(
        fold_params(conv_w, conv_b, convt_w, groups=groups, K=K, cin=Cin))

    fwd = jax.jit(model_forward, static_argnames=("K", "th"))
    out = jax.block_until_ready(fwd(x, waug, K=K, th=4))
    assert out.shape == (N, C2, H * K, W * K), out.shape

    ref = jax.block_until_ready(
        reference_forward(x, conv_w, conv_b, convt_w, groups=groups, K=K))
    max_err = float(jnp.max(jnp.abs(out - ref)))
    assert jnp.allclose(out, ref, atol=1e-5, rtol=1e-5), max_err

    print("KERNEL_OK")
</pallas_src>

<mosaic_0001>
module attributes {stable_mosaic.version = 11 : i64} {
  func.func @_fused_kernel(%arg0: i32, %arg1: i32, %arg2: memref<1x4x40x112xf32, #tpu.memory_space<vmem>>, %arg3: memref<800x40xf32, #tpu.memory_space<vmem>>, %arg4: memref<1x100x4x7x112xf32, #tpu.memory_space<vmem>>) attributes {dimension_semantics = [#tpu.dimension_semantics<parallel>, #tpu.dimension_semantics<parallel>], iteration_bounds = array<i64: 2, 4>, scalar_prefetch = 0 : i64, scratch_operands = 0 : i64, tpu.core_type = #tpu.core_type<tc>, window_params = [{transform_indices = @transform_0, window_bounds = array<i64: 1, 4, 40, 112>}, {pipeline_mode = #tpu.pipeline_mode<synchronous>, transform_indices = @transform_1, window_bounds = array<i64: 800, 40>}, {transform_indices = @transform_2, window_bounds = array<i64: 1, 100, 4, 7, 112>}]} {
    %c0 = arith.constant 0 : index
    %c0_0 = arith.constant 0 : index
    %0 = vector.load %arg3[%c0, %c0_0] : memref<800x40xf32, #tpu.memory_space<vmem>>, vector<800x40xf32>
    %c0_1 = arith.constant 0 : index
    %c0_2 = arith.constant 0 : index
    %c0_3 = arith.constant 0 : index
    %c0_4 = arith.constant 0 : index
    %1 = vector.load %arg2[%c0_1, %c0_2, %c0_3, %c0_4] : memref<1x4x40x112xf32, #tpu.memory_space<vmem>>, vector<1x1x40x112xf32>
    %2 = vector.shape_cast %1 : vector<1x1x40x112xf32> to vector<40x112xf32>
    %cst = arith.constant dense<0.000000e+00> : vector<800x112xf32>
    %3 = tpu.matmul %0, %2, %cst {dimension_numbers = #tpu.dot_dimension_numbers<[1], [0], [0], [1], [0, 0, 1, 1], [], []>} : vector<800x40xf32>, vector<40x112xf32>, vector<800x112xf32> -> vector<800x112xf32>
    %4 = vector.shape_cast %3 : vector<800x112xf32> to vector<100x8x112xf32>
    %5 = vector.extract_strided_slice %4 {offsets = [0, 0, 0], sizes = [100, 7, 112], strides = [1, 1, 1]} : vector<100x8x112xf32> to vector<100x7x112xf32>
    %6 = math.tanh %5 : vector<100x7x112xf32>
    %c0_5 = arith.constant 0 : index
    %c0_6 = arith.constant 0 : index
    %c0_7 = arith.constant 0 : index
    %c0_8 = arith.constant 0 : index
    %c0_9 = arith.constant 0 : index
    %7 = vector.load %arg4[%c0_5, %c0_6, %c0_7, %c0_8, %c0_9] : memref<1x100x4x7x112xf32, #tpu.memory_space<vmem>>, vector<1x100x1x7x112xf32>
    %8 = vector.shape_cast %7 : vector<1x100x1x7x112xf32> to vector<100x7x112xf32>
    %9 = vector.shape_cast %6 : vector<100x7x112xf32> to vector<1x100x1x7x112xf32>
    tpu.vector_store %arg4[%c0_5, %c0_6, %c0_7, %c0_8, %c0_9], %9 {strides = array<i32>} : memref<1x100x4x7x112xf32, #tpu.memory_space<vmem>>, vector<1x100x1x7x112xf32>,
    %c0_10 = arith.constant 0 : index
    %c0_11 = arith.constant 0 : index
    %10 = vector.load %arg3[%c0_10, %c0_11] : memref<800x40xf32, #tpu.memory_space<vmem>>, vector<800x40xf32>
    %c0_12 = arith.constant 0 : index
    %c1 = arith.constant 1 : index
    %c0_13 = arith.constant 0 : index
    %c0_14 = arith.constant 0 : index
    %11 = vector.load %arg2[%c0_12, %c1, %c0_13, %c0_14] : memref<1x4x40x112xf32, #tpu.memory_space<vmem>>, vector<1x1x40x112xf32>
    %12 = vector.shape_cast %11 : vector<1x1x40x112xf32> to vector<40x112xf32>
    %cst_15 = arith.constant dense<0.000000e+00> : vector<800x112xf32>
    %13 = tpu.matmul %10, %12, %cst_15 {dimension_numbers = #tpu.dot_dimension_numbers<[1], [0], [0], [1], [0, 0, 1, 1], [], []>} : vector<800x40xf32>, vector<40x112xf32>, vector<800x112xf32> -> vector<800x112xf32>
    %14 = vector.shape_cast %13 : vector<800x112xf32> to vector<100x8x112xf32>
    %15 = vector.extract_strided_slice %14 {offsets = [0, 0, 0], sizes = [100, 7, 112], strides = [1, 1, 1]} : vector<100x8x112xf32> to vector<100x7x112xf32>
    %16 = math.tanh %15 : vector<100x7x112xf32>
    %c0_16 = arith.constant 0 : index
    %c0_17 = arith.constant 0 : index
    %c1_18 = arith.constant 1 : index
    %c0_19 = arith.constant 0 : index
    %c0_20 = arith.constant 0 : index
    %17 = vector.load %arg4[%c0_16, %c0_17, %c1_18, %c0_19, %c0_20] : memref<1x100x4x7x112xf32, #tpu.memory_space<vmem>>, vector<1x100x1x7x112xf32>
    %18 = vector.shape_cast %17 : vector<1x100x1x7x112xf32> to vector<100x7x112xf32>
    %19 = vector.shape_cast %16 : vector<100x7x112xf32> to vector<1x100x1x7x112xf32>
    tpu.vector_store %arg4[%c0_16, %c0_17, %c1_18, %c0_19, %c0_20], %19 {strides = array<i32>} : memref<1x100x4x7x112xf32, #tpu.memory_space<vmem>>, vector<1x100x1x7x112xf32>,
    %c0_21 = arith.constant 0 : index
    %c0_22 = arith.constant 0 : index
    %20 = vector.load %arg3[%c0_21, %c0_22] : memref<800x40xf32, #tpu.memory_space<vmem>>, vector<800x40xf32>
    %c0_23 = arith.constant 0 : index
    %c2 = arith.constant 2 : index
    %c0_24 = arith.constant 0 : index
    %c0_25 = arith.constant 0 : index
    %21 = vector.load %arg2[%c0_23, %c2, %c0_24, %c0_25] : memref<1x4x40x112xf32, #tpu.memory_space<vmem>>, vector<1x1x40x112xf32>
    %22 = vector.shape_cast %21 : vector<1x1x40x112xf32> to vector<40x112xf32>
    %cst_26 = arith.constant dense<0.000000e+00> : vector<800x112xf32>
    %23 = tpu.matmul %20, %22, %cst_26 {dimension_numbers = #tpu.dot_dimension_numbers<[1], [0], [0], [1], [0, 0, 1, 1], [], []>} : vector<800x40xf32>, vector<40x112xf32>, vector<800x112xf32> -> vector<800x112xf32>
    %24 = vector.shape_cast %23 : vector<800x112xf32> to vector<100x8x112xf32>
    %25 = vector.extract_strided_slice %24 {offsets = [0, 0, 0], sizes = [100, 7, 112], strides = [1, 1, 1]} : vector<100x8x112xf32> to vector<100x7x112xf32>
    %26 = math.tanh %25 : vector<100x7x112xf32>
    %c0_27 = arith.constant 0 : index
    %c0_28 = arith.constant 0 : index
    %c2_29 = arith.constant 2 : index
    %c0_30 = arith.constant 0 : index
    %c0_31 = arith.constant 0 : index
    %27 = vector.load %arg4[%c0_27, %c0_28, %c2_29, %c0_30, %c0_31] : memref<1x100x4x7x112xf32, #tpu.memory_space<vmem>>, vector<1x100x1x7x112xf32>
    %28 = vector.shape_cast %27 : vector<1x100x1x7x112xf32> to vector<100x7x112xf32>
    %29 = vector.shape_cast %26 : vector<100x7x112xf32> to vector<1x100x1x7x112xf32>
    tpu.vector_store %arg4[%c0_27, %c0_28, %c2_29, %c0_30, %c0_31], %29 {strides = array<i32>} : memref<1x100x4x7x112xf32, #tpu.memory_space<vmem>>, vector<1x100x1x7x112xf32>,
    %c0_32 = arith.constant 0 : index
    %c0_33 = arith.constant 0 : index
    %30 = vector.load %arg3[%c0_32, %c0_33] : memref<800x40xf32, #tpu.memory_space<vmem>>, vector<800x40xf32>
    %c0_34 = arith.constant 0 : index
    %c3 = arith.constant 3 : index
    %c0_35 = arith.constant 0 : index
    %c0_36 = arith.constant 0 : index
    %31 = vector.load %arg2[%c0_34, %c3, %c0_35, %c0_36] : memref<1x4x40x112xf32, #tpu.memory_space<vmem>>, vector<1x1x40x112xf32>
    %32 = vector.shape_cast %31 : vector<1x1x40x112xf32> to vector<40x112xf32>
    %cst_37 = arith.constant dense<0.000000e+00> : vector<800x112xf32>
    %33 = tpu.matmul %30, %32, %cst_37 {dimension_numbers = #tpu.dot_dimension_numbers<[1], [0], [0], [1], [0, 0, 1, 1], [], []>} : vector<800x40xf32>, vector<40x112xf32>, vector<800x112xf32> -> vector<800x112xf32>
    %34 = vector.shape_cast %33 : vector<800x112xf32> to vector<100x8x112xf32>
    %35 = vector.extract_strided_slice %34 {offsets = [0, 0, 0], sizes = [100, 7, 112], strides = [1, 1, 1]} : vector<100x8x112xf32> to vector<100x7x112xf32>
    %36 = math.tanh %35 : vector<100x7x112xf32>
    %c0_38 = arith.constant 0 : index
    %c0_39 = arith.constant 0 : index
    %c3_40 = arith.constant 3 : index
    %c0_41 = arith.constant 0 : index
    %c0_42 = arith.constant 0 : index
    %37 = vector.load %arg4[%c0_38, %c0_39, %c3_40, %c0_41, %c0_42] : memref<1x100x4x7x112xf32, #tpu.memory_space<vmem>>, vector<1x100x1x7x112xf32>
    %38 = vector.shape_cast %37 : vector<1x100x1x7x112xf32> to vector<100x7x112xf32>
    %39 = vector.shape_cast %36 : vector<100x7x112xf32> to vector<1x100x1x7x112xf32>
    tpu.vector_store %arg4[%c0_38, %c0_39, %c3_40, %c0_41, %c0_42], %39 {strides = array<i32>} : memref<1x100x4x7x112xf32, #tpu.memory_space<vmem>>, vector<1x100x1x7x112xf32>,
    return
  }
  func.func @transform_0(%arg0: i32, %arg1: i32) -> (i32, i32, i32, i32) {
    %c0_i32 = arith.constant 0 : i32
    %c0_i32_0 = arith.constant 0 : i32
    %c0_i32_1 = arith.constant 0 : i32
    return %arg0, %arg1, %c0_i32, %c0_i32_0 : i32, i32, i32, i32
  }
  func.func @transform_1(%arg0: i32, %arg1: i32) -> (i32, i32) {
    %c0_i32 = arith.constant 0 : i32
    %c0_i32_0 = arith.constant 0 : i32
    %c0_i32_1 = arith.constant 0 : i32
    return %c0_i32, %c0_i32_0 : i32, i32
  }
  func.func @transform_2(%arg0: i32, %arg1: i32) -> (i32, i32, i32, i32, i32) {
    %c0_i32 = arith.constant 0 : i32
    %c0_i32_0 = arith.constant 0 : i32
    %c0_i32_1 = arith.constant 0 : i32
    %c0_i32_2 = arith.constant 0 : i32
    return %arg0, %c0_i32, %arg1, %c0_i32_0, %c0_i32_1 : i32, i32, i32, i32, i32
  }
}

</mosaic_0001>

<bundles_post_ra>
// kernel: model_forward.1
= control target key start
LH: loop header
LB: loop body
LE: loop exit
PB: predicated region body
PF: predicated region fallthrough
CT: control target
= control target key end

     0   :  { %s8885_s9 = smov 0   ;;  %s8887_s10 = smov 0   ;;  %s11306_s0 = inlined_call_operand.vmem [shape: f32[2,16,40,112], index: 0, kind: input, shape index: {}]   ;;  %s11307_s1 = inlined_call_operand.vmem [shape: f32[800,40], index: 1, kind: input, shape index: {}]   ;;  %s11308_s2 = inlined_call_operand.vmem [shape: f32[2,100,16,7,112], index: 2, kind: output, shape index: {}]  }
   0x1   :  { %s8889_s11 = smov 0   ;;  %s8891_s12 = smov 0  }
   0x2   :  { %s8893_s13 = smov 0   ;;  %s8895_s14 = smov 0  }
   0x3   :  { %s8897_s15 = smov 0  }
   0x4 LB: > { %s21_s16 = sadd.s32 1, %s8860_s13  ;;  %s24_s17 = sadd.s32 1, %s8864_s14  ;;  %s8868_s15 = sphi %s8897_s15, %s12_s15   ;;  %s8864_s14 = sphi %s8895_s14, %s11315_s14   ;;  %s8860_s13 = sphi %s8893_s13, %s11314_s13   ;;  %s8856_s12 = sphi %s8891_s12, %s11313_s12   ;;  %s8852_s11 = sphi %s8889_s11, %s11312_s11   ;;  %s8848_s10 = sphi %s8887_s10, %s11311_s10   ;;  %s8844_s9 = sphi %s8885_s9, %s11310_s9  }
   0x5   : > { %p22_p0 = scmp.ge.s32.totalorder %s21_s16, 4  ;;  %s7228_s18 = sadd.s32 4294967295, %s8868_s15  }
   0x6   : > { %p92_p1 = scmp.ne.s32.totalorder %s8848_s10, %s8844_s9  ;;  %p93_p2 = scmp.eq.s32.totalorder %s7228_s18, 7 }
   0x7   : > { %s11317_s16 = smov (%p22_p0, %s21_s16), 0  ;;  %s11319_s17 = smov (!%p22_p0, %s24_s17), %s8864_s14 }
   0x8   : > { %s78_s19 = ssub.s32 %s8860_s13, %s11317_s16  ;;  %p26_p3 = scmp.ge.s32.totalorder %s11319_s17, 2 }
   0x9   : > { %p7232_p4 = scmp.ge.s32.totalorder %s8868_s15, 1  ;;  %p8929_p5 = por %p93_p2, %p92_p1 }
   0xa   : > { %p134_p6 = scmp.lt.s32.totalorder %s8868_s15, 9  ;;  %s11321_s17 = smov (%p26_p3, %s11319_s17), 0 }
   0xb   : > { %s77_s21 = ssub.s32 %s8864_s14, %s11321_s17  ;;  %s82_s23 = sadd.s32 1, %s8848_s10 }
   0xc   : > { %p135_p7 = pnand %p7232_p4, %p134_p6  ;;  %s79_s22 = sor.u32 %s78_s19, %s77_s21 }
   0xd   : > { %p80_p8 = scmp.eq.s32.totalorder %s79_s22, 0  ;;  %s8942_s25 = sshll.u32 (!%p135_p7), %s8852_s11, 2 }
   0xe   : > { %138 = sbr.rel (%p135_p7) target bundleno = 1338 (0x53a), region = 28  ;;  %p161_p9 = scmp.lt.s32.totalorder (!%p135_p7), %s8856_s12, 1 }
   0xf   : > { %s8940_s24 = scalar_select %p80_p8, %s8848_s10, %s82_s23  }
  0x10   : > { %p163_p10 = scmp.lt.s32.totalorder (!%p135_p7), %s8942_s25, 15  ;;  %s157_s7 = sand.u32 (!%p135_p7), 1, %s8844_s9  }
  0x11   : > { %s7954_s8 = smul.u32 (!%p135_p7), 3200, %s157_s7 }
  0x13   : > { %s162_s26 = scalar_select %p161_p9, %s8856_s12, 1  ;;  %vm277_vm0 = vcmask 326656   ;;  %v2020_v16 = vld [vmem:[%s11307_s1] sm:$0xff]  ;;  %v2021_v21 = vld [vmem:[%s11307_s1 + $0x8] sm:$0xff]  ;;  %v2022_v22 = vld [vmem:[%s11307_s1 + $0x10] sm:$0xff]  ;;  %vm995_vm1 = vcmask 915456  }
  0x14   : > { %s164_s27 = scalar_select %p163_p10, %s8942_s25, 15  ;;  %v2023_v23 = vld [vmem:[%s11307_s1 + $0x18] sm:$0xff]  ;;  %v2024_v24 = vld [vmem:[%s11307_s1 + $0x20] sm:$0xff]  ;;  %v2025_v25 = vld [vmem:[%s11307_s1 + $0x28] sm:$0xff] }
  0x15   : > { %s7956_s28 = smul.u32 80, %s162_s26  ;;  %v2026_v26 = vld [vmem:[%s11307_s1 + $0x30] sm:$0xff]  ;;  %v2027_v27 = vld [vmem:[%s11307_s1 + $0x38] sm:$0xff]  ;;  %v2028_v28 = vld [vmem:[%s11307_s1 + $0x40] sm:$0xff]  ;;  %s9098_s9 = scalar_lea.vmem [#allocation2], %s7954_s8 }
  0x16   : > { %s7955_s29 = smul.u32 5, %s164_s27  ;;  %v2029_v29 = vld [vmem:[%s11307_s1 + $0x48] sm:$0xff]  ;;  %v2030_v30 = vld [vmem:[%s11307_s1 + $0x50] sm:$0xff]  ;;  %v2031_v31 = vld [vmem:[%s11307_s1 + $0x58] sm:$0xff] }
  0x17   : > { %v2032_v32 = vld [vmem:[%s11307_s1 + $0x60] sm:$0xff]  ;;  %v2033_v33 = vld [vmem:[%s11307_s1 + $0x68] sm:$0xff]  ;;  %v2034_v34 = vld [vmem:[%s11307_s1 + $0x70] sm:$0xff]  ;;  %s7957_s5 = smul.u32 (%p8929_p5), 1600, %s8856_s12 }
  0x18   : > { %s167_s30 = sadd.s32 %s7956_s28, %s7955_s29  ;;  %v2035_v35 = vld [vmem:[%s11307_s1 + $0x78] sm:$0xff]  ;;  %v2036_v36 = vld [vmem:[%s11307_s1 + $0x80] sm:$0xff]  ;;  %v2037_v41 = vld [vmem:[%s11307_s1 + $0x88] sm:$0xff] }
  0x19   : > { %s7234_s3 = sshll.u32 %s167_s30, 3  ;;  %v2038_v50 = vld [vmem:[%s11307_s1 + $0x90] sm:$0xff]  ;;  %v2039_v59 = vld [vmem:[%s11307_s1 + $0x98] sm:$0xff] }
  0x1a   : > { %s8951_s6 = scalar_lea.vmem %s11306_s0, %s7234_s3 }
  0x1b   : > { %v7544_v0 = vld [vmem:[%s8951_s6 + $0x70] sm:$0xff]  ;;  %v7749_v1 = vld [vmem:[%s8951_s6 + $0x98] sm:$0xff]  ;;  %v7543_v2 = vld [vmem:[%s8951_s6 + $0x68] sm:$0xff] }
  0x1c   : > { %2437 = vmatpush.msra.mxu2 %v7544_v0  ;;  %3361 = vmatpush.msra.mxu3 %v7749_v1  ;;  %v7748_v3 = vld [vmem:[%s8951_s6 + $0x90] sm:$0xff]  ;;  %v7542_v4 = vld [vmem:[%s8951_s6 + $0x60] sm:$0xff]  ;;  %v7747_v5 = vld [vmem:[%s8951_s6 + $0x88] sm:$0xff] }
  0x1d   : > { %v276_v6 = vld [vmem:[%s8951_s6 + $0x20] sm:$0xff]  ;;  %v7339_v7 = vld [vmem:[%s8951_s6 + $0x48] sm:$0xff]  ;;  %v275_v8 = vld [vmem:[%s8951_s6 + $0x18] sm:$0xff] }
  0x1e   : > { %2438 = vmatpush.msra.mxu2 %v7543_v2  ;;  %3362 = vmatpush.msra.mxu3 %v7748_v3  ;;  %v7338_v9 = vld [vmem:[%s8951_s6 + $0x40] sm:$0xff]  ;;  %v7541_v10 = vld [vmem:[%s8951_s6 + $0x58] sm:$0xff]  ;;  %v274_v12 = vld [vmem:[%s8951_s6 + $0x10] sm:$0xff] }
  0x1f   : > { %589 = vmatpush.msra.mxu0 %v276_v6  ;;  %1513 = vmatpush.msra.mxu1 %v7339_v7  ;;  %v7746_v11 = vld [vmem:[%s8951_s6 + $0x80] sm:$0xff]  ;;  %v7337_v13 = vld [vmem:[%s8951_s6 + $0x38] sm:$0xff]  ;;  %v7540_v14 = vld [vmem:[%s8951_s6 + $0x50] sm:$0xff] }
  0x20   : > { %2439 = vmatpush.msra.mxu2 %v7542_v4  ;;  %3363 = vmatpush.msra.mxu3 %v7747_v5  ;;  %v7745_v15 = vld [vmem:[%s8951_s6 + $0x78] sm:$0xff]  ;;  %v273_v17 = vld [vmem:[%s8951_s6 + $0x8] sm:$0xff]  ;;  %v7336_v18 = vld [vmem:[%s8951_s6 + $0x30] sm:$0xff] }
  0x21   : > { %590 = vmatpush.msra.mxu0 %v275_v8  ;;  %1514 = vmatpush.msra.mxu1 %v7338_v9  ;;  %v272_v19 = vld [vmem:[%s8951_s6] sm:$0xff]  ;;  %v7335_v20 = vld [vmem:[%s8951_s6 + $0x28] sm:$0xff]  ;;  %s3877_s6 = sadd.s32 (%p8929_p5), %s7957_s5, %s8942_s25 }
  0x22   : > { %2440 = vmatpush.msra.mxu2 %v7541_v10  ;;  %3364 = vmatpush.msra.mxu3 %v7746_v11  ;;  %v2040_v4 = vld [vmem:[%s11307_s1 + $0xa0] sm:$0xff]  ;;  %s7951_s7 = sshll.u32 (%p8929_p5), %s3877_s6, 3 }
  0x23   : > { %591 = vmatpush.msra.mxu0 %v274_v12  ;;  %1515 = vmatpush.msra.mxu1 %v7337_v13  ;;  %v2041_v13 = vld [vmem:[%s11307_s1 + $0xa8] sm:$0xff]  ;;  %s10485_s20 = scalar_lea.vmem (%p8929_p5), %s11308_s2, %s7951_s7 }
  0x24   : > { %2441 = vmatpush.msra.mxu2 %v7540_v14  ;;  %3365 = vmatpush.msra.mxu3 %v7745_v15 }
  0x25   : > { %7545 = vmatmul.msk.f32.vlgmr.msra.gmra.mxu2 %vm277_vm0, %v2020_v16  ;;  %7750 = vmatmul.msk.f32.vlgmr.msra.gmra.mxu3 %vm277_vm0, %v2020_v16 }
  0x26   : > { %592 = vmatpush.msra.mxu0 %v273_v17  ;;  %1516 = vmatpush.msra.mxu1 %v7336_v18 }
  0x28   : > { %593 = vmatpush.msra.mxu0 %v272_v19  ;;  %1517 = vmatpush.msra.mxu1 %v7335_v20 }
  0x29   : > { %7235 = vmatmul.msk.f32.vlgmr.msra.gmra.mxu0 %vm277_vm0, %v2020_v16  ;;  %7340 = vmatmul.msk.f32.vlgmr.msra.gmra.mxu1 %vm277_vm0, %v2020_v16 }
  0x2d   : > { %7546 = vmatmul.msk.f32.gmra.mxu2 %vm277_vm0, %v2021_v21  ;;  %7751 = vmatmul.msk.f32.gmra.mxu3 %vm277_vm0, %v2021_v21 }
  0x31   : > { %7236 = vmatmul.msk.f32.gmra.mxu0 %vm277_vm0, %v2021_v21  ;;  %7341 = vmatmul.msk.f32.gmra.mxu1 %vm277_vm0, %v2021_v21 }
  0x35   : > { %7547 = vmatmul.msk.f32.gmra.mxu2 %vm277_vm0, %v2022_v22  ;;  %7752 = vmatmul.msk.f32.gmra.mxu3 %vm277_vm0, %v2022_v22 }
  0x39   : > { %7237 = vmatmul.msk.f32.gmra.mxu0 %vm277_vm0, %v2022_v22  ;;  %7342 = vmatmul.msk.f32.gmra.mxu1 %vm277_vm0, %v2022_v22  ;;  %v2042_v22 = vld [vmem:[%s11307_s1 + $0xb0] sm:$0xff] }
  0x3d   : > { %7548 = vmatmul.msk.f32.gmra.mxu2 %vm277_vm0, %v2023_v23  ;;  %7753 = vmatmul.msk.f32.gmra.mxu3 %vm277_vm0, %v2023_v23 }
  0x41   : > { %7238 = vmatmul.msk.f32.gmra.mxu0 %vm277_vm0, %v2023_v23  ;;  %7343 = vmatmul.msk.f32.gmra.mxu1 %vm277_vm0, %v2023_v23 }
  0x45   : > { %7549 = vmatmul.msk.f32.gmra.mxu2 %vm277_vm0, %v2024_v24  ;;  %7754 = vmatmul.msk.f32.gmra.mxu3 %vm277_vm0, %v2024_v24 }
  0x49   : > { %7239 = vmatmul.msk.f32.gmra.mxu0 %vm277_vm0, %v2024_v24  ;;  %7344 = vmatmul.msk.f32.gmra.mxu1 %vm277_vm0, %v2024_v24 }
  0x4d   : > { %7550 = vmatmul.msk.f32.gmra.mxu2 %vm277_vm0, %v2025_v25  ;;  %7755 = vmatmul.msk.f32.gmra.mxu3 %vm277_vm0, %v2025_v25 }
  0x51   : > { %7240 = vmatmul.msk.f32.gmra.mxu0 %vm277_vm0, %v2025_v25  ;;  %7345 = vmatmul.msk.f32.gmra.mxu1 %vm277_vm0, %v2025_v25 }
  0x55   : > { %7551 = vmatmul.msk.f32.gmra.mxu2 %vm277_vm0, %v2026_v26  ;;  %7756 = vmatmul.msk.f32.gmra.mxu3 %vm277_vm0, %v2026_v26 }
  0x59   : > { %7241 = vmatmul.msk.f32.gmra.mxu0 %vm277_vm0, %v2026_v26  ;;  %7346 = vmatmul.msk.f32.gmra.mxu1 %vm277_vm0, %v2026_v26 }
  0x5d   : > { %7552 = vmatmul.msk.f32.gmra.mxu2 %vm277_vm0, %v2027_v27  ;;  %7757 = vmatmul.msk.f32.gmra.mxu3 %vm277_vm0, %v2027_v27 }
  0x61   : > { %7242 = vmatmul.msk.f32.gmra.mxu0 %vm277_vm0, %v2027_v27  ;;  %7347 = vmatmul.msk.f32.gmra.mxu1 %vm277_vm0, %v2027_v27 }
  0x65   : > { %7553 = vmatmul.msk.f32.gmra.mxu2 %vm277_vm0, %v2028_v28  ;;  %7758 = vmatmul.msk.f32.gmra.mxu3 %vm277_vm0, %v2028_v28 }
  0x69   : > { %7243 = vmatmul.msk.f32.gmra.mxu0 %vm277_vm0, %v2028_v28  ;;  %7348 = vmatmul.msk.f32.gmra.mxu1 %vm277_vm0, %v2028_v28 }
  0x6d   : > { %7554 = vmatmul.msk.f32.gmra.mxu2 %vm277_vm0, %v2029_v29  ;;  %7759 = vmatmul.msk.f32.gmra.mxu3 %vm277_vm0, %v2029_v29 }
  0x71   : > { %7244 = vmatmul.msk.f32.gmra.mxu0 %vm277_vm0, %v2029_v29  ;;  %7349 = vmatmul.msk.f32.gmra.mxu1 %vm277_vm0, %v2029_v29 }
  0x75   : > { %7555 = vmatmul.msk.f32.gmra.mxu2 %vm277_vm0, %v2030_v30  ;;  %7760 = vmatmul.msk.f32.gmra.mxu3 %vm277_vm0, %v2030_v30 }
  0x79   : > { %7245 = vmatmul.msk.f32.gmra.mxu0 %vm277_vm0, %v2030_v30  ;;  %7350 = vmatmul.msk.f32.gmra.mxu1 %vm277_vm0, %v2030_v30 }
  0x7d   : > { %7556 = vmatmul.msk.f32.gmra.mxu2 %vm277_vm0, %v2031_v31  ;;  %7761 = vmatmul.msk.f32.gmra.mxu3 %vm277_vm0, %v2031_v31 }
  0x81   : > { %7246 = vmatmul.msk.f32.gmra.mxu0 %vm277_vm0, %v2031_v31  ;;  %7351 = vmatmul.msk.f32.gmra.mxu1 %vm277_vm0, %v2031_v31  ;;  %v2043_v31 = vld [vmem:[%s11307_s1 + $0xb8] sm:$0xff] }
  0x85   : > { %7557 = vmatmul.msk.f32.gmra.mxu2 %vm277_vm0, %v2032_v32  ;;  %7762 = vmatmul.msk.f32.gmra.mxu3 %vm277_vm0, %v2032_v32 }
  0x89   : > { %7247 = vmatmul.msk.f32.gmra.mxu0 %vm277_vm0, %v2032_v32  ;;  %7352 = vmatmul.msk.f32.gmra.mxu1 %vm277_vm0, %v2032_v32 }
  0x8d   : > { %7558 = vmatmul.msk.f32.gmra.mxu2 %vm277_vm0, %v2033_v33  ;;  %7763 = vmatmul.msk.f32.gmra.mxu3 %vm277_vm0, %v2033_v33 }
  0x91   : > { %7248 = vmatmul.msk.f32.gmra.mxu0 %vm277_vm0, %v2033_v33  ;;  %7353 = vmatmul.msk.f32.gmra.mxu1 %vm277_vm0, %v2033_v33 }
  0x95   : > { %7559 = vmatmul.msk.f32.gmra.mxu2 %vm277_vm0, %v2034_v34  ;;  %7764 = vmatmul.msk.f32.gmra.mxu3 %vm277_vm0, %v2034_v34 }
  0x99   : > { %7249 = vmatmul.msk.f32.gmra.mxu0 %vm277_vm0, %v2034_v34  ;;  %7354 = vmatmul.msk.f32.gmra.mxu1 %vm277_vm0, %v2034_v34 }
  0x9d   : > { %7560 = vmatmul.msk.f32.gmra.mxu2 %vm277_vm0, %v2035_v35  ;;  %7765 = vmatmul.msk.f32.gmra.mxu3 %vm277_vm0, %v2035_v35 }
  0xa1   : > { %7250 = vmatmul.msk.f32.gmra.mxu0 %vm277_vm0, %v2035_v35  ;;  %7355 = vmatmul.msk.f32.gmra.mxu1 %vm277_vm0, %v2035_v35 }
  0xa5   : > { %7561 = vmatmul.msk.f32.gmra.mxu2 %vm277_vm0, %v2036_v36  ;;  %7766 = vmatmul.msk.f32.gmra.mxu3 %vm277_vm0, %v2036_v36 }
  0xa6   : > { %v595_v37 = vpop.f32.mrf.mxu0  ;;  %v1519_v38 = vpop.f32.mrf.mxu1 }
  0xa7   : > { %8014 = vtanh.f32 %v595_v37 }
  0xa8   : > { %8016 = vtanh.f32 %v1519_v38  ;;  %v2443_v39 = vpop.f32.mrf.mxu2  ;;  %v3367_v40 = vpop.f32.mrf.mxu3 }
  0xa9   : > { %8018 = vtanh.f32 %v2443_v39  ;;  %7251 = vmatmul.msk.f32.gmra.mxu0 %vm277_vm0, %v2036_v36  ;;  %7356 = vmatmul.msk.f32.gmra.mxu1 %vm277_vm0, %v2036_v36 }
  0xaa   : > { %8020 = vtanh.f32 %v3367_v40  ;;  %v2044_v40 = vld [vmem:[%s11307_s1 + $0xc0] sm:$0xff] }
  0xad   : > { %v8015_v42 = vpop.eup %8014  ;;  %7562 = vmatmul.msk.f32.gmra.mxu2 %vm277_vm0, %v2037_v41  ;;  %7767 = vmatmul.msk.f32.gmra.mxu3 %vm277_vm0, %v2037_v41 }
  0xae   : > { %v8017_v43 = vpop.eup %8016  ;;  %996 = vst.msk [vmem:[%s9098_s9] sm:$0x7f] %vm995_vm1, %v8015_v42  ;;  %v598_v44 = vpop.f32.mrf.mxu0 }
  0xaf   : > { %v1522_v45 = vpop.f32.mrf.mxu1  ;;  %v8019_v46 = vpop.eup %8018  ;;  %7440 = vst.msk [vmem:[%s9098_s9 + $0x8] sm:$0x7f] %vm995_vm1, %v8017_v43  ;;  %8022 = vtanh.f32 %v598_v44 }
  0xb0   : > { %v8021_v47 = vpop.eup %8020  ;;  %7645 = vst.msk [vmem:[%s9098_s9 + $0x10] sm:$0x7f] %vm995_vm1, %v8019_v46  ;;  %8024 = vtanh.f32 %v1522_v45  ;;  %v2446_v48 = vpop.f32.mrf.mxu2 }
  0xb1   : > { %v3370_v49 = vpop.f32.mrf.mxu3  ;;  %7850 = vst.msk [vmem:[%s9098_s9 + $0x18] sm:$0x7f] %vm995_vm1, %v8021_v47  ;;  %8026 = vtanh.f32 %v2446_v48  ;;  %7252 = vmatmul.msk.f32.gmra.mxu0 %vm277_vm0, %v2037_v41  ;;  %7357 = vmatmul.msk.f32.gmra.mxu1 %vm277_vm0, %v2037_v41 }
  0xb2   : > { %8028 = vtanh.f32 %v3370_v49  ;;  %v2045_v49 = vld [vmem:[%s11307_s1 + $0xc8] sm:$0xff] }
  0xb5   : > { %v8023_v51 = vpop.eup %8022  ;;  %7563 = vmatmul.msk.f32.gmra.mxu2 %vm277_vm0, %v2038_v50  ;;  %7768 = vmatmul.msk.f32.gmra.mxu3 %vm277_vm0, %v2038_v50 }
  0xb6   : > { %v8025_v52 = vpop.eup %8024  ;;  %997 = vst.msk [vmem:[%s9098_s9 + $0x20] sm:$0x7f] %vm995_vm1, %v8023_v51  ;;  %v601_v53 = vpop.f32.mrf.mxu0 }
  0xb7   : > { %v1525_v54 = vpop.f32.mrf.mxu1  ;;  %v8027_v55 = vpop.eup %8026  ;;  %7441 = vst.msk [vmem:[%s9098_s9 + $0x28] sm:$0x7f] %vm995_vm1, %v8025_v52  ;;  %8030 = vtanh.f32 %v601_v53 }
  0xb8   : > { %v8029_v56 = vpop.eup %8028  ;;  %7646 = vst.msk [vmem:[%s9098_s9 + $0x30] sm:$0x7f] %vm995_vm1, %v8027_v55  ;;  %8032 = vtanh.f32 %v1525_v54  ;;  %v2449_v57 = vpop.f32.mrf.mxu2 }
  0xb9   : > { %v3373_v58 = vpop.f32.mrf.mxu3  ;;  %7851 = vst.msk [vmem:[%s9098_s9 + $0x38] sm:$0x7f] %vm995_vm1, %v8029_v56  ;;  %8034 = vtanh.f32 %v2449_v57  ;;  %7253 = vmatmul.msk.f32.gmra.mxu0 %vm277_vm0, %v2038_v50  ;;  %7358 = vmatmul.msk.f32.gmra.mxu1 %vm277_vm0, %v2038_v50 }
  0xba   : > { %8036 = vtanh.f32 %v3373_v58  ;;  %v2046_v58 = vld [vmem:[%s11307_s1 + $0xd0] sm:$0xff] }
  0xbd   : > { %v8031_v60 = vpop.eup %8030  ;;  %7564 = vmatmul.msk.f32.gmra.mxu2 %vm277_vm0, %v2039_v59  ;;  %7769 = vmatmul.msk.f32.gmra.mxu3 %vm277_vm0, %v2039_v59 }
  0xbe   : > { %v8033_v61 = vpop.eup %8032  ;;  %998 = vst.msk [vmem:[%s9098_s9 + $0x40] sm:$0x7f] %vm995_vm1, %v8031_v60  ;;  %v604_v62 = vpop.f32.mrf.mxu0 }
  0xbf   : > { %v1528_v63 = vpop.f32.mrf.mxu1  ;;  %v8035_v0 = vpop.eup %8034  ;;  %7442 = vst.msk [vmem:[%s9098_s9 + $0x48] sm:$0x7f] %vm995_vm1, %v8033_v61  ;;  %8038 = vtanh.f32 %v604_v62 }
  0xc0   : > { %v8037_v1 = vpop.eup %8036  ;;  %7647 = vst.msk [vmem:[%s9098_s9 + $0x50] sm:$0x7f] %vm995_vm1, %v8035_v0  ;;  %8040 = vtanh.f32 %v1528_v63  ;;  %v2452_v2 = vpop.f32.mrf.mxu2 }
  0xc1   : > { %v3376_v3 = vpop.f32.mrf.mxu3  ;;  %7852 = vst.msk [vmem:[%s9098_s9 + $0x58] sm:$0x7f] %vm995_vm1, %v8037_v1  ;;  %8042 = vtanh.f32 %v2452_v2  ;;  %7254 = vmatmul.msk.f32.gmra.mxu0 %vm277_vm0, %v2039_v59  ;;  %7359 = vmatmul.msk.f32.gmra.mxu1 %vm277_vm0, %v2039_v59 }
  0xc2   : > { %8044 = vtanh.f32 %v3376_v3  ;;  %v2047_v3 = vld [vmem:[%s11307_s1 + $0xd8] sm:$0xff] }
  0xc5   : > { %v8039_v5 = vpop.eup %8038  ;;  %7565 = vmatmul.msk.f32.gmra.mxu2 %vm277_vm0, %v2040_v4  ;;  %7770 = vmatmul.msk.f32.gmra.mxu3 %vm277_vm0, %v2040_v4 }
  0xc6   : > { %v8041_v6 = vpop.eup %8040  ;;  %999 = vst.msk [vmem:[%s9098_s9 + $0x60] sm:$0x7f] %vm995_vm1, %v8039_v5  ;;  %v607_v7 = vpop.f32.mrf.mxu0 }
  0xc7   : > { %v1531_v8 = vpop.f32.mrf.mxu1  ;;  %v8043_v9 = vpop.eup %8042  ;;  %7443 = vst.msk [vmem:[%s9098_s9 + $0x68] sm:$0x7f] %vm995_vm1, %v8041_v6  ;;  %8046 = vtanh.f32 %v607_v7 }
  0xc8   : > { %v8045_v10 = vpop.eup %8044  ;;  %7648 = vst.msk [vmem:[%s9098_s9 + $0x70] sm:$0x7f] %vm995_vm1, %v8043_v9  ;;  %8048 = vtanh.f32 %v1531_v8  ;;  %v2455_v11 = vpop.f32.mrf.mxu2 }
  0xc9   : > { %v3379_v12 = vpop.f32.mrf.mxu3  ;;  %7853 = vst.msk [vmem:[%s9098_s9 + $0x78] sm:$0x7f] %vm995_vm1, %v8045_v10  ;;  %8050 = vtanh.f32 %v2455_v11  ;;  %7255 = vmatmul.msk.f32.gmra.mxu0 %vm277_vm0, %v2040_v4  ;;  %7360 = vmatmul.msk.f32.gmra.mxu1 %vm277_vm0, %v2040_v4 }
  0xca   : > { %8052 = vtanh.f32 %v3379_v12  ;;  %v2048_v12 = vld [vmem:[%s11307_s1 + $0xe0] sm:$0xff] }
  0xcd   : > { %v8047_v14 = vpop.eup %8046  ;;  %7566 = vmatmul.msk.f32.gmra.mxu2 %vm277_vm0, %v2041_v13  ;;  %7771 = vmatmul.msk.f32.gmra.mxu3 %vm277_vm0, %v2041_v13 }
  0xce   : > { %v8049_v15 = vpop.eup %8048  ;;  %1000 = vst.msk [vmem:[%s9098_s9 + $0x80] sm:$0x7f] %vm995_vm1, %v8047_v14  ;;  %v610_v16 = vpop.f32.mrf.mxu0 }
  0xcf   : > { %v1534_v17 = vpop.f32.mrf.mxu1  ;;  %v8051_v18 = vpop.eup %8050  ;;  %7444 = vst.msk [vmem:[%s9098_s9 + $0x88] sm:$0x7f] %vm995_vm1, %v8049_v15  ;;  %8054 = vtanh.f32 %v610_v16 }
  0xd0   : > { %v8053_v19 = vpop.eup %8052  ;;  %7649 = vst.msk [vmem:[%s9098_s9 + $0x90] sm:$0x7f] %vm995_vm1, %v8051_v18  ;;  %8056 = vtanh.f32 %v1534_v17  ;;  %v2458_v20 = vpop.f32.mrf.mxu2 }
  0xd1   : > { %v3382_v21 = vpop.f32.mrf.mxu3  ;;  %7854 = vst.msk [vmem:[%s9098_s9 + $0x98] sm:$0x7f] %vm995_vm1, %v8053_v19  ;;  %8058 = vtanh.f32 %v2458_v20  ;;  %7256 = vmatmul.msk.f32.gmra.mxu0 %vm277_vm0, %v2041_v13  ;;  %7361 = vmatmul.msk.f32.gmra.mxu1 %vm277_vm0, %v2041_v13 }
  0xd2   : > { %8060 = vtanh.f32 %v3382_v21  ;;  %v2049_v21 = vld [vmem:[%s11307_s1 + $0xe8] sm:$0xff] }
  0xd5   : > { %v8055_v23 = vpop.eup %8054  ;;  %7567 = vmatmul.msk.f32.gmra.mxu2 %vm277_vm0, %v2042_v22  ;;  %7772 = vmatmul.msk.f32.gmra.mxu3 %vm277_vm0, %v2042_v22 }
  0xd6   : > { %v8057_v24 = vpop.eup %8056  ;;  %1001 = vst.msk [vmem:[%s9098_s9 + $0xa0] sm:$0x7f] %vm995_vm1, %v8055_v23  ;;  %v613_v25 = vpop.f32.mrf.mxu0 }
  0xd7   : > { %v1537_v26 = vpop.f32.mrf.mxu1  ;;  %v8059_v27 = vpop.eup %8058  ;;  %7445 = vst.msk [vmem:[%s9098_s9 + $0xa8] sm:$0x7f] %vm995_vm1, %v8057_v24  ;;  %8062 = vtanh.f32 %v613_v25 }
  0xd8   : > { %v8061_v28 = vpop.eup %8060  ;;  %7650 = vst.msk [vmem:[%s9098_s9 + $0xb0] sm:$0x7f] %vm995_vm1, %v8059_v27  ;;  %8064 = vtanh.f32 %v1537_v26  ;;  %v2461_v29 = vpop.f32.mrf.mxu2 }
  0xd9   : > { %v3385_v30 = vpop.f32.mrf.mxu3  ;;  %7855 = vst.msk [vmem:[%s9098_s9 + $0xb8] sm:$0x7f] %vm995_vm1, %v8061_v28  ;;  %8066 = vtanh.f32 %v2461_v29  ;;  %7257 = vmatmul.msk.f32.gmra.mxu0 %vm277_vm0, %v2042_v22  ;;  %7362 = vmatmul.msk.f32.gmra.mxu1 %vm277_vm0, %v2042_v22 }
  0xda   : > { %8068 = vtanh.f32 %v3385_v30  ;;  %v2050_v30 = vld [vmem:[%s11307_s1 + $0xf0] sm:$0xff] }
  0xdd   : > { %v8063_v32 = vpop.eup %8062  ;;  %7568 = vmatmul.msk.f32.gmra.mxu2 %vm277_vm0, %v2043_v31  ;;  %7773 = vmatmul.msk.f32.gmra.mxu3 %vm277_vm0, %v2043_v31 }
  0xde   : > { %v8065_v33 = vpop.eup %8064  ;;  %1002 = vst.msk [vmem:[%s9098_s9 + $0xc0] sm:$0x7f] %vm995_vm1, %v8063_v32  ;;  %v616_v34 = vpop.f32.mrf.mxu0 }
  0xdf   : > { %v1540_v35 = vpop.f32.mrf.mxu1  ;;  %v8067_v36 = vpop.eup %8066  ;;  %7446 = vst.msk [vmem:[%s9098_s9 + $0xc8] sm:$0x7f] %vm995_vm1, %v8065_v33  ;;  %8070 = vtanh.f32 %v616_v34 }
  0xe0   : > { %v8069_v37 = vpop.eup %8068  ;;  %7651 = vst.msk [vmem:[%s9098_s9 + $0xd0] sm:$0x7f] %vm995_vm1, %v8067_v36  ;;  %8072 = vtanh.f32 %v1540_v35  ;;  %v2464_v38 = vpop.f32.mrf.mxu2 }
  0xe1   : > { %v3388_v39 = vpop.f32.mrf.mxu3  ;;  %7856 = vst.msk [vmem:[%s9098_s9 + $0xd8] sm:$0x7f] %vm995_vm1, %v8069_v37  ;;  %8074 = vtanh.f32 %v2464_v38  ;;  %7258 = vmatmul.msk.f32.gmra.mxu0 %vm277_vm0, %v2043_v31  ;;  %7363 = vmatmul.msk.f32.gmra.mxu1 %vm277_vm0, %v2043_v31 }
  0xe2   : > { %8076 = vtanh.f32 %v3388_v39  ;;  %v2051_v39 = vld [vmem:[%s11307_s1 + $0xf8] sm:$0xff] }
  0xe5   : > { %v8071_v41 = vpop.eup %8070  ;;  %7569 = vmatmul.msk.f32.gmra.mxu2 %vm277_vm0, %v2044_v40  ;;  %7774 = vmatmul.msk.f32.gmra.mxu3 %vm277_vm0, %v2044_v40 }
  0xe6   : > { %v8073_v42 = vpop.eup %8072  ;;  %1003 = vst.msk [vmem:[%s9098_s9 + $0xe0] sm:$0x7f] %vm995_vm1, %v8071_v41  ;;  %v619_v43 = vpop.f32.mrf.mxu0 }
  0xe7   : > { %v1543_v44 = vpop.f32.mrf.mxu1  ;;  %v8075_v45 = vpop.eup %8074  ;;  %7447 = vst.msk [vmem:[%s9098_s9 + $0xe8] sm:$0x7f] %vm995_vm1, %v8073_v42  ;;  %8078 = vtanh.f32 %v619_v43 }
  0xe8   : > { %v8077_v46 = vpop.eup %8076  ;;  %7652 = vst.msk [vmem:[%s9098_s9 + $0xf0] sm:$0x7f] %vm995_vm1, %v8075_v45  ;;  %8080 = vtanh.f32 %v1543_v44  ;;  %v2467_v47 = vpop.f32.mrf.mxu2 }
  0xe9   : > { %v3391_v48 = vpop.f32.mrf.mxu3  ;;  %7857 = vst.msk [vmem:[%s9098_s9 + $0xf8] sm:$0x7f] %vm995_vm1, %v8077_v46  ;;  %8082 = vtanh.f32 %v2467_v47  ;;  %7259 = vmatmul.msk.f32.gmra.mxu0 %vm277_vm0, %v2044_v40  ;;  %7364 = vmatmul.msk.f32.gmra.mxu1 %vm277_vm0, %v2044_v40 }
  0xea   : > { %8084 = vtanh.f32 %v3391_v48  ;;  %v2052_v48 = vld [vmem:[%s11307_s1 + $0x100] sm:$0xff] }
  0xed   : > { %v8079_v50 = vpop.eup %8078  ;;  %7570 = vmatmul.msk.f32.gmra.mxu2 %vm277_vm0, %v2045_v49  ;;  %7775 = vmatmul.msk.f32.gmra.mxu3 %vm277_vm0, %v2045_v49 }
  0xee   : > { %v8081_v51 = vpop.eup %8080  ;;  %1004 = vst.msk [vmem:[%s9098_s9 + $0x100] sm:$0x7f] %vm995_vm1, %v8079_v50  ;;  %v622_v52 = vpop.f32.mrf.mxu0 }
  0xef   : > { %v1546_v53 = vpop.f32.mrf.mxu1  ;;  %v8083_v54 = vpop.eup %8082  ;;  %7448 = vst.msk [vmem:[%s9098_s9 + $0x108] sm:$0x7f] %vm995_vm1, %v8081_v51  ;;  %8086 = vtanh.f32 %v622_v52 }
  0xf0   : > { %v8085_v55 = vpop.eup %8084  ;;  %7653 = vst.msk [vmem:[%s9098_s9 + $0x110] sm:$0x7f] %vm995_vm1, %v8083_v54  ;;  %8088 = vtanh.f32 %v1546_v53  ;;  %v2470_v56 = vpop.f32.mrf.mxu2 }
  0xf1   : > { %v3394_v57 = vpop.f32.mrf.mxu3  ;;  %7858 = vst.msk [vmem:[%s9098_s9 + $0x118] sm:$0x7f] %vm995_vm1, %v8085_v55  ;;  %8090 = vtanh.f32 %v2470_v56  ;;  %7260 = vmatmul.msk.f32.gmra.mxu0 %vm277_vm0, %v2045_v49  ;;  %7365 = vmatmul.msk.f32.gmra.mxu1 %vm277_vm0, %v2045_v49 }
  0xf2   : > { %8092 = vtanh.f32 %v3394_v57  ;;  %v2053_v57 = vld [vmem:[%s11307_s1 + $0x108] sm:$0xff] }
  0xf5   : > { %v8087_v59 = vpop.eup %8086  ;;  %7571 = vmatmul.msk.f32.gmra.mxu2 %vm277_vm0, %v2046_v58  ;;  %7776 = vmatmul.msk.f32.gmra.mxu3 %vm277_vm0, %v2046_v58 }
  0xf6   : > { %v8089_v60 = vpop.eup %8088  ;;  %1005 = vst.msk [vmem:[%s9098_s9 + $0x120] sm:$0x7f] %vm995_vm1, %v8087_v59  ;;  %v625_v61 = vpop.f32.mrf.mxu0 }
  0xf7   : > { %v1549_v62 = vpop.f32.mrf.mxu1  ;;  %v8091_v63 = vpop.eup %8090  ;;  %7449 = vst.msk [vmem:[%s9098_s9 + $0x128] sm:$0x7f] %vm995_vm1, %v8089_v60  ;;  %8094 = vtanh.f32 %v625_v61 }
  0xf8   : > { %v8093_v0 = vpop.eup %8092  ;;  %7654 = vst.msk [vmem:[%s9098_s9 + $0x130] sm:$0x7f] %vm995_vm1, %v8091_v63  ;;  %8096 = vtanh.f32 %v1549_v62  ;;  %v2473_v1 = vpop.f32.mrf.mxu2 }
  0xf9   : > { %v3397_v2 = vpop.f32.mrf.mxu3  ;;  %7859 = vst.msk [vmem:[%s9098_s9 + $0x138] sm:$0x7f] %vm995_vm1, %v8093_v0  ;;  %8098 = vtanh.f32 %v2473_v1  ;;  %7261 = vmatmul.msk.f32.gmra.mxu0 %vm277_vm0, %v2046_v58  ;;  %7366 = vmatmul.msk.f32.gmra.mxu1 %vm277_vm0, %v2046_v58 }
  0xfa   : > { %8100 = vtanh.f32 %v3397_v2  ;;  %v2054_v2 = vld [vmem:[%s11307_s1 + $0x110] sm:$0xff] }
  0xfd   : > { %v8095_v4 = vpop.eup %8094  ;;  %7572 = vmatmul.msk.f32.gmra.mxu2 %vm277_vm0, %v2047_v3  ;;  %7777 = vmatmul.msk.f32.gmra.mxu3 %vm277_vm0, %v2047_v3 }
  0xfe   : > { %v8097_v5 = vpop.eup %8096  ;;  %1006 = vst.msk [vmem:[%s9098_s9 + $0x140] sm:$0x7f] %vm995_vm1, %v8095_v4  ;;  %v628_v6 = vpop.f32.mrf.mxu0 }
  0xff   : > { %v1552_v7 = vpop.f32.mrf.mxu1  ;;  %v8099_v8 = vpop.eup %8098  ;;  %7450 = vst.msk [vmem:[%s9098_s9 + $0x148] sm:$0x7f] %vm995_vm1, %v8097_v5  ;;  %8102 = vtanh.f32 %v628_v6 }
 0x100   : > { %v8101_v9 = vpop.eup %8100  ;;  %7655 = vst.msk [vmem:[%s9098_s9 + $0x150] sm:$0x7f] %vm995_vm1, %v8099_v8  ;;  %8104 = vtanh.f32 %v1552_v7  ;;  %v2476_v10 = vpop.f32.mrf.mxu2 }
 0x101   : > { %v3400_v11 = vpop.f32.mrf.mxu3  ;;  %7860 = vst.msk [vmem:[%s9098_s9 + $0x158] sm:$0x7f] %vm995_vm1, %v8101_v9  ;;  %8106 = vtanh.f32 %v2476_v10  ;;  %7262 = vmatmul.msk.f32.gmra.mxu0 %vm277_vm0, %v2047_v3  ;;  %7367 = vmatmul.msk.f32.gmra.mxu1 %vm277_vm0, %v2047_v3 }
 0x102   : > { %8108 = vtanh.f32 %v3400_v11  ;;  %v2055_v11 = vld [vmem:[%s11307_s1 + $0x118] sm:$0xff] }
 0x105   : > { %v8103_v13 = vpop.eup %8102  ;;  %7573 = vmatmul.msk.f32.gmra.mxu2 %vm277_vm0, %v2048_v12  ;;  %7778 = vmatmul.msk.f32.gmra.mxu3 %vm277_vm0, %v2048_v12 }
 0x106   : > { %v8105_v14 = vpop.eup %8104  ;;  %1007 = vst.msk [vmem:[%s9098_s9 + $0x160] sm:$0x7f] %vm995_vm1, %v8103_v13  ;;  %v631_v15 = vpop.f32.mrf.mxu0 }
 0x107   : > { %v1555_v16 = vpop.f32.mrf.mxu1  ;;  %v8107_v17 = vpop.eup %8106  ;;  %7451 = vst.msk [vmem:[%s9098_s9 + $0x168] sm:$0x7f] %vm995_vm1, %v8105_v14  ;;  %8110 = vtanh.f32 %v631_v15 }
 0x108   : > { %v8109_v18 = vpop.eup %8108  ;;  %7656 = vst.msk [vmem:[%s9098_s9 + $0x170] sm:$0x7f] %vm995_vm1, %v8107_v17  ;;  %8112 = vtanh.f32 %v1555_v16  ;;  %v2479_v19 = vpop.f32.mrf.mxu2 }
 0x109   : > { %v3403_v20 = vpop.f32.mrf.mxu3  ;;  %7861 = vst.msk [vmem:[%s9098_s9 + $0x178] sm:$0x7f] %vm995_vm1, %v8109_v18  ;;  %8114 = vtanh.f32 %v2479_v19  ;;  %7263 = vmatmul.msk.f32.gmra.mxu0 %vm277_vm0, %v2048_v12  ;;  %7368 = vmatmul.msk.f32.gmra.mxu1 %vm277_vm0, %v2048_v12 }
 0x10a   : > { %8116 = vtanh.f32 %v3403_v20  ;;  %v2056_v20 = vld [vmem:[%s11307_s1 + $0x120] sm:$0xff] }
 0x10d   : > { %v8111_v22 = vpop.eup %8110  ;;  %7574 = vmatmul.msk.f32.gmra.mxu2 %vm277_vm0, %v2049_v21  ;;  %7779 = vmatmul.msk.f32.gmra.mxu3 %vm277_vm0, %v2049_v21 }
 0x10e   : > { %v8113_v23 = vpop.eup %8112  ;;  %1008 = vst.msk [vmem:[%s9098_s9 + $0x180] sm:$0x7f] %vm995_vm1, %v8111_v22  ;;  %v634_v24 = vpop.f32.mrf.mxu0 }
 0x10f   : > { %v1558_v25 = vpop.f32.mrf.mxu1  ;;  %v8115_v26 = vpop.eup %8114  ;;  %7452 = vst.msk [vmem:[%s9098_s9 + $0x188] sm:$0x7f] %vm995_vm1, %v8113_v23  ;;  %8118 = vtanh.f32 %v634_v24 }
 0x110   : > { %v8117_v27 = vpop.eup %8116  ;;  %7657 = vst.msk [vmem:[%s9098_s9 + $0x190] sm:$0x7f] %vm995_vm1, %v8115_v26  ;;  %8120 = vtanh.f32 %v1558_v25  ;;  %v2482_v28 = vpop.f32.mrf.mxu2 }
 0x111   : > { %v3406_v29 = vpop.f32.mrf.mxu3  ;;  %7862 = vst.msk [vmem:[%s9098_s9 + $0x198] sm:$0x7f] %vm995_vm1, %v8117_v27  ;;  %8122 = vtanh.f32 %v2482_v28  ;;  %7264 = vmatmul.msk.f32.gmra.mxu0 %vm277_vm0, %v2049_v21  ;;  %7369 = vmatmul.msk.f32.gmra.mxu1 %vm277_vm0, %v2049_v21 }
 0x112   : > { %8124 = vtanh.f32 %v3406_v29  ;;  %v2057_v29 = vld [vmem:[%s11307_s1 + $0x128] sm:$0xff] }
 0x115   : > { %v8119_v31 = vpop.eup %8118  ;;  %7575 = vmatmul.msk.f32.gmra.mxu2 %vm277_vm0, %v2050_v30  ;;  %7780 = vmatmul.msk.f32.gmra.mxu3 %vm277_vm0, %v2050_v30 }
 0x116   : > { %v8121_v32 = vpop.eup %8120  ;;  %1009 = vst.msk [vmem:[%s9098_s9 + $0x1a0] sm:$0x7f] %vm995_vm1, %v8119_v31  ;;  %v637_v33 = vpop.f32.mrf.mxu0 }
 0x117   : > { %v1561_v34 = vpop.f32.mrf.mxu1  ;;  %v8123_v35 = vpop.eup %8122  ;;  %7453 = vst.msk [vmem:[%s9098_s9 + $0x1a8] sm:$0x7f] %vm995_vm1, %v8121_v32  ;;  %8126 = vtanh.f32 %v637_v33 }
 0x118   : > { %v8125_v36 = vpop.eup %8124  ;;  %7658 = vst.msk [vmem:[%s9098_s9 + $0x1b0] sm:$0x7f] %vm995_vm1, %v8123_v35  ;;  %8128 = vtanh.f32 %v1561_v34  ;;  %v2485_v37 = vpop.f32.mrf.mxu2 }
 0x119   : > { %v3409_v38 = vpop.f32.mrf.mxu3  ;;  %7863 = vst.msk [vmem:[%s9098_s9 + $0x1b8] sm:$0x7f] %vm995_vm1, %v8125_v36  ;;  %8130 = vtanh.f32 %v2485_v37  ;;  %7265 = vmatmul.msk.f32.gmra.mxu0 %vm277_vm0, %v2050_v30  ;;  %7370 = vmatmul.msk.f32.gmra.mxu1 %vm277_vm0, %v2050_v30 }
 0x11a   : > { %8132 = vtanh.f32 %v3409_v38  ;;  %v2058_v38 = vld [vmem:[%s11307_s1 + $0x130] sm:$0xff] }
 0x11d   : > { %v8127_v40 = vpop.eup %8126  ;;  %7576 = vmatmul.msk.f32.gmra.mxu2 %vm277_vm0, %v2051_v39  ;;  %7781 = vmatmul.msk.f32.gmra.mxu3 %vm277_vm0, %v2051_v39 }
 0x11e   : > { %v8129_v41 = vpop.eup %8128  ;;  %1010 = vst.msk [vmem:[%s9098_s9 + $0x1c0] sm:$0x7f] %vm995_vm1, %v8127_v40  ;;  %v640_v42 = vpop.f32.mrf.mxu0 }
 0x11f   : > { %v1564_v43 = vpop.f32.mrf.mxu1  ;;  %v8131_v44 = vpop.eup %8130  ;;  %7454 = vst.msk [vmem:[%s9098_s9 + $0x1c8] sm:$0x7f] %vm995_vm1, %v8129_v41  ;;  %8134 = vtanh.f32 %v640_v42 }
 0x120   : > { %v8133_v45 = vpop.eup %8132  ;;  %7659 = vst.msk [vmem:[%s9098_s9 + $0x1d0] sm:$0x7f] %vm995_vm1, %v8131_v44  ;;  %8136 = vtanh.f32 %v1564_v43  ;;  %v2488_v46 = vpop.f32.mrf.mxu2 }
 0x121   : > { %v3412_v47 = vpop.f32.mrf.mxu3  ;;  %7864 = vst.msk [vmem:[%s9098_s9 + $0x1d8] sm:$0x7f] %vm995_vm1, %v8133_v45  ;;  %8138 = vtanh.f32 %v2488_v46  ;;  %7266 = vmatmul.msk.f32.gmra.mxu0 %vm277_vm0, %v2051_v39  ;;  %7371 = vmatmul.msk.f32.gmra.mxu1 %vm277_vm0, %v2051_v39 }
 0x122   : > { %8140 = vtanh.f32 %v3412_v47  ;;  %v2059_v47 = vld [vmem:[%s11307_s1 + $0x138] sm:$0xff] }
 0x125   : > { %v8135_v49 = vpop.eup %8134  ;;  %7577 = vmatmul.msk.f32.gmra.mxu2 %vm277_vm0, %v2052_v48  ;;  %7782 = vmatmul.msk.f32.gmra.mxu3 %vm277_vm0, %v2052_v48 }
 0x126   : > { %v8137_v50 = vpop.eup %8136  ;;  %1011 = vst.msk [vmem:[%s9098_s9 + $0x1e0] sm:$0x7f] %vm995_vm1, %v8135_v49  ;;  %v643_v51 = vpop.f32.mrf.mxu0 }
 0x127   : > { %v1567_v52 = vpop.f32.mrf.mxu1  ;;  %v8139_v53 = vpop.eup %8138  ;;  %7455 = vst.msk [vmem:[%s9098_s9 + $0x1e8] sm:$0x7f] %vm995_vm1, %v8137_v50  ;;  %8142 = vtanh.f32 %v643_v51 }
 0x128   : > { %v8141_v54 = vpop.eup %8140  ;;  %7660 = vst.msk [vmem:[%s9098_s9 + $0x1f0] sm:$0x7f] %vm995_vm1, %v8139_v53  ;;  %8144 = vtanh.f32 %v1567_v52  ;;  %v2491_v55 = vpop.f32.mrf.mxu2 }
 0x129   : > { %v3415_v56 = vpop.f32.mrf.mxu3  ;;  %7865 = vst.msk [vmem:[%s9098_s9 + $0x1f8] sm:$0x7f] %vm995_vm1, %v8141_v54  ;;  %8146 = vtanh.f32 %v2491_v55  ;;  %7267 = vmatmul.msk.f32.gmra.mxu0 %vm277_vm0, %v2052_v48  ;;  %7372 = vmatmul.msk.f32.gmra.mxu1 %vm277_vm0, %v2052_v48 }
 0x12a   : > { %8148 = vtanh.f32 %v3415_v56  ;;  %v2060_v56 = vld [vmem:[%s11307_s1 + $0x140] sm:$0xff] }
 0x12d   : > { %v8143_v58 = vpop.eup %8142  ;;  %7578 = vmatmul.msk.f32.gmra.mxu2 %vm277_vm0, %v2053_v57  ;;  %7783 = vmatmul.msk.f32.gmra.mxu3 %vm277_vm0, %v2053_v57 }
 0x12e   : > { %v8145_v59 = vpop.eup %8144  ;;  %1012 = vst.msk [vmem:[%s9098_s9 + $0x200] sm:$0x7f] %vm995_vm1, %v8143_v58  ;;  %v646_v60 = vpop.f32.mrf.mxu0 }
 0x12f   : > { %v1570_v61 = vpop.f32.mrf.mxu1  ;;  %v8147_v62 = vpop.eup %8146  ;;  %7456 = vst.msk [vmem:[%s9098_s9 + $0x208] sm:$0x7f] %vm995_vm1, %v8145_v59  ;;  %8150 = vtanh.f32 %v646_v60 }
 0x130   : > { %v8149_v63 = vpop.eup %8148  ;;  %7661 = vst.msk [vmem:[%s9098_s9 + $0x210] sm:$0x7f] %vm995_vm1, %v8147_v62  ;;  %8152 = vtanh.f32 %v1570_v61  ;;  %v2494_v0 = vpop.f32.mrf.mxu2 }
 0x131   : > { %v3418_v1 = vpop.f32.mrf.mxu3  ;;  %7866 = vst.msk [vmem:[%s9098_s9 + $0x218] sm:$0x7f] %vm995_vm1, %v8149_v63  ;;  %8154 = vtanh.f32 %v2494_v0  ;;  %7268 = vmatmul.msk.f32.gmra.mxu0 %vm277_vm0, %v2053_v57  ;;  %7373 = vmatmul.msk.f32.gmra.mxu1 %vm277_vm0, %v2053_v57 }
 0x132   : > { %8156 = vtanh.f32 %v3418_v1  ;;  %v2061_v1 = vld [vmem:[%s11307_s1 + $0x148] sm:$0xff] }
 0x135   : > { %v8151_v3 = vpop.eup %8150  ;;  %7579 = vmatmul.msk.f32.gmra.mxu2 %vm277_vm0, %v2054_v2  ;;  %7784 = vmatmul.msk.f32.gmra.mxu3 %vm277_vm0, %v2054_v2 }
 0x136   : > { %v8153_v4 = vpop.eup %8152  ;;  %1013 = vst.msk [vmem:[%s9098_s9 + $0x220] sm:$0x7f] %vm995_vm1, %v8151_v3  ;;  %v649_v5 = vpop.f32.mrf.mxu0 }
 0x137   : > { %v1573_v6 = vpop.f32.mrf.mxu1  ;;  %v8155_v7 = vpop.eup %8154  ;;  %7457 = vst.msk [vmem:[%s9098_s9 + $0x228] sm:$0x7f] %vm995_vm1, %v8153_v4  ;;  %8158 = vtanh.f32 %v649_v5 }
 0x138   : > { %v8157_v8 = vpop.eup %8156  ;;  %7662 = vst.msk [vmem:[%s9098_s9 + $0x230] sm:$0x7f] %vm995_vm1, %v8155_v7  ;;  %8160 = vtanh.f32 %v1573_v6  ;;  %v2497_v9 = vpop.f32.mrf.mxu2 }
 0x139   : > { %v3421_v10 = vpop.f32.mrf.mxu3  ;;  %7867 = vst.msk [vmem:[%s9098_s9 + $0x238] sm:$0x7f] %vm995_vm1, %v8157_v8  ;;  %8162 = vtanh.f32 %v2497_v9  ;;  %7269 = vmatmul.msk.f32.gmra.mxu0 %vm277_vm0, %v2054_v2  ;;  %7374 = vmatmul.msk.f32.gmra.mxu1 %vm277_vm0, %v2054_v2 }
 0x13a   : > { %8164 = vtanh.f32 %v3421_v10  ;;  %v2062_v10 = vld [vmem:[%s11307_s1 + $0x150] sm:$0xff] }
 0x13d   : > { %v8159_v12 = vpop.eup %8158  ;;  %7580 = vmatmul.msk.f32.gmra.mxu2 %vm277_vm0, %v2055_v11  ;;  %7785 = vmatmul.msk.f32.gmra.mxu3 %vm277_vm0, %v2055_v11 }
 0x13e   : > { %v8161_v13 = vpop.eup %8160  ;;  %1014 = vst.msk [vmem:[%s9098_s9 + $0x240] sm:$0x7f] %vm995_vm1, %v8159_v12  ;;  %v652_v14 = vpop.f32.mrf.mxu0 }
 0x13f   : > { %v1576_v15 = vpop.f32.mrf.mxu1  ;;  %v8163_v16 = vpop.eup %8162  ;;  %7458 = vst.msk [vmem:[%s9098_s9 + $0x248] sm:$0x7f] %vm995_vm1, %v8161_v13  ;;  %8166 = vtanh.f32 %v652_v14 }
 0x140   : > { %v8165_v17 = vpop.eup %8164  ;;  %7663 = vst.msk [vmem:[%s9098_s9 + $0x250] sm:$0x7f] %vm995_vm1, %v8163_v16  ;;  %8168 = vtanh.f32 %v1576_v15  ;;  %v2500_v18 = vpop.f32.mrf.mxu2 }
 0x141   : > { %v3424_v19 = vpop.f32.mrf.mxu3  ;;  %7868 = vst.msk [vmem:[%s9098_s9 + $0x258] sm:$0x7f] %vm995_vm1, %v8165_v17  ;;  %8170 = vtanh.f32 %v2500_v18  ;;  %7270 = vmatmul.msk.f32.gmra.mxu0 %vm277_vm0, %v2055_v11  ;;  %7375 = vmatmul.msk.f32.gmra.mxu1 %vm277_vm0, %v2055_v11 }
 0x142   : > { %8172 = vtanh.f32 %v3424_v19  ;;  %v2063_v19 = vld [vmem:[%s11307_s1 + $0x158] sm:$0xff] }
 0x145   : > { %v8167_v21 = vpop.eup %8166  ;;  %7581 = vmatmul.msk.f32.gmra.mxu2 %vm277_vm0, %v2056_v20  ;;  %7786 = vmatmul.msk.f32.gmra.mxu3 %vm277_vm0, %v2056_v20 }
 0x146   : > { %v8169_v22 = vpop.eup %8168  ;;  %1015 = vst.msk [vmem:[%s9098_s9 + $0x260] sm:$0x7f] %vm995_vm1, %v8167_v21  ;;  %v655_v23 = vpop.f32.mrf.mxu0 }
 0x147   : > { %v1579_v24 = vpop.f32.mrf.mxu1  ;;  %v8171_v25 = vpop.eup %8170  ;;  %7459 = vst.msk [vmem:[%s9098_s9 + $0x268] sm:$0x7f] %vm995_vm1, %v8169_v22  ;;  %8174 = vtanh.f32 %v655_v23 }
 0x148   : > { %v8173_v26 = vpop.eup %8172  ;;  %7664 = vst.msk [vmem:[%s9098_s9 + $0x270] sm:$0x7f] %vm995_vm1, %v8171_v25  ;;  %8176 = vtanh.f32 %v1579_v24  ;;  %v2503_v27 = vpop.f32.mrf.mxu2 }
 0x149   : > { %v3427_v28 = vpop.f32.mrf.mxu3  ;;  %7869 = vst.msk [vmem:[%s9098_s9 + $0x278] sm:$0x7f] %vm995_vm1, %v8173_v26  ;;  %8178 = vtanh.f32 %v2503_v27  ;;  %7271 = vmatmul.msk.f32.gmra.mxu0 %vm277_vm0, %v2056_v20  ;;  %7376 = vmatmul.msk.f32.gmra.mxu1 %vm277_vm0, %v2056_v20 }
 0x14a   : > { %8180 = vtanh.f32 %v3427_v28  ;;  %v2064_v28 = vld [vmem:[%s11307_s1 + $0x160] sm:$0xff] }
 0x14d   : > { %v8175_v30 = vpop.eup %8174  ;;  %7582 = vmatmul.msk.f32.gmra.mxu2 %vm277_vm0, %v2057_v29  ;;  %7787 = vmatmul.msk.f32.gmra.mxu3 %vm277_vm0, %v2057_v29 }
 0x14e   : > { %v8177_v31 = vpop.eup %8176  ;;  %1016 = vst.msk [vmem:[%s9098_s9 + $0x280] sm:$0x7f] %vm995_vm1, %v8175_v30  ;;  %v658_v32 = vpop.f32.mrf.mxu0 }
 0x14f   : > { %v1582_v33 = vpop.f32.mrf.mxu1  ;;  %v8179_v34 = vpop.eup %8178  ;;  %7460 = vst.msk [vmem:[%s9098_s9 + $0x288] sm:$0x7f] %vm995_vm1, %v8177_v31  ;;  %8182 = vtanh.f32 %v658_v32 }
 0x150   : > { %v8181_v35 = vpop.eup %8180  ;;  %7665 = vst.msk [vmem:[%s9098_s9 + $0x290] sm:$0x7f] %vm995_vm1, %v8179_v34  ;;  %8184 = vtanh.f32 %v1582_v33  ;;  %v2506_v36 = vpop.f32.mrf.mxu2 }
 0x151   : > { %v3430_v37 = vpop.f32.mrf.mxu3  ;;  %7870 = vst.msk [vmem:[%s9098_s9 + $0x298] sm:$0x7f] %vm995_vm1, %v8181_v35  ;;  %8186 = vtanh.f32 %v2506_v36  ;;  %7272 = vmatmul.msk.f32.gmra.mxu0 %vm277_vm0, %v2057_v29  ;;  %7377 = vmatmul.msk.f32.gmra.mxu1 %vm277_vm0, %v2057_v29 }
 0x152   : > { %8188 = vtanh.f32 %v3430_v37  ;;  %v2065_v37 = vld [vmem:[%s11307_s1 + $0x168] sm:$0xff] }
 0x155   : > { %v8183_v39 = vpop.eup %8182  ;;  %7583 = vmatmul.msk.f32.gmra.mxu2 %vm277_vm0, %v2058_v38  ;;  %7788 = vmatmul.msk.f32.gmra.mxu3 %vm277_vm0, %v2058_v38 }
 0x156   : > { %v8185_v40 = vpop.eup %8184  ;;  %1017 = vst.msk [vmem:[%s9098_s9 + $0x2a0] sm:$0x7f] %vm995_vm1, %v8183_v39  ;;  %v661_v41 = vpop.f32.mrf.mxu0 }
 0x157   : > { %v1585_v42 = vpop.f32.mrf.mxu1  ;;  %v8187_v43 = vpop.eup %8186  ;;  %7461 = vst.msk [vmem:[%s9098_s9 + $0x2a8] sm:$0x7f] %vm995_vm1, %v8185_v40  ;;  %8190 = vtanh.f32 %v661_v41 }
 0x158   : > { %v8189_v44 = vpop.eup %8188  ;;  %7666 = vst.msk [vmem:[%s9098_s9 + $0x2b0] sm:$0x7f] %vm995_vm1, %v8187_v43  ;;  %8192 = vtanh.f32 %v1585_v42  ;;  %v2509_v45 = vpop.f32.mrf.mxu2 }
 0x159   : > { %v3433_v46 = vpop.f32.mrf.mxu3  ;;  %7871 = vst.msk [vmem:[%s9098_s9 + $0x2b8] sm:$0x7f] %vm995_vm1, %v8189_v44  ;;  %8194 = vtanh.f32 %v2509_v45  ;;  %7273 = vmatmul.msk.f32.gmra.mxu0 %vm277_vm0, %v2058_v38  ;;  %7378 = vmatmul.msk.f32.gmra.mxu1 %vm277_vm0, %v2058_v38 }
 0x15a   : > { %8196 = vtanh.f32 %v3433_v46  ;;  %v2066_v46 = vld [vmem:[%s11307_s1 + $0x170] sm:$0xff] }
 0x15d   : > { %v8191_v48 = vpop.eup %8190  ;;  %7584 = vmatmul.msk.f32.gmra.mxu2 %vm277_vm0, %v2059_v47  ;;  %7789 = vmatmul.msk.f32.gmra.mxu3 %vm277_vm0, %v2059_v47 }
 0x15e   : > { %v8193_v49 = vpop.eup %8192  ;;  %1018 = vst.msk [vmem:[%s9098_s9 + $0x2c0] sm:$0x7f] %vm995_vm1, %v8191_v48  ;;  %v664_v50 = vpop.f32.mrf.mxu0 }
 0x15f   : > { %v1588_v51 = vpop.f32.mrf.mxu1  ;;  %v8195_v52 = vpop.eup %8194  ;;  %7462 = vst.msk [vmem:[%s9098_s9 + $0x2c8] sm:$0x7f] %vm995_vm1, %v8193_v49  ;;  %8198 = vtanh.f32 %v664_v50 }
 0x160   : > { %v8197_v53 = vpop.eup %8196  ;;  %7667 = vst.msk [vmem:[%s9098_s9 + $0x2d0] sm:$0x7f] %vm995_vm1, %v8195_v52  ;;  %8200 = vtanh.f32 %v1588_v51  ;;  %v2512_v54 = vpop.f32.mrf.mxu2 }
 0x161   : > { %v3436_v55 = vpop.f32.mrf.mxu3  ;;  %7872 = vst.msk [vmem:[%s9098_s9 + $0x2d8] sm:$0x7f] %vm995_vm1, %v8197_v53  ;;  %8202 = vtanh.f32 %v2512_v54  ;;  %7274 = vmatmul.msk.f32.gmra.mxu0 %vm277_vm0, %v2059_v47  ;;  %7379 = vmatmul.msk.f32.gmra.mxu1 %vm277_vm0, %v2059_v47 }
 0x162   : > { %8204 = vtanh.f32 %v3436_v55  ;;  %v2067_v55 = vld [vmem:[%s11307_s1 + $0x178] sm:$0xff] }
 0x165   : > { %v8199_v57 = vpop.eup %8198  ;;  %7585 = vmatmul.msk.f32.gmra.mxu2 %vm277_vm0, %v2060_v56  ;;  %7790 = vmatmul.msk.f32.gmra.mxu3 %vm277_vm0, %v2060_v56 }
 0x166   : > { %v8201_v58 = vpop.eup %8200  ;;  %1019 = vst.msk [vmem:[%s9098_s9 + $0x2e0] sm:$0x7f] %vm995_vm1, %v8199_v57  ;;  %v667_v59 = vpop.f32.mrf.mxu0 }
 0x167   : > { %v1591_v60 = vpop.f32.mrf.mxu1  ;;  %v8203_v61 = vpop.eup %8202  ;;  %7463 = vst.msk [vmem:[%s9098_s9 + $0x2e8] sm:$0x7f] %vm995_vm1, %v8201_v58  ;;  %8206 = vtanh.f32 %v667_v59 }
 0x168   : > { %v8205_v62 = vpop.eup %8204  ;;  %7668 = vst.msk [vmem:[%s9098_s9 + $0x2f0] sm:$0x7f] %vm995_vm1, %v8203_v61  ;;  %8208 = vtanh.f32 %v1591_v60  ;;  %v2515_v63 = vpop.f32.mrf.mxu2 }
 0x169   : > { %v3439_v0 = vpop.f32.mrf.mxu3  ;;  %7873 = vst.msk [vmem:[%s9098_s9 + $0x2f8] sm:$0x7f] %vm995_vm1, %v8205_v62  ;;  %8210 = vtanh.f32 %v2515_v63  ;;  %7275 = vmatmul.msk.f32.gmra.mxu0 %vm277_vm0, %v2060_v56  ;;  %7380 = vmatmul.msk.f32.gmra.mxu1 %vm277_vm0, %v2060_v56 }
 0x16a   : > { %8212 = vtanh.f32 %v3439_v0  ;;  %v2068_v0 = vld [vmem:[%s11307_s1 + $0x180] sm:$0xff] }
 0x16d   : > { %v8207_v2 = vpop.eup %8206  ;;  %7586 = vmatmul.msk.f32.gmra.mxu2 %vm277_vm0, %v2061_v1  ;;  %7791 = vmatmul.msk.f32.gmra.mxu3 %vm277_vm0, %v2061_v1 }
 0x16e   : > { %v8209_v3 = vpop.eup %8208  ;;  %1020 = vst.msk [vmem:[%s9098_s9 + $0x300] sm:$0x7f] %vm995_vm1, %v8207_v2  ;;  %v670_v4 = vpop.f32.mrf.mxu0 }
 0x16f   : > { %v1594_v5 = vpop.f32.mrf.mxu1  ;;  %v8211_v6 = vpop.eup %8210  ;;  %7464 = vst.msk [vmem:[%s9098_s9 + $0x308] sm:$0x7f] %vm995_vm1, %v8209_v3  ;;  %8214 = vtanh.f32 %v670_v4 }
 0x170   : > { %v8213_v7 = vpop.eup %8212  ;;  %7669 = vst.msk [vmem:[%s9098_s9 + $0x310] sm:$0x7f] %vm995_vm1, %v8211_v6  ;;  %8216 = vtanh.f32 %v1594_v5  ;;  %v2518_v8 = vpop.f32.mrf.mxu2 }
 0x171   : > { %v3442_v9 = vpop.f32.mrf.mxu3  ;;  %7874 = vst.msk [vmem:[%s9098_s9 + $0x318] sm:$0x7f] %vm995_vm1, %v8213_v7  ;;  %8218 = vtanh.f32 %v2518_v8  ;;  %7276 = vmatmul.msk.f32.gmra.mxu0 %vm277_vm0, %v2061_v1  ;;  %7381 = vmatmul.msk.f32.gmra.mxu1 %vm277_vm0, %v2061_v1 }
 0x172   : > { %8220 = vtanh.f32 %v3442_v9  ;;  %v2069_v9 = vld [vmem:[%s11307_s1 + $0x188] sm:$0xff] }
 0x175   : > { %v8215_v11 = vpop.eup %8214  ;;  %7587 = vmatmul.msk.f32.gmra.mxu2 %vm277_vm0, %v2062_v10  ;;  %7792 = vmatmul.msk.f32.gmra.mxu3 %vm277_vm0, %v2062_v10 }
 0x176   : > { %v8217_v12 = vpop.eup %8216  ;;  %1021 = vst.msk [vmem:[%s9098_s9 + $0x320] sm:$0x7f] %vm995_vm1, %v8215_v11  ;;  %v673_v13 = vpop.f32.mrf.mxu0 }
 0x177   : > { %v1597_v14 = vpop.f32.mrf.mxu1  ;;  %v8219_v15 = vpop.eup %8218  ;;  %7465 = vst.msk [vmem:[%s9098_s9 + $0x328] sm:$0x7f] %vm995_vm1, %v8217_v12  ;;  %8222 = vtanh.f32 %v673_v13 }
 0x178   : > { %v8221_v16 = vpop.eup %8220  ;;  %7670 = vst.msk [vmem:[%s9098_s9 + $0x330] sm:$0x7f] %vm995_vm1, %v8219_v15  ;;  %8224 = vtanh.f32 %v1597_v14  ;;  %v2521_v17 = vpop.f32.mrf.mxu2 }
 0x179   : > { %v3445_v18 = vpop.f32.mrf.mxu3  ;;  %7875 = vst.msk [vmem:[%s9098_s9 + $0x338] sm:$0x7f] %vm995_vm1, %v8221_v16  ;;  %8226 = vtanh.f32 %v2521_v17  ;;  %7277 = vmatmul.msk.f32.gmra.mxu0 %vm277_vm0, %v2062_v10  ;;  %7382 = vmatmul.msk.f32.gmra.mxu1 %vm277_vm0, %v2062_v10 }
 0x17a   : > { %8228 = vtanh.f32 %v3445_v18  ;;  %v2070_v18 = vld [vmem:[%s11307_s1 + $0x190] sm:$0xff] }
 0x17d   : > { %v8223_v20 = vpop.eup %8222  ;;  %7588 = vmatmul.msk.f32.gmra.mxu2 %vm277_vm0, %v2063_v19  ;;  %7793 = vmatmul.msk.f32.gmra.mxu3 %vm277_vm0, %v2063_v19 }
 0x17e   : > { %v8225_v21 = vpop.eup %8224  ;;  %1022 = vst.msk [vmem:[%s9098_s9 + $0x340] sm:$0x7f] %vm995_vm1, %v8223_v20  ;;  %v676_v22 = vpop.f32.mrf.mxu0 }
 0x17f   : > { %v1600_v23 = vpop.f32.mrf.mxu1  ;;  %v8227_v24 = vpop.eup %8226  ;;  %7466 = vst.msk [vmem:[%s9098_s9 + $0x348] sm:$0x7f] %vm995_vm1, %v8225_v21  ;;  %8230 = vtanh.f32 %v676_v22 }
 0x180   : > { %v8229_v25 = vpop.eup %8228  ;;  %7671 = vst.msk [vmem:[%s9098_s9 + $0x350] sm:$0x7f] %vm995_vm1, %v8227_v24  ;;  %8232 = vtanh.f32 %v1600_v23  ;;  %v2524_v26 = vpop.f32.mrf.mxu2 }
 0x181   : > { %v3448_v27 = vpop.f32.mrf.mxu3  ;;  %7876 = vst.msk [vmem:[%s9098_s9 + $0x358] sm:$0x7f] %vm995_vm1, %v8229_v25  ;;  %8234 = vtanh.f32 %v2524_v26  ;;  %7278 = vmatmul.msk.f32.gmra.mxu0 %vm277_vm0, %v2063_v19  ;;  %7383 = vmatmul.msk.f32.gmra.mxu1 %vm277_vm0, %v2063_v19 }
 0x182   : > { %8236 = vtanh.f32 %v3448_v27  ;;  %v2071_v27 = vld [vmem:[%s11307_s1 + $0x198] sm:$0xff] }
 0x185   : > { %v8231_v29 = vpop.eup %8230  ;;  %7589 = vmatmul.msk.f32.gmra.mxu2 %vm277_vm0, %v2064_v28  ;;  %7794 = vmatmul.msk.f32.gmra.mxu3 %vm277_vm0, %v2064_v28 }
 0x186   : > { %v8233_v30 = vpop.eup %8232  ;;  %1023 = vst.msk [vmem:[%s9098_s9 + $0x360] sm:$0x7f] %vm995_vm1, %v8231_v29  ;;  %v679_v31 = vpop.f32.mrf.mxu0 }
 0x187   : > { %v1603_v32 = vpop.f32.mrf.mxu1  ;;  %v8235_v33 = vpop.eup %8234  ;;  %7467 = vst.msk [vmem:[%s9098_s9 + $0x368] sm:$0x7f] %vm995_vm1, %v8233_v30  ;;  %8238 = vtanh.f32 %v679_v31 }
 0x188   : > { %v8237_v34 = vpop.eup %8236  ;;  %7672 = vst.msk [vmem:[%s9098_s9 + $0x370] sm:$0x7f] %vm995_vm1, %v8235_v33  ;;  %8240 = vtanh.f32 %v1603_v32  ;;  %v2527_v35 = vpop.f32.mrf.mxu2 }
 0x189   : > { %v3451_v36 = vpop.f32.mrf.mxu3  ;;  %7877 = vst.msk [vmem:[%s9098_s9 + $0x378] sm:$0x7f] %vm995_vm1, %v8237_v34  ;;  %8242 = vtanh.f32 %v2527_v35  ;;  %7279 = vmatmul.msk.f32.gmra.mxu0 %vm277_vm0, %v2064_v28  ;;  %7384 = vmatmul.msk.f32.gmra.mxu1 %vm277_vm0, %v2064_v28 }
 0x18a   : > { %8244 = vtanh.f32 %v3451_v36  ;;  %v2072_v36 = vld [vmem:[%s11307_s1 + $0x1a0] sm:$0xff] }
 0x18d   : > { %v8239_v38 = vpop.eup %8238  ;;  %7590 = vmatmul.msk.f32.gmra.mxu2 %vm277_vm0, %v2065_v37  ;;  %7795 = vmatmul.msk.f32.gmra.mxu3 %vm277_vm0, %v2065_v37 }
 0x18e   : > { %v8241_v39 = vpop.eup %8240  ;;  %1024 = vst.msk [vmem:[%s9098_s9 + $0x380] sm:$0x7f] %vm995_vm1, %v8239_v38  ;;  %v682_v40 = vpop.f32.mrf.mxu0 }
 0x18f   : > { %v1606_v41 = vpop.f32.mrf.mxu1  ;;  %v8243_v42 = vpop.eup %8242  ;;  %7468 = vst.msk [vmem:[%s9098_s9 + $0x388] sm:$0x7f] %vm995_vm1, %v8241_v39  ;;  %8246 = vtanh.f32 %v682_v40 }
 0x190   : > { %v8245_v43 = vpop.eup %8244  ;;  %7673 = vst.msk [vmem:[%s9098_s9 + $0x390] sm:$0x7f] %vm995_vm1, %v8243_v42  ;;  %8248 = vtanh.f32 %v1606_v41  ;;  %v2530_v44 = vpop.f32.mrf.mxu2 }
 0x191   : > { %v3454_v45 = vpop.f32.mrf.mxu3  ;;  %7878 = vst.msk [vmem:[%s9098_s9 + $0x398] sm:$0x7f] %vm995_vm1, %v8245_v43  ;;  %8250 = vtanh.f32 %v2530_v44  ;;  %7280 = vmatmul.msk.f32.gmra.mxu0 %vm277_vm0, %v2065_v37  ;;  %7385 = vmatmul.msk.f32.gmra.mxu1 %vm277_vm0, %v2065_v37 }
 0x192   : > { %8252 = vtanh.f32 %v3454_v45  ;;  %v2073_v45 = vld [vmem:[%s11307_s1 + $0x1a8] sm:$0xff] }
 0x195   : > { %v8247_v47 = vpop.eup %8246  ;;  %7591 = vmatmul.msk.f32.gmra.mxu2 %vm277_vm0, %v2066_v46  ;;  %7796 = vmatmul.msk.f32.gmra.mxu3 %vm277_vm0, %v2066_v46 }
 0x196   : > { %v8249_v48 = vpop.eup %8248  ;;  %1025 = vst.msk [vmem:[%s9098_s9 + $0x3a0] sm:$0x7f] %vm995_vm1, %v8247_v47  ;;  %v685_v49 = vpop.f32.mrf.mxu0 }
 0x197   : > { %v1609_v50 = vpop.f32.mrf.mxu1  ;;  %v8251_v51 = vpop.eup %8250  ;;  %7469 = vst.msk [vmem:[%s9098_s9 + $0x3a8] sm:$0x7f] %vm995_vm1, %v8249_v48  ;;  %8254 = vtanh.f32 %v685_v49 }
 0x198   : > { %v8253_v52 = vpop.eup %8252  ;;  %7674 = vst.msk [vmem:[%s9098_s9 + $0x3b0] sm:$0x7f] %vm995_vm1, %v8251_v51  ;;  %8256 = vtanh.f32 %v1609_v50  ;;  %v2533_v53 = vpop.f32.mrf.mxu2 }
 0x199   : > { %v3457_v54 = vpop.f32.mrf.mxu3  ;;  %7879 = vst.msk [vmem:[%s9098_s9 + $0x3b8] sm:$0x7f] %vm995_vm1, %v8253_v52  ;;  %8258 = vtanh.f32 %v2533_v53  ;;  %7281 = vmatmul.msk.f32.gmra.mxu0 %vm277_vm0, %v2066_v46  ;;  %7386 = vmatmul.msk.f32.gmra.mxu1 %vm277_vm0, %v2066_v46 }
 0x19a   : > { %8260 = vtanh.f32 %v3457_v54  ;;  %v2074_v54 = vld [vmem:[%s11307_s1 + $0x1b0] sm:$0xff] }
 0x19d   : > { %v8255_v56 = vpop.eup %8254  ;;  %7592 = vmatmul.msk.f32.gmra.mxu2 %vm277_vm0, %v2067_v55  ;;  %7797 = vmatmul.msk.f32.gmra.mxu3 %vm277_vm0, %v2067_v55 }
 0x19e   : > { %v8257_v57 = vpop.eup %8256  ;;  %1026 = vst.msk [vmem:[%s9098_s9 + $0x3c0] sm:$0x7f] %vm995_vm1, %v8255_v56  ;;  %v688_v58 = vpop.f32.mrf.mxu0 }
 0x19f   : > { %v1612_v59 = vpop.f32.mrf.mxu1  ;;  %v8259_v60 = vpop.eup %8258  ;;  %7470 = vst.msk [vmem:[%s9098_s9 + $0x3c8] sm:$0x7f] %vm995_vm1, %v8257_v57  ;;  %8262 = vtanh.f32 %v688_v58 }
 0x1a0   : > { %v8261_v61 = vpop.eup %8260  ;;  %7675 = vst.msk [vmem:[%s9098_s9 + $0x3d0] sm:$0x7f] %vm995_vm1, %v8259_v60  ;;  %8264 = vtanh.f32 %v1612_v59  ;;  %v2536_v62 = vpop.f32.mrf.mxu2 }
 0x1a1   : > { %v3460_v63 = vpop.f32.mrf.mxu3  ;;  %7880 = vst.msk [vmem:[%s9098_s9 + $0x3d8] sm:$0x7f] %vm995_vm1, %v8261_v61  ;;  %8266 = vtanh.f32 %v2536_v62  ;;  %7282 = vmatmul.msk.f32.gmra.mxu0 %vm277_vm0, %v2067_v55  ;;  %7387 = vmatmul.msk.f32.gmra.mxu1 %vm277_vm0, %v2067_v55 }
 0x1a2   : > { %8268 = vtanh.f32 %v3460_v63  ;;  %v2075_v63 = vld [vmem:[%s11307_s1 + $0x1b8] sm:$0xff] }
 0x1a5   : > { %v8263_v1 = vpop.eup %8262  ;;  %7593 = vmatmul.msk.f32.gmra.mxu2 %vm277_vm0, %v2068_v0  ;;  %7798 = vmatmul.msk.f32.gmra.mxu3 %vm277_vm0, %v2068_v0 }
 0x1a6   : > { %v8265_v2 = vpop.eup %8264  ;;  %1027 = vst.msk [vmem:[%s9098_s9 + $0x3e0] sm:$0x7f] %vm995_vm1, %v8263_v1  ;;  %v691_v3 = vpop.f32.mrf.mxu0 }
 0x1a7   : > { %v1615_v4 = vpop.f32.mrf.mxu1  ;;  %v8267_v5 = vpop.eup %8266  ;;  %7471 = vst.msk [vmem:[%s9098_s9 + $0x3e8] sm:$0x7f] %vm995_vm1, %v8265_v2  ;;  %8270 = vtanh.f32 %v691_v3 }
 0x1a8   : > { %v8269_v6 = vpop.eup %8268  ;;  %7676 = vst.msk [vmem:[%s9098_s9 + $0x3f0] sm:$0x7f] %vm995_vm1, %v8267_v5  ;;  %8272 = vtanh.f32 %v1615_v4  ;;  %v2539_v7 = vpop.f32.mrf.mxu2 }
 0x1a9   : > { %v3463_v8 = vpop.f32.mrf.mxu3  ;;  %7881 = vst.msk [vmem:[%s9098_s9 + $0x3f8] sm:$0x7f] %vm995_vm1, %v8269_v6  ;;  %8274 = vtanh.f32 %v2539_v7  ;;  %7283 = vmatmul.msk.f32.gmra.mxu0 %vm277_vm0, %v2068_v0  ;;  %7388 = vmatmul.msk.f32.gmra.mxu1 %vm277_vm0, %v2068_v0 }
 0x1aa   : > { %8276 = vtanh.f32 %v3463_v8  ;;  %v2076_v8 = vld [vmem:[%s11307_s1 + $0x1c0] sm:$0xff] }
 0x1ad   : > { %v8271_v10 = vpop.eup %8270  ;;  %7594 = vmatmul.msk.f32.gmra.mxu2 %vm277_vm0, %v2069_v9  ;;  %7799 = vmatmul.msk.f32.gmra.mxu3 %vm277_vm0, %v2069_v9 }
 0x1ae   : > { %v8273_v11 = vpop.eup %8272  ;;  %1028 = vst.msk [vmem:[%s9098_s9 + $0x400] sm:$0x7f] %vm995_vm1, %v8271_v10  ;;  %v694_v12 = vpop.f32.mrf.mxu0 }
 0x1af   : > { %v1618_v13 = vpop.f32.mrf.mxu1  ;;  %v8275_v14 = vpop.eup %8274  ;;  %7472 = vst.msk [vmem:[%s9098_s9 + $0x408] sm:$0x7f] %vm995_vm1, %v8273_v11  ;;  %8278 = vtanh.f32 %v694_v12 }
 0x1b0   : > { %v8277_v15 = vpop.eup %8276  ;;  %7677 = vst.msk [vmem:[%s9098_s9 + $0x410] sm:$0x7f] %vm995_vm1, %v8275_v14  ;;  %8280 = vtanh.f32 %v1618_v13  ;;  %v2542_v16 = vpop.f32.mrf.mxu2 }
 0x1b1   : > { %v3466_v17 = vpop.f32.mrf.mxu3  ;;  %7882 = vst.msk [vmem:[%s9098_s9 + $0x418] sm:$0x7f] %vm995_vm1, %v8277_v15  ;;  %8282 = vtanh.f32 %v2542_v16  ;;  %7284 = vmatmul.msk.f32.gmra.mxu0 %vm277_vm0, %v2069_v9  ;;  %7389 = vmatmul.msk.f32.gmra.mxu1 %vm277_vm0, %v2069_v9 }
 0x1b2   : > { %8284 = vtanh.f32 %v3466_v17  ;;  %v2077_v17 = vld [vmem:[%s11307_s1 + $0x1c8] sm:$0xff] }
 0x1b5   : > { %v8279_v19 = vpop.eup %8278  ;;  %7595 = vmatmul.msk.f32.gmra.mxu2 %vm277_vm0, %v2070_v18  ;;  %7800 = vmatmul.msk.f32.gmra.mxu3 %vm277_vm0, %v2070_v18 }
 0x1b6   : > { %v8281_v20 = vpop.eup %8280  ;;  %1029 = vst.msk [vmem:[%s9098_s9 + $0x420] sm:$0x7f] %vm995_vm1, %v8279_v19  ;;  %v697_v21 = vpop.f32.mrf.mxu0 }
 0x1b7   : > { %v1621_v22 = vpop.f32.mrf.mxu1  ;;  %v8283_v23 = vpop.eup %8282  ;;  %7473 = vst.msk [vmem:[%s9098_s9 + $0x428] sm:$0x7f] %vm995_vm1, %v8281_v20  ;;  %8286 = vtanh.f32 %v697_v21 }
 0x1b8   : > { %v8285_v24 = vpop.eup %8284  ;;  %7678 = vst.msk [vmem:[%s9098_s9 + $0x430] sm:$0x7f] %vm995_vm1, %v8283_v23  ;;  %8288 = vtanh.f32 %v1621_v22  ;;  %v2545_v25 = vpop.f32.mrf.mxu2 }
 0x1b9   : > { %v3469_v26 = vpop.f32.mrf.mxu3  ;;  %7883 = vst.msk [vmem:[%s9098_s9 + $0x438] sm:$0x7f] %vm995_vm1, %v8285_v24  ;;  %8290 = vtanh.f32 %v2545_v25  ;;  %7285 = vmatmul.msk.f32.gmra.mxu0 %vm277_vm0, %v2070_v18  ;;  %7390 = vmatmul.msk.f32.gmra.mxu1 %vm277_vm0, %v2070_v18 }
 0x1ba   : > { %8292 = vtanh.f32 %v3469_v26  ;;  %v2078_v26 = vld [vmem:[%s11307_s1 + $0x1d0] sm:$0xff] }
 0x1bd   : > { %v8287_v28 = vpop.eup %8286  ;;  %7596 = vmatmul.msk.f32.gmra.mxu2 %vm277_vm0, %v2071_v27  ;;  %7801 = vmatmul.msk.f32.gmra.mxu3 %vm277_vm0, %v2071_v27 }
 0x1be   : > { %v8289_v29 = vpop.eup %8288  ;;  %1030 = vst.msk [vmem:[%s9098_s9 + $0x440] sm:$0x7f] %vm995_vm1, %v8287_v28  ;;  %v700_v30 = vpop.f32.mrf.mxu0 }
 0x1bf   : > { %v1624_v31 = vpop.f32.mrf.mxu1  ;;  %v8291_v32 = vpop.eup %8290  ;;  %7474 = vst.msk [vmem:[%s9098_s9 + $0x448] sm:$0x7f] %vm995_vm1, %v8289_v29  ;;  %8294 = vtanh.f32 %v700_v30 }
 0x1c0   : > { %v8293_v33 = vpop.eup %8292  ;;  %7679 = vst.msk [vmem:[%s9098_s9 + $0x450] sm:$0x7f] %vm995_vm1, %v8291_v32  ;;  %8296 = vtanh.f32 %v1624_v31  ;;  %v2548_v34 = vpop.f32.mrf.mxu2 }
 0x1c1   : > { %v3472_v35 = vpop.f32.mrf.mxu3  ;;  %7884 = vst.msk [vmem:[%s9098_s9 + $0x458] sm:$0x7f] %vm995_vm1, %v8293_v33  ;;  %8298 = vtanh.f32 %v2548_v34  ;;  %7286 = vmatmul.msk.f32.gmra.mxu0 %vm277_vm0, %v2071_v27  ;;  %7391 = vmatmul.msk.f32.gmra.mxu1 %vm277_vm0, %v2071_v27 }
 0x1c2   : > { %8300 = vtanh.f32 %v3472_v35  ;;  %v2079_v35 = vld [vmem:[%s11307_s1 + $0x1d8] sm:$0xff] }
 0x1c5   : > { %v8295_v37 = vpop.eup %8294  ;;  %7597 = vmatmul.msk.f32.gmra.mxu2 %vm277_vm0, %v2072_v36  ;;  %7802 = vmatmul.msk.f32.gmra.mxu3 %vm277_vm0, %v2072_v36 }
 0x1c6   : > { %v8297_v38 = vpop.eup %8296  ;;  %1031 = vst.msk [vmem:[%s9098_s9 + $0x460] sm:$0x7f] %vm995_vm1, %v8295_v37  ;;  %v703_v39 = vpop.f32.mrf.mxu0 }
 0x1c7   : > { %v1627_v40 = vpop.f32.mrf.mxu1  ;;  %v8299_v41 = vpop.eup %8298  ;;  %7475 = vst.msk [vmem:[%s9098_s9 + $0x468] sm:$0x7f] %vm995_vm1, %v8297_v38  ;;  %8302 = vtanh.f32 %v703_v39 }
 0x1c8   : > { %v8301_v42 = vpop.eup %8300  ;;  %7680 = vst.msk [vmem:[%s9098_s9 + $0x470] sm:$0x7f] %vm995_vm1, %v8299_v41  ;;  %8304 = vtanh.f32 %v1627_v40  ;;  %v2551_v43 = vpop.f32.mrf.mxu2 }
 0x1c9   : > { %v3475_v44 = vpop.f32.mrf.mxu3  ;;  %7885 = vst.msk [vmem:[%s9098_s9 + $0x478] sm:$0x7f] %vm995_vm1, %v8301_v42  ;;  %8306 = vtanh.f32 %v2551_v43  ;;  %7287 = vmatmul.msk.f32.gmra.mxu0 %vm277_vm0, %v2072_v36  ;;  %7392 = vmatmul.msk.f32.gmra.mxu1 %vm277_vm0, %v2072_v36 }
 0x1ca   : > { %8308 = vtanh.f32 %v3475_v44  ;;  %v2080_v44 = vld [vmem:[%s11307_s1 + $0x1e0] sm:$0xff] }
 0x1cd   : > { %v8303_v46 = vpop.eup %8302  ;;  %7598 = vmatmul.msk.f32.gmra.mxu2 %vm277_vm0, %v2073_v45  ;;  %7803 = vmatmul.msk.f32.gmra.mxu3 %vm277_vm0, %v2073_v45 }
 0x1ce   : > { %v8305_v47 = vpop.eup %8304  ;;  %1032 = vst.msk [vmem:[%s9098_s9 + $0x480] sm:$0x7f] %vm995_vm1, %v8303_v46  ;;  %v706_v48 = vpop.f32.mrf.mxu0 }
 0x1cf   : > { %v1630_v49 = vpop.f32.mrf.mxu1  ;;  %v8307_v50 = vpop.eup %8306  ;;  %7476 = vst.msk [vmem:[%s9098_s9 + $0x488] sm:$0x7f] %vm995_vm1, %v8305_v47  ;;  %8310 = vtanh.f32 %v706_v48 }
 0x1d0   : > { %v8309_v51 = vpop.eup %8308  ;;  %7681 = vst.msk [vmem:[%s9098_s9 + $0x490] sm:$0x7f] %vm995_vm1, %v8307_v50  ;;  %8312 = vtanh.f32 %v1630_v49  ;;  %v2554_v52 = vpop.f32.mrf.mxu2 }
 0x1d1   : > { %v3478_v53 = vpop.f32.mrf.mxu3  ;;  %7886 = vst.msk [vmem:[%s9098_s9 + $0x498] sm:$0x7f] %vm995_vm1, %v8309_v51  ;;  %8314 = vtanh.f32 %v2554_v52  ;;  %7288 = vmatmul.msk.f32.gmra.mxu0 %vm277_vm0, %v2073_v45  ;;  %7393 = vmatmul.msk.f32.gmra.mxu1 %vm277_vm0, %v2073_v45 }
 0x1d2   : > { %8316 = vtanh.f32 %v3478_v53  ;;  %v2081_v53 = vld [vmem:[%s11307_s1 + $0x1e8] sm:$0xff] }
 0x1d5   : > { %v8311_v55 = vpop.eup %8310  ;;  %7599 = vmatmul.msk.f32.gmra.mxu2 %vm277_vm0, %v2074_v54  ;;  %7804 = vmatmul.msk.f32.gmra.mxu3 %vm277_vm0, %v2074_v54 }
 0x1d6   : > { %v8313_v56 = vpop.eup %8312  ;;  %1033 = vst.msk [vmem:[%s9098_s9 + $0x4a0] sm:$0x7f] %vm995_vm1, %v8311_v55  ;;  %v709_v57 = vpop.f32.mrf.mxu0 }
 0x1d7   : > { %v1633_v58 = vpop.f32.mrf.mxu1  ;;  %v8315_v59 = vpop.eup %8314  ;;  %7477 = vst.msk [vmem:[%s9098_s9 + $0x4a8] sm:$0x7f] %vm995_vm1, %v8313_v56  ;;  %8318 = vtanh.f32 %v709_v57 }
 0x1d8   : > { %v8317_v60 = vpop.eup %8316  ;;  %7682 = vst.msk [vmem:[%s9098_s9 + $0x4b0] sm:$0x7f] %vm995_vm1, %v8315_v59  ;;  %8320 = vtanh.f32 %v1633_v58  ;;  %v2557_v61 = vpop.f32.mrf.mxu2 }
 0x1d9   : > { %v3481_v62 = vpop.f32.mrf.mxu3  ;;  %7887 = vst.msk [vmem:[%s9098_s9 + $0x4b8] sm:$0x7f] %vm995_vm1, %v8317_v60  ;;  %8322 = vtanh.f32 %v2557_v61  ;;  %7289 = vmatmul.msk.f32.gmra.mxu0 %vm277_vm0, %v2074_v54  ;;  %7394 = vmatmul.msk.f32.gmra.mxu1 %vm277_vm0, %v2074_v54 }
 0x1da   : > { %8324 = vtanh.f32 %v3481_v62  ;;  %v2082_v62 = vld [vmem:[%s11307_s1 + $0x1f0] sm:$0xff] }
 0x1dd   : > { %v8319_v0 = vpop.eup %8318  ;;  %7600 = vmatmul.msk.f32.gmra.mxu2 %vm277_vm0, %v2075_v63  ;;  %7805 = vmatmul.msk.f32.gmra.mxu3 %vm277_vm0, %v2075_v63 }
 0x1de   : > { %v8321_v1 = vpop.eup %8320  ;;  %1034 = vst.msk [vmem:[%s9098_s9 + $0x4c0] sm:$0x7f] %vm995_vm1, %v8319_v0  ;;  %v712_v2 = vpop.f32.mrf.mxu0 }
 0x1df   : > { %v1636_v3 = vpop.f32.mrf.mxu1  ;;  %v8323_v4 = vpop.eup %8322  ;;  %7478 = vst.msk [vmem:[%s9098_s9 + $0x4c8] sm:$0x7f] %vm995_vm1, %v8321_v1  ;;  %8326 = vtanh.f32 %v712_v2 }
 0x1e0   : > { %v8325_v5 = vpop.eup %8324  ;;  %7683 = vst.msk [vmem:[%s9098_s9 + $0x4d0] sm:$0x7f] %vm995_vm1, %v8323_v4  ;;  %8328 = vtanh.f32 %v1636_v3  ;;  %v2560_v6 = vpop.f32.mrf.mxu2 }
 0x1e1   : > { %v3484_v7 = vpop.f32.mrf.mxu3  ;;  %7888 = vst.msk [vmem:[%s9098_s9 + $0x4d8] sm:$0x7f] %vm995_vm1, %v8325_v5  ;;  %8330 = vtanh.f32 %v2560_v6  ;;  %7290 = vmatmul.msk.f32.gmra.mxu0 %vm277_vm0, %v2075_v63  ;;  %7395 = vmatmul.msk.f32.gmra.mxu1 %vm277_vm0, %v2075_v63 }
 0x1e2   : > { %8332 = vtanh.f32 %v3484_v7  ;;  %v2083_v7 = vld [vmem:[%s11307_s1 + $0x1f8] sm:$0xff] }
 0x1e5   : > { %v8327_v9 = vpop.eup %8326  ;;  %7601 = vmatmul.msk.f32.gmra.mxu2 %vm277_vm0, %v2076_v8  ;;  %7806 = vmatmul.msk.f32.gmra.mxu3 %vm277_vm0, %v2076_v8 }
 0x1e6   : > { %v8329_v10 = vpop.eup %8328  ;;  %1035 = vst.msk [vmem:[%s9098_s9 + $0x4e0] sm:$0x7f] %vm995_vm1, %v8327_v9  ;;  %v715_v11 = vpop.f32.mrf.mxu0 }
 0x1e7   : > { %v1639_v12 = vpop.f32.mrf.mxu1  ;;  %v8331_v13 = vpop.eup %8330  ;;  %7479 = vst.msk [vmem:[%s9098_s9 + $0x4e8] sm:$0x7f] %vm995_vm1, %v8329_v10  ;;  %8334 = vtanh.f32 %v715_v11 }
 0x1e8   : > { %v8333_v14 = vpop.eup %8332  ;;  %7684 = vst.msk [vmem:[%s9098_s9 + $0x4f0] sm:$0x7f] %vm995_vm1, %v8331_v13  ;;  %8336 = vtanh.f32 %v1639_v12  ;;  %v2563_v15 = vpop.f32.mrf.mxu2 }
 0x1e9   : > { %v3487_v16 = vpop.f32.mrf.mxu3  ;;  %7889 = vst.msk [vmem:[%s9098_s9 + $0x4f8] sm:$0x7f] %vm995_vm1, %v8333_v14  ;;  %8338 = vtanh.f32 %v2563_v15  ;;  %7291 = vmatmul.msk.f32.gmra.mxu0 %vm277_vm0, %v2076_v8  ;;  %7396 = vmatmul.msk.f32.gmra.mxu1 %vm277_vm0, %v2076_v8 }
 0x1ea   : > { %8340 = vtanh.f32 %v3487_v16  ;;  %v2084_v16 = vld [vmem:[%s11307_s1 + $0x200] sm:$0xff] }
 0x1ed   : > { %v8335_v18 = vpop.eup %8334  ;;  %7602 = vmatmul.msk.f32.gmra.mxu2 %vm277_vm0, %v2077_v17  ;;  %7807 = vmatmul.msk.f32.gmra.mxu3 %vm277_vm0, %v2077_v17 }
 0x1ee   : > { %v8337_v19 = vpop.eup %8336  ;;  %1036 = vst.msk [vmem:[%s9098_s9 + $0x500] sm:$0x7f] %vm995_vm1, %v8335_v18  ;;  %v718_v20 = vpop.f32.mrf.mxu0 }
 0x1ef   : > { %v1642_v21 = vpop.f32.mrf.mxu1  ;;  %v8339_v22 = vpop.eup %8338  ;;  %7480 = vst.msk [vmem:[%s9098_s9 + $0x508] sm:$0x7f] %vm995_vm1, %v8337_v19  ;;  %8342 = vtanh.f32 %v718_v20 }
 0x1f0   : > { %v8341_v23 = vpop.eup %8340  ;;  %7685 = vst.msk [vmem:[%s9098_s9 + $0x510] sm:$0x7f] %vm995_vm1, %v8339_v22  ;;  %8344 = vtanh.f32 %v1642_v21  ;;  %v2566_v24 = vpop.f32.mrf.mxu2 }
 0x1f1   : > { %v3490_v25 = vpop.f32.mrf.mxu3  ;;  %7890 = vst.msk [vmem:[%s9098_s9 + $0x518] sm:$0x7f] %vm995_vm1, %v8341_v23  ;;  %8346 = vtanh.f32 %v2566_v24  ;;  %7292 = vmatmul.msk.f32.gmra.mxu0 %vm277_vm0, %v2077_v17  ;;  %7397 = vmatmul.msk.f32.gmra.mxu1 %vm277_vm0, %v2077_v17 }
 0x1f2   : > { %8348 = vtanh.f32 %v3490_v25  ;;  %v2085_v25 = vld [vmem:[%s11307_s1 + $0x208] sm:$0xff] }
 0x1f5   : > { %v8343_v27 = vpop.eup %8342  ;;  %7603 = vmatmul.msk.f32.gmra.mxu2 %vm277_vm0, %v2078_v26  ;;  %7808 = vmatmul.msk.f32.gmra.mxu3 %vm277_vm0, %v2078_v26 }
 0x1f6   : > { %v8345_v28 = vpop.eup %8344  ;;  %1037 = vst.msk [vmem:[%s9098_s9 + $0x520] sm:$0x7f] %vm995_vm1, %v8343_v27  ;;  %v721_v29 = vpop.f32.mrf.mxu0 }
 0x1f7   : > { %v1645_v30 = vpop.f32.mrf.mxu1  ;;  %v8347_v31 = vpop.eup %8346  ;;  %7481 = vst.msk [vmem:[%s9098_s9 + $0x528] sm:$0x7f] %vm995_vm1, %v8345_v28  ;;  %8350 = vtanh.f32 %v721_v29 }
 0x1f8   : > { %v8349_v32 = vpop.eup %8348  ;;  %7686 = vst.msk [vmem:[%s9098_s9 + $0x530] sm:$0x7f] %vm995_vm1, %v8347_v31  ;;  %8352 = vtanh.f32 %v1645_v30  ;;  %v2569_v33 = vpop.f32.mrf.mxu2 }
 0x1f9   : > { %v3493_v34 = vpop.f32.mrf.mxu3  ;;  %7891 = vst.msk [vmem:[%s9098_s9 + $0x538] sm:$0x7f] %vm995_vm1, %v8349_v32  ;;  %8354 = vtanh.f32 %v2569_v33  ;;  %7293 = vmatmul.msk.f32.gmra.mxu0 %vm277_vm0, %v2078_v26  ;;  %7398 = vmatmul.msk.f32.gmra.mxu1 %vm277_vm0, %v2078_v26 }
 0x1fa   : > { %8356 = vtanh.f32 %v3493_v34  ;;  %v2086_v34 = vld [vmem:[%s11307_s1 + $0x210] sm:$0xff] }
 0x1fd   : > { %v8351_v36 = vpop.eup %8350  ;;  %7604 = vmatmul.msk.f32.gmra.mxu2 %vm277_vm0, %v2079_v35  ;;  %7809 = vmatmul.msk.f32.gmra.mxu3 %vm277_vm0, %v2079_v35 }
 0x1fe   : > { %v8353_v37 = vpop.eup %8352  ;;  %1038 = vst.msk [vmem:[%s9098_s9 + $0x540] sm:$0x7f] %vm995_vm1, %v8351_v36  ;;  %v724_v38 = vpop.f32.mrf.mxu0 }
 0x1ff   : > { %v1648_v39 = vpop.f32.mrf.mxu1  ;;  %v8355_v40 = vpop.eup %8354  ;;  %7482 = vst.msk [vmem:[%s9098_s9 + $0x548] sm:$0x7f] %vm995_vm1, %v8353_v37  ;;  %8358 = vtanh.f32 %v724_v38 }
 0x200   : > { %v8357_v41 = vpop.eup %8356  ;;  %7687 = vst.msk [vmem:[%s9098_s9 + $0x550] sm:$0x7f] %vm995_vm1, %v8355_v40  ;;  %8360 = vtanh.f32 %v1648_v39  ;;  %v2572_v42 = vpop.f32.mrf.mxu2 }
 0x201   : > { %v3496_v43 = vpop.f32.mrf.mxu3  ;;  %7892 = vst.msk [vmem:[%s9098_s9 + $0x558] sm:$0x7f] %vm995_vm1, %v8357_v41  ;;  %8362 = vtanh.f32 %v2572_v42  ;;  %7294 = vmatmul.msk.f32.gmra.mxu0 %vm277_vm0, %v2079_v35  ;;  %7399 = vmatmul.msk.f32.gmra.mxu1 %vm277_vm0, %v2079_v35 }
 0x202   : > { %8364 = vtanh.f32 %v3496_v43  ;;  %v2087_v43 = vld [vmem:[%s11307_s1 + $0x218] sm:$0xff] }
 0x205   : > { %v8359_v45 = vpop.eup %8358  ;;  %7605 = vmatmul.msk.f32.gmra.mxu2 %vm277_vm0, %v2080_v44  ;;  %7810 = vmatmul.msk.f32.gmra.mxu3 %vm277_vm0, %v2080_v44 }
 0x206   : > { %v8361_v46 = vpop.eup %8360  ;;  %1039 = vst.msk [vmem:[%s9098_s9 + $0x560] sm:$0x7f] %vm995_vm1, %v8359_v45  ;;  %v727_v47 = vpop.f32.mrf.mxu0 }
 0x207   : > { %v1651_v48 = vpop.f32.mrf.mxu1  ;;  %v8363_v49 = vpop.eup %8362  ;;  %7483 = vst.msk [vmem:[%s9098_s9 + $0x568] sm:$0x7f] %vm995_vm1, %v8361_v46  ;;  %8366 = vtanh.f32 %v727_v47 }
 0x208   : > { %v8365_v50 = vpop.eup %8364  ;;  %7688 = vst.msk [vmem:[%s9098_s9 + $0x570] sm:$0x7f] %vm995_vm1, %v8363_v49  ;;  %8368 = vtanh.f32 %v1651_v48  ;;  %v2575_v51 = vpop.f32.mrf.mxu2 }
 0x209   : > { %v3499_v52 = vpop.f32.mrf.mxu3  ;;  %7893 = vst.msk [vmem:[%s9098_s9 + $0x578] sm:$0x7f] %vm995_vm1, %v8365_v50  ;;  %8370 = vtanh.f32 %v2575_v51  ;;  %7295 = vmatmul.msk.f32.gmra.mxu0 %vm277_vm0, %v2080_v44  ;;  %7400 = vmatmul.msk.f32.gmra.mxu1 %vm277_vm0, %v2080_v44 }
 0x20a   : > { %8372 = vtanh.f32 %v3499_v52  ;;  %v2088_v52 = vld [vmem:[%s11307_s1 + $0x220] sm:$0xff] }
 0x20d   : > { %v8367_v54 = vpop.eup %8366  ;;  %7606 = vmatmul.msk.f32.gmra.mxu2 %vm277_vm0, %v2081_v53  ;;  %7811 = vmatmul.msk.f32.gmra.mxu3 %vm277_vm0, %v2081_v53 }
 0x20e   : > { %v8369_v55 = vpop.eup %8368  ;;  %1040 = vst.msk [vmem:[%s9098_s9 + $0x580] sm:$0x7f] %vm995_vm1, %v8367_v54  ;;  %v730_v56 = vpop.f32.mrf.mxu0 }
 0x20f   : > { %v1654_v57 = vpop.f32.mrf.mxu1  ;;  %v8371_v58 = vpop.eup %8370  ;;  %7484 = vst.msk [vmem:[%s9098_s9 + $0x588] sm:$0x7f] %vm995_vm1, %v8369_v55  ;;  %8374 = vtanh.f32 %v730_v56 }
 0x210   : > { %v8373_v59 = vpop.eup %8372  ;;  %7689 = vst.msk [vmem:[%s9098_s9 + $0x590] sm:$0x7f] %vm995_vm1, %v8371_v58  ;;  %8376 = vtanh.f32 %v1654_v57  ;;  %v2578_v60 = vpop.f32.mrf.mxu2 }
 0x211   : > { %v3502_v61 = vpop.f32.mrf.mxu3  ;;  %7894 = vst.msk [vmem:[%s9098_s9 + $0x598] sm:$0x7f] %vm995_vm1, %v8373_v59  ;;  %8378 = vtanh.f32 %v2578_v60  ;;  %7296 = vmatmul.msk.f32.gmra.mxu0 %vm277_vm0, %v2081_v53  ;;  %7401 = vmatmul.msk.f32.gmra.mxu1 %vm277_vm0, %v2081_v53 }
 0x212   : > { %8380 = vtanh.f32 %v3502_v61  ;;  %v2089_v61 = vld [vmem:[%s11307_s1 + $0x228] sm:$0xff] }
 0x215   : > { %v8375_v63 = vpop.eup %8374  ;;  %7607 = vmatmul.msk.f32.gmra.mxu2 %vm277_vm0, %v2082_v62  ;;  %7812 = vmatmul.msk.f32.gmra.mxu3 %vm277_vm0, %v2082_v62 }
 0x216   : > { %v8377_v0 = vpop.eup %8376  ;;  %1041 = vst.msk [vmem:[%s9098_s9 + $0x5a0] sm:$0x7f] %vm995_vm1, %v8375_v63  ;;  %v733_v1 = vpop.f32.mrf.mxu0 }
 0x217   : > { %v1657_v2 = vpop.f32.mrf.mxu1  ;;  %v8379_v3 = vpop.eup %8378  ;;  %7485 = vst.msk [vmem:[%s9098_s9 + $0x5a8] sm:$0x7f] %vm995_vm1, %v8377_v0  ;;  %8382 = vtanh.f32 %v733_v1 }
 0x218   : > { %v8381_v4 = vpop.eup %8380  ;;  %7690 = vst.msk [vmem:[%s9098_s9 + $0x5b0] sm:$0x7f] %vm995_vm1, %v8379_v3  ;;  %8384 = vtanh.f32 %v1657_v2  ;;  %v2581_v5 = vpop.f32.mrf.mxu2 }
 0x219   : > { %v3505_v6 = vpop.f32.mrf.mxu3  ;;  %7895 = vst.msk [vmem:[%s9098_s9 + $0x5b8] sm:$0x7f] %vm995_vm1, %v8381_v4  ;;  %8386 = vtanh.f32 %v2581_v5  ;;  %7297 = vmatmul.msk.f32.gmra.mxu0 %vm277_vm0, %v2082_v62  ;;  %7402 = vmatmul.msk.f32.gmra.mxu1 %vm277_vm0, %v2082_v62 }
 0x21a   : > { %8388 = vtanh.f32 %v3505_v6  ;;  %v2090_v6 = vld [vmem:[%s11307_s1 + $0x230] sm:$0xff] }
 0x21d   : > { %v8383_v8 = vpop.eup %8382  ;;  %7608 = vmatmul.msk.f32.gmra.mxu2 %vm277_vm0, %v2083_v7  ;;  %7813 = vmatmul.msk.f32.gmra.mxu3 %vm277_vm0, %v2083_v7 }
 0x21e   : > { %v8385_v9 = vpop.eup %8384  ;;  %1042 = vst.msk [vmem:[%s9098_s9 + $0x5c0] sm:$0x7f] %vm995_vm1, %v8383_v8  ;;  %v736_v10 = vpop.f32.mrf.mxu0 }
 0x21f   : > { %v1660_v11 = vpop.f32.mrf.mxu1  ;;  %v8387_v12 = vpop.eup %8386  ;;  %7486 = vst.msk [vmem:[%s9098_s9 + $0x5c8] sm:$0x7f] %vm995_vm1, %v8385_v9  ;;  %8390 = vtanh.f32 %v736_v10 }
 0x220   : > { %v8389_v13 = vpop.eup %8388  ;;  %7691 = vst.msk [vmem:[%s9098_s9 + $0x5d0] sm:$0x7f] %vm995_vm1, %v8387_v12  ;;  %8392 = vtanh.f32 %v1660_v11  ;;  %v2584_v14 = vpop.f32.mrf.mxu2 }
 0x221   : > { %v3508_v15 = vpop.f32.mrf.mxu3  ;;  %7896 = vst.msk [vmem:[%s9098_s9 + $0x5d8] sm:$0x7f] %vm995_vm1, %v8389_v13  ;;  %8394 = vtanh.f32 %v2584_v14  ;;  %7298 = vmatmul.msk.f32.gmra.mxu0 %vm277_vm0, %v2083_v7  ;;  %7403 = vmatmul.msk.f32.gmra.mxu1 %vm277_vm0, %v2083_v7 }
 0x222   : > { %8396 = vtanh.f32 %v3508_v15  ;;  %v2091_v15 = vld [vmem:[%s11307_s1 + $0x238] sm:$0xff] }
 0x225   : > { %v8391_v17 = vpop.eup %8390  ;;  %7609 = vmatmul.msk.f32.gmra.mxu2 %vm277_vm0, %v2084_v16  ;;  %7814 = vmatmul.msk.f32.gmra.mxu3 %vm277_vm0, %v2084_v16 }
 0x226   : > { %v8393_v18 = vpop.eup %8392  ;;  %1043 = vst.msk [vmem:[%s9098_s9 + $0x5e0] sm:$0x7f] %vm995_vm1, %v8391_v17  ;;  %v739_v19 = vpop.f32.mrf.mxu0 }
 0x227   : > { %v1663_v20 = vpop.f32.mrf.mxu1  ;;  %v8395_v21 = vpop.eup %8394  ;;  %7487 = vst.msk [vmem:[%s9098_s9 + $0x5e8] sm:$0x7f] %vm995_vm1, %v8393_v18  ;;  %8398 = vtanh.f32 %v739_v19 }
 0x228   : > { %v8397_v22 = vpop.eup %8396  ;;  %7692 = vst.msk [vmem:[%s9098_s9 + $0x5f0] sm:$0x7f] %vm995_vm1, %v8395_v21  ;;  %8400 = vtanh.f32 %v1663_v20  ;;  %v2587_v23 = vpop.f32.mrf.mxu2 }
 0x229   : > { %v3511_v24 = vpop.f32.mrf.mxu3  ;;  %7897 = vst.msk [vmem:[%s9098_s9 + $0x5f8] sm:$0x7f] %vm995_vm1, %v8397_v22  ;;  %8402 = vtanh.f32 %v2587_v23  ;;  %7299 = vmatmul.msk.f32.gmra.mxu0 %vm277_vm0, %v2084_v16  ;;  %7404 = vmatmul.msk.f32.gmra.mxu1 %vm277_vm0, %v2084_v16 }
 0x22a   : > { %8404 = vtanh.f32 %v3511_v24  ;;  %v2092_v24 = vld [vmem:[%s11307_s1 + $0x240] sm:$0xff] }
 0x22d   : > { %v8399_v26 = vpop.eup %8398  ;;  %7610 = vmatmul.msk.f32.gmra.mxu2 %vm277_vm0, %v2085_v25  ;;  %7815 = vmatmul.msk.f32.gmra.mxu3 %vm277_vm0, %v2085_v25 }
 0x22e   : > { %v8401_v27 = vpop.eup %8400  ;;  %1044 = vst.msk [vmem:[%s9098_s9 + $0x600] sm:$0x7f] %vm995_vm1, %v8399_v26  ;;  %v742_v28 = vpop.f32.mrf.mxu0 }
 0x22f   : > { %v1666_v29 = vpop.f32.mrf.mxu1  ;;  %v8403_v30 = vpop.eup %8402  ;;  %7488 = vst.msk [vmem:[%s9098_s9 + $0x608] sm:$0x7f] %vm995_vm1, %v8401_v27  ;;  %8406 = vtanh.f32 %v742_v28 }
 0x230   : > { %v8405_v31 = vpop.eup %8404  ;;  %7693 = vst.msk [vmem:[%s9098_s9 + $0x610] sm:$0x7f] %vm995_vm1, %v8403_v30  ;;  %8408 = vtanh.f32 %v1666_v29  ;;  %v2590_v32 = vpop.f32.mrf.mxu2 }
 0x231   : > { %v3514_v33 = vpop.f32.mrf.mxu3  ;;  %7898 = vst.msk [vmem:[%s9098_s9 + $0x618] sm:$0x7f] %vm995_vm1, %v8405_v31  ;;  %8410 = vtanh.f32 %v2590_v32  ;;  %7300 = vmatmul.msk.f32.gmra.mxu0 %vm277_vm0, %v2085_v25  ;;  %7405 = vmatmul.msk.f32.gmra.mxu1 %vm277_vm0, %v2085_v25 }
 0x232   : > { %8412 = vtanh.f32 %v3514_v33  ;;  %v2093_v33 = vld [vmem:[%s11307_s1 + $0x248] sm:$0xff] }
 0x235   : > { %v8407_v35 = vpop.eup %8406  ;;  %7611 = vmatmul.msk.f32.gmra.mxu2 %vm277_vm0, %v2086_v34  ;;  %7816 = vmatmul.msk.f32.gmra.mxu3 %vm277_vm0, %v2086_v34 }
 0x236   : > { %v8409_v36 = vpop.eup %8408  ;;  %1045 = vst.msk [vmem:[%s9098_s9 + $0x620] sm:$0x7f] %vm995_vm1, %v8407_v35  ;;  %v745_v37 = vpop.f32.mrf.mxu0 }
 0x237   : > { %v1669_v38 = vpop.f32.mrf.mxu1  ;;  %v8411_v39 = vpop.eup %8410  ;;  %7489 = vst.msk [vmem:[%s9098_s9 + $0x628] sm:$0x7f] %vm995_vm1, %v8409_v36  ;;  %8414 = vtanh.f32 %v745_v37 }
 0x238   : > { %v8413_v40 = vpop.eup %8412  ;;  %7694 = vst.msk [vmem:[%s9098_s9 + $0x630] sm:$0x7f] %vm995_vm1, %v8411_v39  ;;  %8416 = vtanh.f32 %v1669_v38  ;;  %v2593_v41 = vpop.f32.mrf.mxu2 }
 0x239   : > { %v3517_v42 = vpop.f32.mrf.mxu3  ;;  %7899 = vst.msk [vmem:[%s9098_s9 + $0x638] sm:$0x7f] %vm995_vm1, %v8413_v40  ;;  %8418 = vtanh.f32 %v2593_v41  ;;  %7301 = vmatmul.msk.f32.gmra.mxu0 %vm277_vm0, %v2086_v34  ;;  %7406 = vmatmul.msk.f32.gmra.mxu1 %vm277_vm0, %v2086_v34 }
 0x23a   : > { %8420 = vtanh.f32 %v3517_v42  ;;  %v2094_v42 = vld [vmem:[%s11307_s1 + $0x250] sm:$0xff] }
 0x23d   : > { %v8415_v44 = vpop.eup %8414  ;;  %7612 = vmatmul.msk.f32.gmra.mxu2 %vm277_vm0, %v2087_v43  ;;  %7817 = vmatmul.msk.f32.gmra.mxu3 %vm277_vm0, %v2087_v43 }
 0x23e   : > { %v8417_v45 = vpop.eup %8416  ;;  %1046 = vst.msk [vmem:[%s9098_s9 + $0x640] sm:$0x7f] %vm995_vm1, %v8415_v44  ;;  %v748_v46 = vpop.f32.mrf.mxu0 }
 0x23f   : > { %v1672_v47 = vpop.f32.mrf.mxu1  ;;  %v8419_v48 = vpop.eup %8418  ;;  %7490 = vst.msk [vmem:[%s9098_s9 + $0x648] sm:$0x7f] %vm995_vm1, %v8417_v45  ;;  %8422 = vtanh.f32 %v748_v46 }
 0x240   : > { %v8421_v49 = vpop.eup %8420  ;;  %7695 = vst.msk [vmem:[%s9098_s9 + $0x650] sm:$0x7f] %vm995_vm1, %v8419_v48  ;;  %8424 = vtanh.f32 %v1672_v47  ;;  %v2596_v50 = vpop.f32.mrf.mxu2 }
 0x241   : > { %v3520_v51 = vpop.f32.mrf.mxu3  ;;  %7900 = vst.msk [vmem:[%s9098_s9 + $0x658] sm:$0x7f] %vm995_vm1, %v8421_v49  ;;  %8426 = vtanh.f32 %v2596_v50  ;;  %7302 = vmatmul.msk.f32.gmra.mxu0 %vm277_vm0, %v2087_v43  ;;  %7407 = vmatmul.msk.f32.gmra.mxu1 %vm277_vm0, %v2087_v43 }
 0x242   : > { %8428 = vtanh.f32 %v3520_v51  ;;  %v2095_v51 = vld [vmem:[%s11307_s1 + $0x258] sm:$0xff] }
 0x245   : > { %v8423_v53 = vpop.eup %8422  ;;  %7613 = vmatmul.msk.f32.gmra.mxu2 %vm277_vm0, %v2088_v52  ;;  %7818 = vmatmul.msk.f32.gmra.mxu3 %vm277_vm0, %v2088_v52 }
 0x246   : > { %v8425_v54 = vpop.eup %8424  ;;  %1047 = vst.msk [vmem:[%s9098_s9 + $0x660] sm:$0x7f] %vm995_vm1, %v8423_v53  ;;  %v751_v55 = vpop.f32.mrf.mxu0 }
 0x247   : > { %v1675_v56 = vpop.f32.mrf.mxu1  ;;  %v8427_v57 = vpop.eup %8426  ;;  %7491 = vst.msk [vmem:[%s9098_s9 + $0x668] sm:$0x7f] %vm995_vm1, %v8425_v54  ;;  %8430 = vtanh.f32 %v751_v55 }
 0x248   : > { %v8429_v58 = vpop.eup %8428  ;;  %7696 = vst.msk [vmem:[%s9098_s9 + $0x670] sm:$0x7f] %vm995_vm1, %v8427_v57  ;;  %8432 = vtanh.f32 %v1675_v56  ;;  %v2599_v59 = vpop.f32.mrf.mxu2 }
 0x249   : > { %v3523_v60 = vpop.f32.mrf.mxu3  ;;  %7901 = vst.msk [vmem:[%s9098_s9 + $0x678] sm:$0x7f] %vm995_vm1, %v8429_v58  ;;  %8434 = vtanh.f32 %v2599_v59  ;;  %7303 = vmatmul.msk.f32.gmra.mxu0 %vm277_vm0, %v2088_v52  ;;  %7408 = vmatmul.msk.f32.gmra.mxu1 %vm277_vm0, %v2088_v52 }
 0x24a   : > { %8436 = vtanh.f32 %v3523_v60  ;;  %v2096_v60 = vld [vmem:[%s11307_s1 + $0x260] sm:$0xff] }
 0x24d   : > { %v8431_v62 = vpop.eup %8430  ;;  %7614 = vmatmul.msk.f32.gmra.mxu2 %vm277_vm0, %v2089_v61  ;;  %7819 = vmatmul.msk.f32.gmra.mxu3 %vm277_vm0, %v2089_v61 }
 0x24e   : > { %v8433_v63 = vpop.eup %8432  ;;  %1048 = vst.msk [vmem:[%s9098_s9 + $0x680] sm:$0x7f] %vm995_vm1, %v8431_v62  ;;  %v754_v0 = vpop.f32.mrf.mxu0 }
 0x24f   : > { %v1678_v1 = vpop.f32.mrf.mxu1  ;;  %v8435_v2 = vpop.eup %8434  ;;  %7492 = vst.msk [vmem:[%s9098_s9 + $0x688] sm:$0x7f] %vm995_vm1, %v8433_v63  ;;  %8438 = vtanh.f32 %v754_v0 }
 0x250   : > { %v8437_v3 = vpop.eup %8436  ;;  %7697 = vst.msk [vmem:[%s9098_s9 + $0x690] sm:$0x7f] %vm995_vm1, %v8435_v2  ;;  %8440 = vtanh.f32 %v1678_v1  ;;  %v2602_v4 = vpop.f32.mrf.mxu2 }
 0x251   : > { %v3526_v5 = vpop.f32.mrf.mxu3  ;;  %7902 = vst.msk [vmem:[%s9098_s9 + $0x698] sm:$0x7f] %vm995_vm1, %v8437_v3  ;;  %8442 = vtanh.f32 %v2602_v4  ;;  %7304 = vmatmul.msk.f32.gmra.mxu0 %vm277_vm0, %v2089_v61  ;;  %7409 = vmatmul.msk.f32.gmra.mxu1 %vm277_vm0, %v2089_v61 }
 0x252   : > { %8444 = vtanh.f32 %v3526_v5  ;;  %v2097_v5 = vld [vmem:[%s11307_s1 + $0x268] sm:$0xff] }
 0x255   : > { %v8439_v7 = vpop.eup %8438  ;;  %7615 = vmatmul.msk.f32.gmra.mxu2 %vm277_vm0, %v2090_v6  ;;  %7820 = vmatmul.msk.f32.gmra.mxu3 %vm277_vm0, %v2090_v6 }
 0x256   : > { %v8441_v8 = vpop.eup %8440  ;;  %1049 = vst.msk [vmem:[%s9098_s9 + $0x6a0] sm:$0x7f] %vm995_vm1, %v8439_v7  ;;  %v757_v9 = vpop.f32.mrf.mxu0 }
 0x257   : > { %v1681_v10 = vpop.f32.mrf.mxu1  ;;  %v8443_v11 = vpop.eup %8442  ;;  %7493 = vst.msk [vmem:[%s9098_s9 + $0x6a8] sm:$0x7f] %vm995_vm1, %v8441_v8  ;;  %8446 = vtanh.f32 %v757_v9 }
 0x258   : > { %v8445_v12 = vpop.eup %8444  ;;  %7698 = vst.msk [vmem:[%s9098_s9 + $0x6b0] sm:$0x7f] %vm995_vm1, %v8443_v11  ;;  %8448 = vtanh.f32 %v1681_v10  ;;  %v2605_v13 = vpop.f32.mrf.mxu2 }
 0x259   : > { %v3529_v14 = vpop.f32.mrf.mxu3  ;;  %7903 = vst.msk [vmem:[%s9098_s9 + $0x6b8] sm:$0x7f] %vm995_vm1, %v8445_v12  ;;  %8450 = vtanh.f32 %v2605_v13  ;;  %7305 = vmatmul.msk.f32.gmra.mxu0 %vm277_vm0, %v2090_v6  ;;  %7410 = vmatmul.msk.f32.gmra.mxu1 %vm277_vm0, %v2090_v6 }
 0x25a   : > { %8452 = vtanh.f32 %v3529_v14  ;;  %v2098_v14 = vld [vmem:[%s11307_s1 + $0x270] sm:$0xff] }
 0x25d   : > { %v8447_v16 = vpop.eup %8446  ;;  %7616 = vmatmul.msk.f32.gmra.mxu2 %vm277_vm0, %v2091_v15  ;;  %7821 = vmatmul.msk.f32.gmra.mxu3 %vm277_vm0, %v2091_v15 }
 0x25e   : > { %v8449_v17 = vpop.eup %8448  ;;  %1050 = vst.msk [vmem:[%s9098_s9 + $0x6c0] sm:$0x7f] %vm995_vm1, %v8447_v16  ;;  %v760_v18 = vpop.f32.mrf.mxu0 }
 0x25f   : > { %v1684_v19 = vpop.f32.mrf.mxu1  ;;  %v8451_v20 = vpop.eup %8450  ;;  %7494 = vst.msk [vmem:[%s9098_s9 + $0x6c8] sm:$0x7f] %vm995_vm1, %v8449_v17  ;;  %8454 = vtanh.f32 %v760_v18 }
 0x260   : > { %v8453_v21 = vpop.eup %8452  ;;  %7699 = vst.msk [vmem:[%s9098_s9 + $0x6d0] sm:$0x7f] %vm995_vm1, %v8451_v20  ;;  %8456 = vtanh.f32 %v1684_v19  ;;  %v2608_v22 = vpop.f32.mrf.mxu2 }
 0x261   : > { %v3532_v23 = vpop.f32.mrf.mxu3  ;;  %7904 = vst.msk [vmem:[%s9098_s9 + $0x6d8] sm:$0x7f] %vm995_vm1, %v8453_v21  ;;  %8458 = vtanh.f32 %v2608_v22  ;;  %7306 = vmatmul.msk.f32.gmra.mxu0 %vm277_vm0, %v2091_v15  ;;  %7411 = vmatmul.msk.f32.gmra.mxu1 %vm277_vm0, %v2091_v15 }
 0x262   : > { %8460 = vtanh.f32 %v3532_v23  ;;  %v2099_v23 = vld [vmem:[%s11307_s1 + $0x278] sm:$0xff] }
 0x265   : > { %v8455_v25 = vpop.eup %8454  ;;  %7617 = vmatmul.msk.f32.gmra.mxu2 %vm277_vm0, %v2092_v24  ;;  %7822 = vmatmul.msk.f32.gmra.mxu3 %vm277_vm0, %v2092_v24 }
 0x266   : > { %v8457_v26 = vpop.eup %8456  ;;  %1051 = vst.msk [vmem:[%s9098_s9 + $0x6e0] sm:$0x7f] %vm995_vm1, %v8455_v25  ;;  %v763_v27 = vpop.f32.mrf.mxu0 }
 0x267   : > { %v1687_v28 = vpop.f32.mrf.mxu1  ;;  %v8459_v29 = vpop.eup %8458  ;;  %7495 = vst.msk [vmem:[%s9098_s9 + $0x6e8] sm:$0x7f] %vm995_vm1, %v8457_v26  ;;  %8462 = vtanh.f32 %v763_v27 }
 0x268   : > { %v8461_v30 = vpop.eup %8460  ;;  %7700 = vst.msk [vmem:[%s9098_s9 + $0x6f0] sm:$0x7f] %vm995_vm1, %v8459_v29  ;;  %8464 = vtanh.f32 %v1687_v28  ;;  %v2611_v31 = vpop.f32.mrf.mxu2 }
 0x269   : > { %v3535_v32 = vpop.f32.mrf.mxu3  ;;  %7905 = vst.msk [vmem:[%s9098_s9 + $0x6f8] sm:$0x7f] %vm995_vm1, %v8461_v30  ;;  %8466 = vtanh.f32 %v2611_v31  ;;  %7307 = vmatmul.msk.f32.gmra.mxu0 %vm277_vm0, %v2092_v24  ;;  %7412 = vmatmul.msk.f32.gmra.mxu1 %vm277_vm0, %v2092_v24 }
 0x26a   : > { %8468 = vtanh.f32 %v3535_v32  ;;  %v2100_v32 = vld [vmem:[%s11307_s1 + $0x280] sm:$0xff] }
 0x26d   : > { %v8463_v34 = vpop.eup %8462  ;;  %7618 = vmatmul.msk.f32.gmra.mxu2 %vm277_vm0, %v2093_v33  ;;  %7823 = vmatmul.msk.f32.gmra.mxu3 %vm277_vm0, %v2093_v33 }
 0x26e   : > { %v8465_v35 = vpop.eup %8464  ;;  %1052 = vst.msk [vmem:[%s9098_s9 + $0x700] sm:$0x7f] %vm995_vm1, %v8463_v34  ;;  %v766_v36 = vpop.f32.mrf.mxu0 }
 0x26f   : > { %v1690_v37 = vpop.f32.mrf.mxu1  ;;  %v8467_v38 = vpop.eup %8466  ;;  %7496 = vst.msk [vmem:[%s9098_s9 + $0x708] sm:$0x7f] %vm995_vm1, %v8465_v35  ;;  %8470 = vtanh.f32 %v766_v36 }
 0x270   : > { %v8469_v39 = vpop.eup %8468  ;;  %7701 = vst.msk [vmem:[%s9098_s9 + $0x710] sm:$0x7f] %vm995_vm1, %v8467_v38  ;;  %8472 = vtanh.f32 %v1690_v37  ;;  %v2614_v40 = vpop.f32.mrf.mxu2 }
 0x271   : > { %v3538_v41 = vpop.f32.mrf.mxu3  ;;  %7906 = vst.msk [vmem:[%s9098_s9 + $0x718] sm:$0x7f] %vm995_vm1, %v8469_v39  ;;  %8474 = vtanh.f32 %v2614_v40  ;;  %7308 = vmatmul.msk.f32.gmra.mxu0 %vm277_vm0, %v2093_v33  ;;  %7413 = vmatmul.msk.f32.gmra.mxu1 %vm277_vm0, %v2093_v33 }
 0x272   : > { %8476 = vtanh.f32 %v3538_v41  ;;  %v2101_v41 = vld [vmem:[%s11307_s1 + $0x288] sm:$0xff] }
 0x275   : > { %v8471_v43 = vpop.eup %8470  ;;  %7619 = vmatmul.msk.f32.gmra.mxu2 %vm277_vm0, %v2094_v42  ;;  %7824 = vmatmul.msk.f32.gmra.mxu3 %vm277_vm0, %v2094_v42 }
 0x276   : > { %v8473_v44 = vpop.eup %8472  ;;  %1053 = vst.msk [vmem:[%s9098_s9 + $0x720] sm:$0x7f] %vm995_vm1, %v8471_v43  ;;  %v769_v45 = vpop.f32.mrf.mxu0 }
 0x277   : > { %v1693_v46 = vpop.f32.mrf.mxu1  ;;  %v8475_v47 = vpop.eup %8474  ;;  %7497 = vst.msk [vmem:[%s9098_s9 + $0x728] sm:$0x7f] %vm995_vm1, %v8473_v44  ;;  %8478 = vtanh.f32 %v769_v45 }
 0x278   : > { %v8477_v48 = vpop.eup %8476  ;;  %7702 = vst.msk [vmem:[%s9098_s9 + $0x730] sm:$0x7f] %vm995_vm1, %v8475_v47  ;;  %8480 = vtanh.f32 %v1693_v46  ;;  %v2617_v49 = vpop.f32.mrf.mxu2 }
 0x279   : > { %v3541_v50 = vpop.f32.mrf.mxu3  ;;  %7907 = vst.msk [vmem:[%s9098_s9 + $0x738] sm:$0x7f] %vm995_vm1, %v8477_v48  ;;  %8482 = vtanh.f32 %v2617_v49  ;;  %7309 = vmatmul.msk.f32.gmra.mxu0 %vm277_vm0, %v2094_v42  ;;  %7414 = vmatmul.msk.f32.gmra.mxu1 %vm277_vm0, %v2094_v42 }
 0x27a   : > { %8484 = vtanh.f32 %v3541_v50  ;;  %v2102_v50 = vld [vmem:[%s11307_s1 + $0x290] sm:$0xff] }
 0x27d   : > { %v8479_v52 = vpop.eup %8478  ;;  %7620 = vmatmul.msk.f32.gmra.mxu2 %vm277_vm0, %v2095_v51  ;;  %7825 = vmatmul.msk.f32.gmra.mxu3 %vm277_vm0, %v2095_v51 }
 0x27e   : > { %v8481_v53 = vpop.eup %8480  ;;  %1054 = vst.msk [vmem:[%s9098_s9 + $0x740] sm:$0x7f] %vm995_vm1, %v8479_v52  ;;  %v772_v54 = vpop.f32.mrf.mxu0 }
 0x27f   : > { %v1696_v55 = vpop.f32.mrf.mxu1  ;;  %v8483_v56 = vpop.eup %8482  ;;  %7498 = vst.msk [vmem:[%s9098_s9 + $0x748] sm:$0x7f] %vm995_vm1, %v8481_v53  ;;  %8486 = vtanh.f32 %v772_v54 }
 0x280   : > { %v8485_v57 = vpop.eup %8484  ;;  %7703 = vst.msk [vmem:[%s9098_s9 + $0x750] sm:$0x7f] %vm995_vm1, %v8483_v56  ;;  %8488 = vtanh.f32 %v1696_v55  ;;  %v2620_v58 = vpop.f32.mrf.mxu2 }
 0x281   : > { %v3544_v59 = vpop.f32.mrf.mxu3  ;;  %7908 = vst.msk [vmem:[%s9098_s9 + $0x758] sm:$0x7f] %vm995_vm1, %v8485_v57  ;;  %8490 = vtanh.f32 %v2620_v58  ;;  %7310 = vmatmul.msk.f32.gmra.mxu0 %vm277_vm0, %v2095_v51  ;;  %7415 = vmatmul.msk.f32.gmra.mxu1 %vm277_vm0, %v2095_v51 }
 0x282   : > { %8492 = vtanh.f32 %v3544_v59  ;;  %v2103_v59 = vld [vmem:[%s11307_s1 + $0x298] sm:$0xff] }
 0x285   : > { %v8487_v61 = vpop.eup %8486  ;;  %7621 = vmatmul.msk.f32.gmra.mxu2 %vm277_vm0, %v2096_v60  ;;  %7826 = vmatmul.msk.f32.gmra.mxu3 %vm277_vm0, %v2096_v60 }
 0x286   : > { %v8489_v62 = vpop.eup %8488  ;;  %1055 = vst.msk [vmem:[%s9098_s9 + $0x760] sm:$0x7f] %vm995_vm1, %v8487_v61  ;;  %v775_v63 = vpop.f32.mrf.mxu0 }
 0x287   : > { %v1699_v0 = vpop.f32.mrf.mxu1  ;;  %v8491_v1 = vpop.eup %8490  ;;  %7499 = vst.msk [vmem:[%s9098_s9 + $0x768] sm:$0x7f] %vm995_vm1, %v8489_v62  ;;  %8494 = vtanh.f32 %v775_v63 }
 0x288   : > { %v8493_v2 = vpop.eup %8492  ;;  %7704 = vst.msk [vmem:[%s9098_s9 + $0x770] sm:$0x7f] %vm995_vm1, %v8491_v1  ;;  %8496 = vtanh.f32 %v1699_v0  ;;  %v2623_v3 = vpop.f32.mrf.mxu2 }
 0x289   : > { %v3547_v4 = vpop.f32.mrf.mxu3  ;;  %7909 = vst.msk [vmem:[%s9098_s9 + $0x778] sm:$0x7f] %vm995_vm1, %v8493_v2  ;;  %8498 = vtanh.f32 %v2623_v3  ;;  %7311 = vmatmul.msk.f32.gmra.mxu0 %vm277_vm0, %v2096_v60  ;;  %7416 = vmatmul.msk.f32.gmra.mxu1 %vm277_vm0, %v2096_v60 }
 0x28a   : > { %8500 = vtanh.f32 %v3547_v4  ;;  %v2104_v4 = vld [vmem:[%s11307_s1 + $0x2a0] sm:$0xff] }
 0x28d   : > { %v8495_v6 = vpop.eup %8494  ;;  %7622 = vmatmul.msk.f32.gmra.mxu2 %vm277_vm0, %v2097_v5  ;;  %7827 = vmatmul.msk.f32.gmra.mxu3 %vm277_vm0, %v2097_v5 }
 0x28e   : > { %v8497_v7 = vpop.eup %8496  ;;  %1056 = vst.msk [vmem:[%s9098_s9 + $0x780] sm:$0x7f] %vm995_vm1, %v8495_v6  ;;  %v778_v8 = vpop.f32.mrf.mxu0 }
 0x28f   : > { %v1702_v9 = vpop.f32.mrf.mxu1  ;;  %v8499_v10 = vpop.eup %8498  ;;  %7500 = vst.msk [vmem:[%s9098_s9 + $0x788] sm:$0x7f] %vm995_vm1, %v8497_v7  ;;  %8502 = vtanh.f32 %v778_v8 }
 0x290   : > { %v8501_v11 = vpop.eup %8500  ;;  %7705 = vst.msk [vmem:[%s9098_s9 + $0x790] sm:$0x7f] %vm995_vm1, %v8499_v10  ;;  %8504 = vtanh.f32 %v1702_v9  ;;  %v2626_v12 = vpop.f32.mrf.mxu2 }
 0x291   : > { %v3550_v13 = vpop.f32.mrf.mxu3  ;;  %7910 = vst.msk [vmem:[%s9098_s9 + $0x798] sm:$0x7f] %vm995_vm1, %v8501_v11  ;;  %8506 = vtanh.f32 %v2626_v12  ;;  %7312 = vmatmul.msk.f32.gmra.mxu0 %vm277_vm0, %v2097_v5  ;;  %7417 = vmatmul.msk.f32.gmra.mxu1 %vm277_vm0, %v2097_v5 }
 0x292   : > { %8508 = vtanh.f32 %v3550_v13  ;;  %v2105_v13 = vld [vmem:[%s11307_s1 + $0x2a8] sm:$0xff] }
 0x295   : > { %v8503_v15 = vpop.eup %8502  ;;  %7623 = vmatmul.msk.f32.gmra.mxu2 %vm277_vm0, %v2098_v14  ;;  %7828 = vmatmul.msk.f32.gmra.mxu3 %vm277_vm0, %v2098_v14 }
 0x296   : > { %v8505_v16 = vpop.eup %8504  ;;  %1057 = vst.msk [vmem:[%s9098_s9 + $0x7a0] sm:$0x7f] %vm995_vm1, %v8503_v15  ;;  %v781_v17 = vpop.f32.mrf.mxu0 }
 0x297   : > { %v1705_v18 = vpop.f32.mrf.mxu1  ;;  %v8507_v19 = vpop.eup %8506  ;;  %7501 = vst.msk [vmem:[%s9098_s9 + $0x7a8] sm:$0x7f] %vm995_vm1, %v8505_v16  ;;  %8510 = vtanh.f32 %v781_v17 }
 0x298   : > { %v8509_v20 = vpop.eup %8508  ;;  %7706 = vst.msk [vmem:[%s9098_s9 + $0x7b0] sm:$0x7f] %vm995_vm1, %v8507_v19  ;;  %8512 = vtanh.f32 %v1705_v18  ;;  %v2629_v21 = vpop.f32.mrf.mxu2 }
 0x299   : > { %v3553_v22 = vpop.f32.mrf.mxu3  ;;  %7911 = vst.msk [vmem:[%s9098_s9 + $0x7b8] sm:$0x7f] %vm995_vm1, %v8509_v20  ;;  %8514 = vtanh.f32 %v2629_v21  ;;  %7313 = vmatmul.msk.f32.gmra.mxu0 %vm277_vm0, %v2098_v14  ;;  %7418 = vmatmul.msk.f32.gmra.mxu1 %vm277_vm0, %v2098_v14 }
 0x29a   : > { %8516 = vtanh.f32 %v3553_v22  ;;  %v2106_v22 = vld [vmem:[%s11307_s1 + $0x2b0] sm:$0xff] }
 0x29d   : > { %v8511_v24 = vpop.eup %8510  ;;  %7624 = vmatmul.msk.f32.gmra.mxu2 %vm277_vm0, %v2099_v23  ;;  %7829 = vmatmul.msk.f32.gmra.mxu3 %vm277_vm0, %v2099_v23 }
 0x29e   : > { %v8513_v25 = vpop.eup %8512  ;;  %1058 = vst.msk [vmem:[%s9098_s9 + $0x7c0] sm:$0x7f] %vm995_vm1, %v8511_v24  ;;  %v784_v26 = vpop.f32.mrf.mxu0 }
 0x29f   : > { %v1708_v27 = vpop.f32.mrf.mxu1  ;;  %v8515_v28 = vpop.eup %8514  ;;  %7502 = vst.msk [vmem:[%s9098_s9 + $0x7c8] sm:$0x7f] %vm995_vm1, %v8513_v25  ;;  %8518 = vtanh.f32 %v784_v26 }
 0x2a0   : > { %v8517_v29 = vpop.eup %8516  ;;  %7707 = vst.msk [vmem:[%s9098_s9 + $0x7d0] sm:$0x7f] %vm995_vm1, %v8515_v28  ;;  %8520 = vtanh.f32 %v1708_v27  ;;  %v2632_v30 = vpop.f32.mrf.mxu2 }
 0x2a1   : > { %v3556_v31 = vpop.f32.mrf.mxu3  ;;  %7912 = vst.msk [vmem:[%s9098_s9 + $0x7d8] sm:$0x7f] %vm995_vm1, %v8517_v29  ;;  %8522 = vtanh.f32 %v2632_v30  ;;  %7314 = vmatmul.msk.f32.gmra.mxu0 %vm277_vm0, %v2099_v23  ;;  %7419 = vmatmul.msk.f32.gmra.mxu1 %vm277_vm0, %v2099_v23 }
 0x2a2   : > { %8524 = vtanh.f32 %v3556_v31  ;;  %v2107_v31 = vld [vmem:[%s11307_s1 + $0x2b8] sm:$0xff] }
 0x2a5   : > { %v8519_v33 = vpop.eup %8518  ;;  %7625 = vmatmul.msk.f32.gmra.mxu2 %vm277_vm0, %v2100_v32  ;;  %7830 = vmatmul.msk.f32.gmra.mxu3 %vm277_vm0, %v2100_v32 }
 0x2a6   : > { %v8521_v34 = vpop.eup %8520  ;;  %1059 = vst.msk [vmem:[%s9098_s9 + $0x7e0] sm:$0x7f] %vm995_vm1, %v8519_v33  ;;  %v787_v35 = vpop.f32.mrf.mxu0 }
 0x2a7   : > { %v1711_v36 = vpop.f32.mrf.mxu1  ;;  %v8523_v37 = vpop.eup %8522  ;;  %7503 = vst.msk [vmem:[%s9098_s9 + $0x7e8] sm:$0x7f] %vm995_vm1, %v8521_v34  ;;  %8526 = vtanh.f32 %v787_v35 }
 0x2a8   : > { %v8525_v38 = vpop.eup %8524  ;;  %7708 = vst.msk [vmem:[%s9098_s9 + $0x7f0] sm:$0x7f] %vm995_vm1, %v8523_v37  ;;  %8528 = vtanh.f32 %v1711_v36  ;;  %v2635_v39 = vpop.f32.mrf.mxu2 }
 0x2a9   : > { %v3559_v40 = vpop.f32.mrf.mxu3  ;;  %7913 = vst.msk [vmem:[%s9098_s9 + $0x7f8] sm:$0x7f] %vm995_vm1, %v8525_v38  ;;  %8530 = vtanh.f32 %v2635_v39  ;;  %7315 = vmatmul.msk.f32.gmra.mxu0 %vm277_vm0, %v2100_v32  ;;  %7420 = vmatmul.msk.f32.gmra.mxu1 %vm277_vm0, %v2100_v32 }
 0x2aa   : > { %8532 = vtanh.f32 %v3559_v40  ;;  %v2108_v40 = vld [vmem:[%s11307_s1 + $0x2c0] sm:$0xff] }
 0x2ad   : > { %v8527_v42 = vpop.eup %8526  ;;  %7626 = vmatmul.msk.f32.gmra.mxu2 %vm277_vm0, %v2101_v41  ;;  %7831 = vmatmul.msk.f32.gmra.mxu3 %vm277_vm0, %v2101_v41 }
 0x2ae   : > { %v8529_v43 = vpop.eup %8528  ;;  %1060 = vst.msk [vmem:[%s9098_s9 + $0x800] sm:$0x7f] %vm995_vm1, %v8527_v42  ;;  %v790_v44 = vpop.f32.mrf.mxu0 }
 0x2af   : > { %v1714_v45 = vpop.f32.mrf.mxu1  ;;  %v8531_v46 = vpop.eup %8530  ;;  %7504 = vst.msk [vmem:[%s9098_s9 + $0x808] sm:$0x7f] %vm995_vm1, %v8529_v43  ;;  %8534 = vtanh.f32 %v790_v44 }
 0x2b0   : > { %v8533_v47 = vpop.eup %8532  ;;  %7709 = vst.msk [vmem:[%s9098_s9 + $0x810] sm:$0x7f] %vm995_vm1, %v8531_v46  ;;  %8536 = vtanh.f32 %v1714_v45  ;;  %v2638_v48 = vpop.f32.mrf.mxu2 }
 0x2b1   : > { %v3562_v49 = vpop.f32.mrf.mxu3  ;;  %7914 = vst.msk [vmem:[%s9098_s9 + $0x818] sm:$0x7f] %vm995_vm1, %v8533_v47  ;;  %8538 = vtanh.f32 %v2638_v48  ;;  %7316 = vmatmul.msk.f32.gmra.mxu0 %vm277_vm0, %v2101_v41  ;;  %7421 = vmatmul.msk.f32.gmra.mxu1 %vm277_vm0, %v2101_v41 }
 0x2b2   : > { %8540 = vtanh.f32 %v3562_v49  ;;  %v2109_v49 = vld [vmem:[%s11307_s1 + $0x2c8] sm:$0xff] }
 0x2b5   : > { %v8535_v51 = vpop.eup %8534  ;;  %7627 = vmatmul.msk.f32.gmra.mxu2 %vm277_vm0, %v2102_v50  ;;  %7832 = vmatmul.msk.f32.gmra.mxu3 %vm277_vm0, %v2102_v50 }
 0x2b6   : > { %v8537_v52 = vpop.eup %8536  ;;  %1061 = vst.msk [vmem:[%s9098_s9 + $0x820] sm:$0x7f] %vm995_vm1, %v8535_v51  ;;  %v793_v53 = vpop.f32.mrf.mxu0 }
 0x2b7   : > { %v1717_v54 = vpop.f32.mrf.mxu1  ;;  %v8539_v55 = vpop.eup %8538  ;;  %7505 = vst.msk [vmem:[%s9098_s9 + $0x828] sm:$0x7f] %vm995_vm1, %v8537_v52  ;;  %8542 = vtanh.f32 %v793_v53 }
 0x2b8   : > { %v8541_v56 = vpop.eup %8540  ;;  %7710 = vst.msk [vmem:[%s9098_s9 + $0x830] sm:$0x7f] %vm995_vm1, %v8539_v55  ;;  %8544 = vtanh.f32 %v1717_v54  ;;  %v2641_v57 = vpop.f32.mrf.mxu2 }
 0x2b9   : > { %v3565_v58 = vpop.f32.mrf.mxu3  ;;  %7915 = vst.msk [vmem:[%s9098_s9 + $0x838] sm:$0x7f] %vm995_vm1, %v8541_v56  ;;  %8546 = vtanh.f32 %v2641_v57  ;;  %7317 = vmatmul.msk.f32.gmra.mxu0 %vm277_vm0, %v2102_v50  ;;  %7422 = vmatmul.msk.f32.gmra.mxu1 %vm277_vm0, %v2102_v50 }
 0x2ba   : > { %8548 = vtanh.f32 %v3565_v58  ;;  %v2110_v58 = vld [vmem:[%s11307_s1 + $0x2d0] sm:$0xff] }
 0x2bd   : > { %v8543_v60 = vpop.eup %8542  ;;  %7628 = vmatmul.msk.f32.gmra.mxu2 %vm277_vm0, %v2103_v59  ;;  %7833 = vmatmul.msk.f32.gmra.mxu3 %vm277_vm0, %v2103_v59 }
 0x2be   : > { %v8545_v61 = vpop.eup %8544  ;;  %1062 = vst.msk [vmem:[%s9098_s9 + $0x840] sm:$0x7f] %vm995_vm1, %v8543_v60  ;;  %v796_v62 = vpop.f32.mrf.mxu0 }
 0x2bf   : > { %v1720_v63 = vpop.f32.mrf.mxu1  ;;  %v8547_v0 = vpop.eup %8546  ;;  %7506 = vst.msk [vmem:[%s9098_s9 + $0x848] sm:$0x7f] %vm995_vm1, %v8545_v61  ;;  %8550 = vtanh.f32 %v796_v62 }
 0x2c0   : > { %v8549_v1 = vpop.eup %8548  ;;  %7711 = vst.msk [vmem:[%s9098_s9 + $0x850] sm:$0x7f] %vm995_vm1, %v8547_v0  ;;  %8552 = vtanh.f32 %v1720_v63  ;;  %v2644_v2 = vpop.f32.mrf.mxu2 }
 0x2c1   : > { %v3568_v3 = vpop.f32.mrf.mxu3  ;;  %7916 = vst.msk [vmem:[%s9098_s9 + $0x858] sm:$0x7f] %vm995_vm1, %v8549_v1  ;;  %8554 = vtanh.f32 %v2644_v2  ;;  %7318 = vmatmul.msk.f32.gmra.mxu0 %vm277_vm0, %v2103_v59  ;;  %7423 = vmatmul.msk.f32.gmra.mxu1 %vm277_vm0, %v2103_v59 }
 0x2c2   : > { %8556 = vtanh.f32 %v3568_v3  ;;  %v2111_v3 = vld [vmem:[%s11307_s1 + $0x2d8] sm:$0xff] }
 0x2c5   : > { %v8551_v5 = vpop.eup %8550  ;;  %7629 = vmatmul.msk.f32.gmra.mxu2 %vm277_vm0, %v2104_v4  ;;  %7834 = vmatmul.msk.f32.gmra.mxu3 %vm277_vm0, %v2104_v4 }
 0x2c6   : > { %v8553_v6 = vpop.eup %8552  ;;  %1063 = vst.msk [vmem:[%s9098_s9 + $0x860] sm:$0x7f] %vm995_vm1, %v8551_v5  ;;  %v799_v7 = vpop.f32.mrf.mxu0 }
 0x2c7   : > { %v1723_v8 = vpop.f32.mrf.mxu1  ;;  %v8555_v9 = vpop.eup %8554  ;;  %7507 = vst.msk [vmem:[%s9098_s9 + $0x868] sm:$0x7f] %vm995_vm1, %v8553_v6  ;;  %8558 = vtanh.f32 %v799_v7 }
 0x2c8   : > { %v8557_v10 = vpop.eup %8556  ;;  %7712 = vst.msk [vmem:[%s9098_s9 + $0x870] sm:$0x7f] %vm995_vm1, %v8555_v9  ;;  %8560 = vtanh.f32 %v1723_v8  ;;  %v2647_v11 = vpop.f32.mrf.mxu2 }
 0x2c9   : > { %v3571_v12 = vpop.f32.mrf.mxu3  ;;  %7917 = vst.msk [vmem:[%s9098_s9 + $0x878] sm:$0x7f] %vm995_vm1, %v8557_v10  ;;  %8562 = vtanh.f32 %v2647_v11  ;;  %7319 = vmatmul.msk.f32.gmra.mxu0 %vm277_vm0, %v2104_v4  ;;  %7424 = vmatmul.msk.f32.gmra.mxu1 %vm277_vm0, %v2104_v4 }
 0x2ca   : > { %8564 = vtanh.f32 %v3571_v12  ;;  %v2112_v12 = vld [vmem:[%s11307_s1 + $0x2e0] sm:$0xff] }
 0x2cd   : > { %v8559_v14 = vpop.eup %8558  ;;  %7630 = vmatmul.msk.f32.gmra.mxu2 %vm277_vm0, %v2105_v13  ;;  %7835 = vmatmul.msk.f32.gmra.mxu3 %vm277_vm0, %v2105_v13 }
 0x2ce   : > { %v8561_v15 = vpop.eup %8560  ;;  %1064 = vst.msk [vmem:[%s9098_s9 + $0x880] sm:$0x7f] %vm995_vm1, %v8559_v14  ;;  %v802_v16 = vpop.f32.mrf.mxu0 }
 0x2cf   : > { %v1726_v17 = vpop.f32.mrf.mxu1  ;;  %v8563_v18 = vpop.eup %8562  ;;  %7508 = vst.msk [vmem:[%s9098_s9 + $0x888] sm:$0x7f] %vm995_vm1, %v8561_v15  ;;  %8566 = vtanh.f32 %v802_v16 }
 0x2d0   : > { %v8565_v19 = vpop.eup %8564  ;;  %7713 = vst.msk [vmem:[%s9098_s9 + $0x890] sm:$0x7f] %vm995_vm1, %v8563_v18  ;;  %8568 = vtanh.f32 %v1726_v17  ;;  %v2650_v20 = vpop.f32.mrf.mxu2 }
 0x2d1   : > { %v3574_v21 = vpop.f32.mrf.mxu3  ;;  %7918 = vst.msk [vmem:[%s9098_s9 + $0x898] sm:$0x7f] %vm995_vm1, %v8565_v19  ;;  %8570 = vtanh.f32 %v2650_v20  ;;  %7320 = vmatmul.msk.f32.gmra.mxu0 %vm277_vm0, %v2105_v13  ;;  %7425 = vmatmul.msk.f32.gmra.mxu1 %vm277_vm0, %v2105_v13 }
 0x2d2   : > { %8572 = vtanh.f32 %v3574_v21  ;;  %v2113_v21 = vld [vmem:[%s11307_s1 + $0x2e8] sm:$0xff] }
 0x2d5   : > { %v8567_v23 = vpop.eup %8566  ;;  %7631 = vmatmul.msk.f32.gmra.mxu2 %vm277_vm0, %v2106_v22  ;;  %7836 = vmatmul.msk.f32.gmra.mxu3 %vm277_vm0, %v2106_v22 }
 0x2d6   : > { %v8569_v24 = vpop.eup %8568  ;;  %1065 = vst.msk [vmem:[%s9098_s9 + $0x8a0] sm:$0x7f] %vm995_vm1, %v8567_v23  ;;  %v805_v25 = vpop.f32.mrf.mxu0 }
 0x2d7   : > { %v1729_v26 = vpop.f32.mrf.mxu1  ;;  %v8571_v27 = vpop.eup %8570  ;;  %7509 = vst.msk [vmem:[%s9098_s9 + $0x8a8] sm:$0x7f] %vm995_vm1, %v8569_v24  ;;  %8574 = vtanh.f32 %v805_v25 }
 0x2d8   : > { %v8573_v28 = vpop.eup %8572  ;;  %7714 = vst.msk [vmem:[%s9098_s9 + $0x8b0] sm:$0x7f] %vm995_vm1, %v8571_v27  ;;  %8576 = vtanh.f32 %v1729_v26  ;;  %v2653_v29 = vpop.f32.mrf.mxu2 }
 0x2d9   : > { %v3577_v30 = vpop.f32.mrf.mxu3  ;;  %7919 = vst.msk [vmem:[%s9098_s9 + $0x8b8] sm:$0x7f] %vm995_vm1, %v8573_v28  ;;  %8578 = vtanh.f32 %v2653_v29  ;;  %7321 = vmatmul.msk.f32.gmra.mxu0 %vm277_vm0, %v2106_v22  ;;  %7426 = vmatmul.msk.f32.gmra.mxu1 %vm277_vm0, %v2106_v22 }
 0x2da   : > { %8580 = vtanh.f32 %v3577_v30  ;;  %v2114_v30 = vld [vmem:[%s11307_s1 + $0x2f0] sm:$0xff] }
 0x2dd   : > { %v8575_v32 = vpop.eup %8574  ;;  %7632 = vmatmul.msk.f32.gmra.mxu2 %vm277_vm0, %v2107_v31  ;;  %7837 = vmatmul.msk.f32.gmra.mxu3 %vm277_vm0, %v2107_v31 }
 0x2de   : > { %v8577_v33 = vpop.eup %8576  ;;  %1066 = vst.msk [vmem:[%s9098_s9 + $0x8c0] sm:$0x7f] %vm995_vm1, %v8575_v32  ;;  %v808_v34 = vpop.f32.mrf.mxu0 }
 0x2df   : > { %v1732_v35 = vpop.f32.mrf.mxu1  ;;  %v8579_v36 = vpop.eup %8578  ;;  %7510 = vst.msk [vmem:[%s9098_s9 + $0x8c8] sm:$0x7f] %vm995_vm1, %v8577_v33  ;;  %8582 = vtanh.f32 %v808_v34 }
 0x2e0   : > { %v8581_v37 = vpop.eup %8580  ;;  %7715 = vst.msk [vmem:[%s9098_s9 + $0x8d0] sm:$0x7f] %vm995_vm1, %v8579_v36  ;;  %8584 = vtanh.f32 %v1732_v35  ;;  %v2656_v38 = vpop.f32.mrf.mxu2 }
 0x2e1   : > { %v3580_v39 = vpop.f32.mrf.mxu3  ;;  %7920 = vst.msk [vmem:[%s9098_s9 + $0x8d8] sm:$0x7f] %vm995_vm1, %v8581_v37  ;;  %8586 = vtanh.f32 %v2656_v38  ;;  %7322 = vmatmul.msk.f32.gmra.mxu0 %vm277_vm0, %v2107_v31  ;;  %7427 = vmatmul.msk.f32.gmra.mxu1 %vm277_vm0, %v2107_v31 }
 0x2e2   : > { %8588 = vtanh.f32 %v3580_v39  ;;  %v2115_v39 = vld [vmem:[%s11307_s1 + $0x2f8] sm:$0xff] }
 0x2e5   : > { %v8583_v41 = vpop.eup %8582  ;;  %7633 = vmatmul.msk.f32.gmra.mxu2 %vm277_vm0, %v2108_v40  ;;  %7838 = vmatmul.msk.f32.gmra.mxu3 %vm277_vm0, %v2108_v40 }
 0x2e6   : > { %v8585_v42 = vpop.eup %8584  ;;  %1067 = vst.msk [vmem:[%s9098_s9 + $0x8e0] sm:$0x7f] %vm995_vm1, %v8583_v41  ;;  %v811_v43 = vpop.f32.mrf.mxu0 }
 0x2e7   : > { %v1735_v44 = vpop.f32.mrf.mxu1  ;;  %v8587_v45 = vpop.eup %8586  ;;  %7511 = vst.msk [vmem:[%s9098_s9 + $0x8e8] sm:$0x7f] %vm995_vm1, %v8585_v42  ;;  %8590 = vtanh.f32 %v811_v43 }
 0x2e8   : > { %v8589_v46 = vpop.eup %8588  ;;  %7716 = vst.msk [vmem:[%s9098_s9 + $0x8f0] sm:$0x7f] %vm995_vm1, %v8587_v45  ;;  %8592 = vtanh.f32 %v1735_v44  ;;  %v2659_v47 = vpop.f32.mrf.mxu2 }
 0x2e9   : > { %v3583_v48 = vpop.f32.mrf.mxu3  ;;  %7921 = vst.msk [vmem:[%s9098_s9 + $0x8f8] sm:$0x7f] %vm995_vm1, %v8589_v46  ;;  %8594 = vtanh.f32 %v2659_v47  ;;  %7323 = vmatmul.msk.f32.gmra.mxu0 %vm277_vm0, %v2108_v40  ;;  %7428 = vmatmul.msk.f32.gmra.mxu1 %vm277_vm0, %v2108_v40 }
 0x2ea   : > { %8596 = vtanh.f32 %v3583_v48  ;;  %v2116_v48 = vld [vmem:[%s11307_s1 + $0x300] sm:$0xff] }
 0x2ed   : > { %v8591_v50 = vpop.eup %8590  ;;  %7634 = vmatmul.msk.f32.gmra.mxu2 %vm277_vm0, %v2109_v49  ;;  %7839 = vmatmul.msk.f32.gmra.mxu3 %vm277_vm0, %v2109_v49 }
 0x2ee   : > { %v8593_v51 = vpop.eup %8592  ;;  %1068 = vst.msk [vmem:[%s9098_s9 + $0x900] sm:$0x7f] %vm995_vm1, %v8591_v50  ;;  %v814_v52 = vpop.f32.mrf.mxu0 }
 0x2ef   : > { %v1738_v53 = vpop.f32.mrf.mxu1  ;;  %v8595_v54 = vpop.eup %8594  ;;  %7512 = vst.msk [vmem:[%s9098_s9 + $0x908] sm:$0x7f] %vm995_vm1, %v8593_v51  ;;  %8598 = vtanh.f32 %v814_v52 }
 0x2f0   : > { %v8597_v55 = vpop.eup %8596  ;;  %7717 = vst.msk [vmem:[%s9098_s9 + $0x910] sm:$0x7f] %vm995_vm1, %v8595_v54  ;;  %8600 = vtanh.f32 %v1738_v53  ;;  %v2662_v56 = vpop.f32.mrf.mxu2 }
 0x2f1   : > { %v3586_v57 = vpop.f32.mrf.mxu3  ;;  %7922 = vst.msk [vmem:[%s9098_s9 + $0x918] sm:$0x7f] %vm995_vm1, %v8597_v55  ;;  %8602 = vtanh.f32 %v2662_v56  ;;  %7324 = vmatmul.msk.f32.gmra.mxu0 %vm277_vm0, %v2109_v49  ;;  %7429 = vmatmul.msk.f32.gmra.mxu1 %vm277_vm0, %v2109_v49 }
 0x2f2   : > { %8604 = vtanh.f32 %v3586_v57  ;;  %v2117_v57 = vld [vmem:[%s11307_s1 + $0x308] sm:$0xff] }
 0x2f5   : > { %v8599_v59 = vpop.eup %8598  ;;  %7635 = vmatmul.msk.f32.gmra.mxu2 %vm277_vm0, %v2110_v58  ;;  %7840 = vmatmul.msk.f32.gmra.mxu3 %vm277_vm0, %v2110_v58 }
 0x2f6   : > { %v8601_v60 = vpop.eup %8600  ;;  %1069 = vst.msk [vmem:[%s9098_s9 + $0x920] sm:$0x7f] %vm995_vm1, %v8599_v59  ;;  %v817_v61 = vpop.f32.mrf.mxu0 }
 0x2f7   : > { %v1741_v62 = vpop.f32.mrf.mxu1  ;;  %v8603_v63 = vpop.eup %8602  ;;  %7513 = vst.msk [vmem:[%s9098_s9 + $0x928] sm:$0x7f] %vm995_vm1, %v8601_v60  ;;  %8606 = vtanh.f32 %v817_v61 }
 0x2f8   : > { %v8605_v0 = vpop.eup %8604  ;;  %7718 = vst.msk [vmem:[%s9098_s9 + $0x930] sm:$0x7f] %vm995_vm1, %v8603_v63  ;;  %8608 = vtanh.f32 %v1741_v62  ;;  %v2665_v1 = vpop.f32.mrf.mxu2 }
 0x2f9   : > { %v3589_v2 = vpop.f32.mrf.mxu3  ;;  %7923 = vst.msk [vmem:[%s9098_s9 + $0x938] sm:$0x7f] %vm995_vm1, %v8605_v0  ;;  %8610 = vtanh.f32 %v2665_v1  ;;  %7325 = vmatmul.msk.f32.gmra.mxu0 %vm277_vm0, %v2110_v58  ;;  %7430 = vmatmul.msk.f32.gmra.mxu1 %vm277_vm0, %v2110_v58 }
 0x2fa   : > { %8612 = vtanh.f32 %v3589_v2  ;;  %v2118_v2 = vld [vmem:[%s11307_s1 + $0x310] sm:$0xff] }
 0x2fd   : > { %v8607_v4 = vpop.eup %8606  ;;  %7636 = vmatmul.msk.f32.gmra.mxu2 %vm277_vm0, %v2111_v3  ;;  %7841 = vmatmul.msk.f32.gmra.mxu3 %vm277_vm0, %v2111_v3 }
 0x2fe   : > { %v8609_v5 = vpop.eup %8608  ;;  %1070 = vst.msk [vmem:[%s9098_s9 + $0x940] sm:$0x7f] %vm995_vm1, %v8607_v4  ;;  %v820_v6 = vpop.f32.mrf.mxu0 }
 0x2ff   : > { %v1744_v7 = vpop.f32.mrf.mxu1  ;;  %v8611_v8 = vpop.eup %8610  ;;  %7514 = vst.msk [vmem:[%s9098_s9 + $0x948] sm:$0x7f] %vm995_vm1, %v8609_v5  ;;  %8614 = vtanh.f32 %v820_v6 }
 0x300   : > { %v8613_v9 = vpop.eup %8612  ;;  %7719 = vst.msk [vmem:[%s9098_s9 + $0x950] sm:$0x7f] %vm995_vm1, %v8611_v8  ;;  %8616 = vtanh.f32 %v1744_v7  ;;  %v2668_v10 = vpop.f32.mrf.mxu2 }
 0x301   : > { %v3592_v11 = vpop.f32.mrf.mxu3  ;;  %7924 = vst.msk [vmem:[%s9098_s9 + $0x958] sm:$0x7f] %vm995_vm1, %v8613_v9  ;;  %8618 = vtanh.f32 %v2668_v10  ;;  %7326 = vmatmul.msk.f32.gmra.mxu0 %vm277_vm0, %v2111_v3  ;;  %7431 = vmatmul.msk.f32.gmra.mxu1 %vm277_vm0, %v2111_v3 }
 0x302   : > { %8620 = vtanh.f32 %v3592_v11  ;;  %v2119_v11 = vld [vmem:[%s11307_s1 + $0x318] sm:$0xff] }
 0x305   : > { %v8615_v13 = vpop.eup %8614  ;;  %7637 = vmatmul.msk.f32.gmra.mxu2 %vm277_vm0, %v2112_v12  ;;  %7842 = vmatmul.msk.f32.gmra.mxu3 %vm277_vm0, %v2112_v12 }
 0x306   : > { %v8617_v14 = vpop.eup %8616  ;;  %1071 = vst.msk [vmem:[%s9098_s9 + $0x960] sm:$0x7f] %vm995_vm1, %v8615_v13  ;;  %v823_v15 = vpop.f32.mrf.mxu0 }
 0x307   : > { %v1747_v16 = vpop.f32.mrf.mxu1  ;;  %v8619_v17 = vpop.eup %8618  ;;  %7515 = vst.msk [vmem:[%s9098_s9 + $0x968] sm:$0x7f] %vm995_vm1, %v8617_v14  ;;  %8622 = vtanh.f32 %v823_v15 }
 0x308   : > { %v8621_v18 = vpop.eup %8620  ;;  %7720 = vst.msk [vmem:[%s9098_s9 + $0x970] sm:$0x7f] %vm995_vm1, %v8619_v17  ;;  %8624 = vtanh.f32 %v1747_v16  ;;  %v2671_v19 = vpop.f32.mrf.mxu2 }
 0x309   : > { %v3595_v20 = vpop.f32.mrf.mxu3  ;;  %7925 = vst.msk [vmem:[%s9098_s9 + $0x978] sm:$0x7f] %vm995_vm1, %v8621_v18  ;;  %8626 = vtanh.f32 %v2671_v19  ;;  %7327 = vmatmul.msk.f32.gmra.mxu0 %vm277_vm0, %v2112_v12  ;;  %7432 = vmatmul.msk.f32.gmra.mxu1 %vm277_vm0, %v2112_v12 }
 0x30a   : > { %8628 = vtanh.f32 %v3595_v20 }
 0x30d   : > { %v8623_v22 = vpop.eup %8622  ;;  %7638 = vmatmul.msk.f32.gmra.mxu2 %vm277_vm0, %v2113_v21  ;;  %7843 = vmatmul.msk.f32.gmra.mxu3 %vm277_vm0, %v2113_v21 }
 0x30e   : > { %v8625_v23 = vpop.eup %8624  ;;  %1072 = vst.msk [vmem:[%s9098_s9 + $0x980] sm:$0x7f] %vm995_vm1, %v8623_v22  ;;  %v826_v24 = vpop.f32.mrf.mxu0 }
 0x30f   : > { %v1750_v25 = vpop.f32.mrf.mxu1  ;;  %v8627_v26 = vpop.eup %8626  ;;  %7516 = vst.msk [vmem:[%s9098_s9 + $0x988] sm:$0x7f] %vm995_vm1, %v8625_v23  ;;  %8630 = vtanh.f32 %v826_v24 }
 0x310   : > { %v8629_v27 = vpop.eup %8628  ;;  %7721 = vst.msk [vmem:[%s9098_s9 + $0x990] sm:$0x7f] %vm995_vm1, %v8627_v26  ;;  %8632 = vtanh.f32 %v1750_v25  ;;  %v2674_v28 = vpop.f32.mrf.mxu2 }
 0x311   : > { %v3598_v29 = vpop.f32.mrf.mxu3  ;;  %7926 = vst.msk [vmem:[%s9098_s9 + $0x998] sm:$0x7f] %vm995_vm1, %v8629_v27  ;;  %8634 = vtanh.f32 %v2674_v28  ;;  %7328 = vmatmul.msk.f32.gmra.mxu0 %vm277_vm0, %v2113_v21  ;;  %7433 = vmatmul.msk.f32.gmra.mxu1 %vm277_vm0, %v2113_v21 }
 0x312   : > { %8636 = vtanh.f32 %v3598_v29 }
 0x315   : > { %v8631_v31 = vpop.eup %8630  ;;  %7639 = vmatmul.msk.f32.gmra.mxu2 %vm277_vm0, %v2114_v30  ;;  %7844 = vmatmul.msk.f32.gmra.mxu3 %vm277_vm0, %v2114_v30 }
 0x316   : > { %v8633_v32 = vpop.eup %8632  ;;  %1073 = vst.msk [vmem:[%s9098_s9 + $0x9a0] sm:$0x7f] %vm995_vm1, %v8631_v31  ;;  %v829_v33 = vpop.f32.mrf.mxu0 }
 0x317   : > { %v1753_v34 = vpop.f32.mrf.mxu1  ;;  %v8635_v35 = vpop.eup %8634  ;;  %7517 = vst.msk [vmem:[%s9098_s9 + $0x9a8] sm:$0x7f] %vm995_vm1, %v8633_v32  ;;  %8638 = vtanh.f32 %v829_v33 }
 0x318   : > { %v8637_v36 = vpop.eup %8636  ;;  %7722 = vst.msk [vmem:[%s9098_s9 + $0x9b0] sm:$0x7f] %vm995_vm1, %v8635_v35  ;;  %8640 = vtanh.f32 %v1753_v34  ;;  %v2677_v37 = vpop.f32.mrf.mxu2 }
 0x319   : > { %v3601_v38 = vpop.f32.mrf.mxu3  ;;  %7927 = vst.msk [vmem:[%s9098_s9 + $0x9b8] sm:$0x7f] %vm995_vm1, %v8637_v36  ;;  %8642 = vtanh.f32 %v2677_v37  ;;  %7329 = vmatmul.msk.f32.gmra.mxu0 %vm277_vm0, %v2114_v30  ;;  %7434 = vmatmul.msk.f32.gmra.mxu1 %vm277_vm0, %v2114_v30 }
 0x31a   : > { %8644 = vtanh.f32 %v3601_v38 }
 0x31d   : > { %v8639_v40 = vpop.eup %8638  ;;  %7640 = vmatmul.msk.f32.gmra.mxu2 %vm277_vm0, %v2115_v39  ;;  %7845 = vmatmul.msk.f32.gmra.mxu3 %vm277_vm0, %v2115_v39 }
 0x31e   : > { %v8641_v41 = vpop.eup %8640  ;;  %1074 = vst.msk [vmem:[%s9098_s9 + $0x9c0] sm:$0x7f] %vm995_vm1, %v8639_v40  ;;  %v832_v42 = vpop.f32.mrf.mxu0 }
 0x31f   : > { %v1756_v43 = vpop.f32.mrf.mxu1  ;;  %v8643_v44 = vpop.eup %8642  ;;  %7518 = vst.msk [vmem:[%s9098_s9 + $0x9c8] sm:$0x7f] %vm995_vm1, %v8641_v41  ;;  %8646 = vtanh.f32 %v832_v42 }
 0x320   : > { %v8645_v45 = vpop.eup %8644  ;;  %7723 = vst.msk [vmem:[%s9098_s9 + $0x9d0] sm:$0x7f] %vm995_vm1, %v8643_v44  ;;  %8648 = vtanh.f32 %v1756_v43  ;;  %v2680_v46 = vpop.f32.mrf.mxu2 }
 0x321   : > { %v3604_v47 = vpop.f32.mrf.mxu3  ;;  %7928 = vst.msk [vmem:[%s9098_s9 + $0x9d8] sm:$0x7f] %vm995_vm1, %v8645_v45  ;;  %8650 = vtanh.f32 %v2680_v46  ;;  %7330 = vmatmul.msk.f32.gmra.mxu0 %vm277_vm0, %v2115_v39  ;;  %7435 = vmatmul.msk.f32.gmra.mxu1 %vm277_vm0, %v2115_v39 }
 0x322   : > { %8652 = vtanh.f32 %v3604_v47 }
 0x325   : > { %v8647_v49 = vpop.eup %8646  ;;  %7641 = vmatmul.msk.f32.gmra.mxu2 %vm277_vm0, %v2116_v48  ;;  %7846 = vmatmul.msk.f32.gmra.mxu3 %vm277_vm0, %v2116_v48 }
 0x326   : > { %v8649_v50 = vpop.eup %8648  ;;  %1075 = vst.msk [vmem:[%s9098_s9 + $0x9e0] sm:$0x7f] %vm995_vm1, %v8647_v49  ;;  %v835_v51 = vpop.f32.mrf.mxu0 }
 0x327   : > { %v1759_v52 = vpop.f32.mrf.mxu1  ;;  %v8651_v53 = vpop.eup %8650  ;;  %7519 = vst.msk [vmem:[%s9098_s9 + $0x9e8] sm:$0x7f] %vm995_vm1, %v8649_v50  ;;  %8654 = vtanh.f32 %v835_v51 }
 0x328   : > { %v8653_v54 = vpop.eup %8652  ;;  %7724 = vst.msk [vmem:[%s9098_s9 + $0x9f0] sm:$0x7f] %vm995_vm1, %v8651_v53  ;;  %8656 = vtanh.f32 %v1759_v52  ;;  %v2683_v55 = vpop.f32.mrf.mxu2 }
 0x329   : > { %v3607_v56 = vpop.f32.mrf.mxu3  ;;  %7929 = vst.msk [vmem:[%s9098_s9 + $0x9f8] sm:$0x7f] %vm995_vm1, %v8653_v54  ;;  %8658 = vtanh.f32 %v2683_v55  ;;  %7331 = vmatmul.msk.f32.gmra.mxu0 %vm277_vm0, %v2116_v48  ;;  %7436 = vmatmul.msk.f32.gmra.mxu1 %vm277_vm0, %v2116_v48 }
 0x32a   : > { %8660 = vtanh.f32 %v3607_v56 }
 0x32d   : > { %v8655_v58 = vpop.eup %8654  ;;  %7642 = vmatmul.msk.f32.gmra.mxu2 %vm277_vm0, %v2117_v57  ;;  %7847 = vmatmul.msk.f32.gmra.mxu3 %vm277_vm0, %v2117_v57 }
 0x32e   : > { %v8657_v59 = vpop.eup %8656  ;;  %1076 = vst.msk [vmem:[%s9098_s9 + $0xa00] sm:$0x7f] %vm995_vm1, %v8655_v58  ;;  %v838_v60 = vpop.f32.mrf.mxu0 }
 0x32f   : > { %v1762_v61 = vpop.f32.mrf.mxu1  ;;  %v8659_v62 = vpop.eup %8658  ;;  %7520 = vst.msk [vmem:[%s9098_s9 + $0xa08] sm:$0x7f] %vm995_vm1, %v8657_v59  ;;  %8662 = vtanh.f32 %v838_v60 }
 0x330   : > { %v8661_v63 = vpop.eup %8660  ;;  %7725 = vst.msk [vmem:[%s9098_s9 + $0xa10] sm:$0x7f] %vm995_vm1, %v8659_v62  ;;  %8664 = vtanh.f32 %v1762_v61  ;;  %v2686_v0 = vpop.f32.mrf.mxu2 }
 0x331   : > { %v3610_v1 = vpop.f32.mrf.mxu3  ;;  %7930 = vst.msk [vmem:[%s9098_s9 + $0xa18] sm:$0x7f] %vm995_vm1, %v8661_v63  ;;  %8666 = vtanh.f32 %v2686_v0  ;;  %7332 = vmatmul.msk.f32.gmra.mxu0 %vm277_vm0, %v2117_v57  ;;  %7437 = vmatmul.msk.f32.gmra.mxu1 %vm277_vm0, %v2117_v57 }
 0x332   : > { %8668 = vtanh.f32 %v3610_v1 }
 0x335   : > { %v8663_v3 = vpop.eup %8662  ;;  %7643 = vmatmul.msk.f32.gmra.mxu2 %vm277_vm0, %v2118_v2  ;;  %7848 = vmatmul.msk.f32.gmra.mxu3 %vm277_vm0, %v2118_v2 }
 0x336   : > { %v8665_v4 = vpop.eup %8664  ;;  %1077 = vst.msk [vmem:[%s9098_s9 + $0xa20] sm:$0x7f] %vm995_vm1, %v8663_v3  ;;  %v841_v5 = vpop.f32.mrf.mxu0 }
 0x337   : > { %v1765_v6 = vpop.f32.mrf.mxu1  ;;  %v8667_v7 = vpop.eup %8666  ;;  %7521 = vst.msk [vmem:[%s9098_s9 + $0xa28] sm:$0x7f] %vm995_vm1, %v8665_v4  ;;  %8670 = vtanh.f32 %v841_v5 }
 0x338   : > { %v8669_v8 = vpop.eup %8668  ;;  %7726 = vst.msk [vmem:[%s9098_s9 + $0xa30] sm:$0x7f] %vm995_vm1, %v8667_v7  ;;  %8672 = vtanh.f32 %v1765_v6  ;;  %v2689_v9 = vpop.f32.mrf.mxu2 }
 0x339   : > { %v3613_v10 = vpop.f32.mrf.mxu3  ;;  %7931 = vst.msk [vmem:[%s9098_s9 + $0xa38] sm:$0x7f] %vm995_vm1, %v8669_v8  ;;  %8674 = vtanh.f32 %v2689_v9  ;;  %7333 = vmatmul.msk.f32.gmra.mxu0 %vm277_vm0, %v2118_v2  ;;  %7438 = vmatmul.msk.f32.gmra.mxu1 %vm277_vm0, %v2118_v2 }
 0x33a   : > { %8676 = vtanh.f32 %v3613_v10 }
 0x33d   : > { %v8671_v12 = vpop.eup %8670  ;;  %7644 = vmatmul.msk.f32.gmra.mxu2 %vm277_vm0, %v2119_v11  ;;  %7849 = vmatmul.msk.f32.gmra.mxu3 %vm277_vm0, %v2119_v11 }
 0x33e   : > { %v8673_v13 = vpop.eup %8672  ;;  %1078 = vst.msk [vmem:[%s9098_s9 + $0xa40] sm:$0x7f] %vm995_vm1, %v8671_v12  ;;  %v844_v14 = vpop.f32.mrf.mxu0 }
 0x33f   : > { %v1768_v15 = vpop.f32.mrf.mxu1  ;;  %v8675_v16 = vpop.eup %8674  ;;  %7522 = vst.msk [vmem:[%s9098_s9 + $0xa48] sm:$0x7f] %vm995_vm1, %v8673_v13  ;;  %8678 = vtanh.f32 %v844_v14 }
 0x340   : > { %v8677_v17 = vpop.eup %8676  ;;  %7727 = vst.msk [vmem:[%s9098_s9 + $0xa50] sm:$0x7f] %vm995_vm1, %v8675_v16  ;;  %8680 = vtanh.f32 %v1768_v15  ;;  %v2692_v18 = vpop.f32.mrf.mxu2 }
 0x341   : > { %v3616_v19 = vpop.f32.mrf.mxu3  ;;  %7932 = vst.msk [vmem:[%s9098_s9 + $0xa58] sm:$0x7f] %vm995_vm1, %v8677_v17  ;;  %8682 = vtanh.f32 %v2692_v18  ;;  %7334 = vmatmul.msk.f32.gmra.mxu0 %vm277_vm0, %v2119_v11  ;;  %7439 = vmatmul.msk.f32.gmra.mxu1 %vm277_vm0, %v2119_v11 }
 0x342   : > { %8684 = vtanh.f32 %v3616_v19 }
 0x345   : > { %v8679_v20 = vpop.eup %8678 }
 0x346   : > { %v8681_v21 = vpop.eup %8680  ;;  %1079 = vst.msk [vmem:[%s9098_s9 + $0xa60] sm:$0x7f] %vm995_vm1, %v8679_v20  ;;  %v847_v22 = vpop.f32.mrf.mxu0 }
 0x347   : > { %v1771_v23 = vpop.f32.mrf.mxu1  ;;  %v8683_v24 = vpop.eup %8682  ;;  %7523 = vst.msk [vmem:[%s9098_s9 + $0xa68] sm:$0x7f] %vm995_vm1, %v8681_v21  ;;  %8686 = vtanh.f32 %v847_v22 }
 0x348   : > { %v8685_v25 = vpop.eup %8684  ;;  %7728 = vst.msk [vmem:[%s9098_s9 + $0xa70] sm:$0x7f] %vm995_vm1, %v8683_v24  ;;  %8688 = vtanh.f32 %v1771_v23  ;;  %v2695_v26 = vpop.f32.mrf.mxu2 }
 0x349   : > { %v3619_v27 = vpop.f32.mrf.mxu3  ;;  %7933 = vst.msk [vmem:[%s9098_s9 + $0xa78] sm:$0x7f] %vm995_vm1, %v8685_v25  ;;  %8690 = vtanh.f32 %v2695_v26 }
 0x34a   : > { %8692 = vtanh.f32 %v3619_v27 }
 0x34d   : > { %v8687_v28 = vpop.eup %8686 }
 0x34e   : > { %v8689_v29 = vpop.eup %8688  ;;  %1080 = vst.msk [vmem:[%s9098_s9 + $0xa80] sm:$0x7f] %vm995_vm1, %v8687_v28  ;;  %v850_v30 = vpop.f32.mrf.mxu0 }
 0x34f   : > { %v1774_v31 = vpop.f32.mrf.mxu1  ;;  %v8691_v32 = vpop.eup %8690  ;;  %7524 = vst.msk [vmem:[%s9098_s9 + $0xa88] sm:$0x7f] %vm995_vm1, %v8689_v29  ;;  %8694 = vtanh.f32 %v850_v30 }
 0x350   : > { %v8693_v33 = vpop.eup %8692  ;;  %7729 = vst.msk [vmem:[%s9098_s9 + $0xa90] sm:$0x7f] %vm995_vm1, %v8691_v32  ;;  %8696 = vtanh.f32 %v1774_v31  ;;  %v2698_v34 = vpop.f32.mrf.mxu2 }
 0x351   : > { %v3622_v35 = vpop.f32.mrf.mxu3  ;;  %7934 = vst.msk [vmem:[%s9098_s9 + $0xa98] sm:$0x7f] %vm995_vm1, %v8693_v33  ;;  %8698 = vtanh.f32 %v2698_v34 }
 0x352   : > { %8700 = vtanh.f32 %v3622_v35 }
 0x355   : > { %v8695_v36 = vpop.eup %8694 }
 0x356   : > { %v8697_v37 = vpop.eup %8696  ;;  %1081 = vst.msk [vmem:[%s9098_s9 + $0xaa0] sm:$0x7f] %vm995_vm1, %v8695_v36  ;;  %v853_v38 = vpop.f32.mrf.mxu0 }
 0x357   : > { %v1777_v39 = vpop.f32.mrf.mxu1  ;;  %v8699_v40 = vpop.eup %8698  ;;  %7525 = vst.msk [vmem:[%s9098_s9 + $0xaa8] sm:$0x7f] %vm995_vm1, %v8697_v37  ;;  %8702 = vtanh.f32 %v853_v38 }
 0x358   : > { %v8701_v41 = vpop.eup %8700  ;;  %7730 = vst.msk [vmem:[%s9098_s9 + $0xab0] sm:$0x7f] %vm995_vm1, %v8699_v40  ;;  %8704 = vtanh.f32 %v1777_v39  ;;  %v2701_v42 = vpop.f32.mrf.mxu2 }
 0x359   : > { %v3625_v43 = vpop.f32.mrf.mxu3  ;;  %7935 = vst.msk [vmem:[%s9098_s9 + $0xab8] sm:$0x7f] %vm995_vm1, %v8701_v41  ;;  %8706 = vtanh.f32 %v2701_v42 }
 0x35a   : > { %8708 = vtanh.f32 %v3625_v43 }
 0x35d   : > { %v8703_v44 = vpop.eup %8702 }
 0x35e   : > { %v8705_v45 = vpop.eup %8704  ;;  %1082 = vst.msk [vmem:[%s9098_s9 + $0xac0] sm:$0x7f] %vm995_vm1, %v8703_v44  ;;  %v856_v46 = vpop.f32.mrf.mxu0 }
 0x35f   : > { %v1780_v47 = vpop.f32.mrf.mxu1  ;;  %v8707_v48 = vpop.eup %8706  ;;  %7526 = vst.msk [vmem:[%s9098_s9 + $0xac8] sm:$0x7f] %vm995_vm1, %v8705_v45  ;;  %8710 = vtanh.f32 %v856_v46 }
 0x360   : > { %v8709_v49 = vpop.eup %8708  ;;  %7731 = vst.msk [vmem:[%s9098_s9 + $0xad0] sm:$0x7f] %vm995_vm1, %v8707_v48  ;;  %8712 = vtanh.f32 %v1780_v47  ;;  %v2704_v50 = vpop.f32.mrf.mxu2 }
 0x361   : > { %v3628_v51 = vpop.f32.mrf.mxu3  ;;  %7936 = vst.msk [vmem:[%s9098_s9 + $0xad8] sm:$0x7f] %vm995_vm1, %v8709_v49  ;;  %8714 = vtanh.f32 %v2704_v50 }
 0x362   : > { %8716 = vtanh.f32 %v3628_v51 }
 0x365   : > { %v8711_v52 = vpop.eup %8710 }
 0x366   : > { %v8713_v53 = vpop.eup %8712  ;;  %1083 = vst.msk [vmem:[%s9098_s9 + $0xae0] sm:$0x7f] %vm995_vm1, %v8711_v52  ;;  %v859_v54 = vpop.f32.mrf.mxu0 }
 0x367   : > { %v1783_v55 = vpop.f32.mrf.mxu1  ;;  %v8715_v56 = vpop.eup %8714  ;;  %7527 = vst.msk [vmem:[%s9098_s9 + $0xae8] sm:$0x7f] %vm995_vm1, %v8713_v53  ;;  %8718 = vtanh.f32 %v859_v54 }
 0x368   : > { %v8717_v57 = vpop.eup %8716  ;;  %7732 = vst.msk [vmem:[%s9098_s9 + $0xaf0] sm:$0x7f] %vm995_vm1, %v8715_v56  ;;  %8720 = vtanh.f32 %v1783_v55  ;;  %v2707_v58 = vpop.f32.mrf.mxu2 }
 0x369   : > { %v3631_v59 = vpop.f32.mrf.mxu3  ;;  %7937 = vst.msk [vmem:[%s9098_s9 + $0xaf8] sm:$0x7f] %vm995_vm1, %v8717_v57  ;;  %8722 = vtanh.f32 %v2707_v58 }
 0x36a   : > { %8724 = vtanh.f32 %v3631_v59 }
 0x36d   : > { %v8719_v60 = vpop.eup %8718 }
 0x36e   : > { %v8721_v61 = vpop.eup %8720  ;;  %1084 = vst.msk [vmem:[%s9098_s9 + $0xb00] sm:$0x7f] %vm995_vm1, %v8719_v60  ;;  %v862_v62 = vpop.f32.mrf.mxu0 }
 0x36f   : > { %v1786_v63 = vpop.f32.mrf.mxu1  ;;  %v8723_v0 = vpop.eup %8722  ;;  %7528 = vst.msk [vmem:[%s9098_s9 + $0xb08] sm:$0x7f] %vm995_vm1, %v8721_v61  ;;  %8726 = vtanh.f32 %v862_v62 }
 0x370   : > { %v8725_v1 = vpop.eup %8724  ;;  %7733 = vst.msk [vmem:[%s9098_s9 + $0xb10] sm:$0x7f] %vm995_vm1, %v8723_v0  ;;  %8728 = vtanh.f32 %v1786_v63  ;;  %v2710_v2 = vpop.f32.mrf.mxu2 }
 0x371   : > { %v3634_v3 = vpop.f32.mrf.mxu3  ;;  %7938 = vst.msk [vmem:[%s9098_s9 + $0xb18] sm:$0x7f] %vm995_vm1, %v8725_v1  ;;  %8730 = vtanh.f32 %v2710_v2 }
 0x372   : > { %8732 = vtanh.f32 %v3634_v3 }
 0x375   : > { %v8727_v4 = vpop.eup %8726 }
 0x376   : > { %v8729_v5 = vpop.eup %8728  ;;  %1085 = vst.msk [vmem:[%s9098_s9 + $0xb20] sm:$0x7f] %vm995_vm1, %v8727_v4  ;;  %v865_v6 = vpop.f32.mrf.mxu0 }
 0x377   : > { %v1789_v7 = vpop.f32.mrf.mxu1  ;;  %v8731_v8 = vpop.eup %8730  ;;  %7529 = vst.msk [vmem:[%s9098_s9 + $0xb28] sm:$0x7f] %vm995_vm1, %v8729_v5  ;;  %8734 = vtanh.f32 %v865_v6 }
 0x378   : > { %v8733_v9 = vpop.eup %8732  ;;  %7734 = vst.msk [vmem:[%s9098_s9 + $0xb30] sm:$0x7f] %vm995_vm1, %v8731_v8  ;;  %8736 = vtanh.f32 %v1789_v7  ;;  %v2713_v10 = vpop.f32.mrf.mxu2 }
 0x379   : > { %v3637_v11 = vpop.f32.mrf.mxu3  ;;  %7939 = vst.msk [vmem:[%s9098_s9 + $0xb38] sm:$0x7f] %vm995_vm1, %v8733_v9  ;;  %8738 = vtanh.f32 %v2713_v10 }
 0x37a   : > { %8740 = vtanh.f32 %v3637_v11 }
 0x37d   : > { %v8735_v12 = vpop.eup %8734 }
 0x37e   : > { %v8737_v13 = vpop.eup %8736  ;;  %1086 = vst.msk [vmem:[%s9098_s9 + $0xb40] sm:$0x7f] %vm995_vm1, %v8735_v12  ;;  %v868_v14 = vpop.f32.mrf.mxu0 }
 0x37f   : > { %v1792_v15 = vpop.f32.mrf.mxu1  ;;  %v8739_v16 = vpop.eup %8738  ;;  %7530 = vst.msk [vmem:[%s9098_s9 + $0xb48] sm:$0x7f] %vm995_vm1, %v8737_v13  ;;  %8742 = vtanh.f32 %v868_v14 }
 0x380   : > { %v8741_v17 = vpop.eup %8740  ;;  %7735 = vst.msk [vmem:[%s9098_s9 + $0xb50] sm:$0x7f] %vm995_vm1, %v8739_v16  ;;  %8744 = vtanh.f32 %v1792_v15  ;;  %v2716_v18 = vpop.f32.mrf.mxu2 }
 0x381   : > { %v3640_v19 = vpop.f32.mrf.mxu3  ;;  %7940 = vst.msk [vmem:[%s9098_s9 + $0xb58] sm:$0x7f] %vm995_vm1, %v8741_v17  ;;  %8746 = vtanh.f32 %v2716_v18 }
 0x382   : > { %8748 = vtanh.f32 %v3640_v19 }
 0x385   : > { %v8743_v20 = vpop.eup %8742 }
 0x386   : > { %v8745_v21 = vpop.eup %8744  ;;  %1087 = vst.msk [vmem:[%s9098_s9 + $0xb60] sm:$0x7f] %vm995_vm1, %v8743_v20  ;;  %v871_v22 = vpop.f32.mrf.mxu0 }
 0x387   : > { %v1795_v23 = vpop.f32.mrf.mxu1  ;;  %v8747_v24 = vpop.eup %8746  ;;  %7531 = vst.msk [vmem:[%s9098_s9 + $0xb68] sm:$0x7f] %vm995_vm1, %v8745_v21  ;;  %8750 = vtanh.f32 %v871_v22 }
 0x388   : > { %v8749_v25 = vpop.eup %8748  ;;  %7736 = vst.msk [vmem:[%s9098_s9 + $0xb70] sm:$0x7f] %vm995_vm1, %v8747_v24  ;;  %8752 = vtanh.f32 %v1795_v23  ;;  %v2719_v26 = vpop.f32.mrf.mxu2  ;;  %v4707_v24 = vld [vmem:[%s9098_s9] sm:$0xff] (%p8929_p5) }
 0x389   : > { %v3643_v27 = vpop.f32.mrf.mxu3  ;;  %7941 = vst.msk [vmem:[%s9098_s9 + $0xb78] sm:$0x7f] %vm995_vm1, %v8749_v25  ;;  %8754 = vtanh.f32 %v2719_v26  ;;  %v4709_v25 = vld [vmem:[%s9098_s9 + $0x8] sm:$0xff] (%p8929_p5)  ;;  %v4711_v26 = vld [vmem:[%s9098_s9 + $0x10] sm:$0xff] (%p8929_p5) }
 0x38a   : > { %8756 = vtanh.f32 %v3643_v27  ;;  %4708 = vst [vmem:[%s10485_s20] sm:$0xff] (%p8929_p5), %v4707_v24  ;;  %v4713_v27 = vld [vmem:[%s9098_s9 + $0x18] sm:$0xff] (%p8929_p5)  ;;  %v4835_v24 = vld [vmem:[%s9098_s9 + $0x200] sm:$0xff] (%p8929_p5) }
 0x38b   : > { %4710 = vst [vmem:[%s10485_s20 + $0x8] sm:$0xff] (%p8929_p5), %v4709_v25  ;;  %v4837_v25 = vld [vmem:[%s9098_s9 + $0x208] sm:$0xff] (%p8929_p5) }
 0x38c   : > { %4712 = vst [vmem:[%s10485_s20 + $0x10] sm:$0xff] (%p8929_p5), %v4711_v26  ;;  %v4839_v26 = vld [vmem:[%s9098_s9 + $0x210] sm:$0xff] (%p8929_p5) }
 0x38d   : > { %v8751_v28 = vpop.eup %8750  ;;  %4714 = vst [vmem:[%s10485_s20 + $0x18] sm:$0xff] (%p8929_p5), %v4713_v27  ;;  %v4841_v27 = vld [vmem:[%s9098_s9 + $0x218] sm:$0xff] (%p8929_p5) }
 0x38e   : > { %v8753_v29 = vpop.eup %8752  ;;  %1088 = vst.msk [vmem:[%s9098_s9 + $0xb80] sm:$0x7f] %vm995_vm1, %v8751_v28  ;;  %v874_v30 = vpop.f32.mrf.mxu0  ;;  %v4715_v28 = vld [vmem:[%s9098_s9 + $0x20] sm:$0xff] (%p8929_p5) }
 0x38f   : > { %v1798_v31 = vpop.f32.mrf.mxu1  ;;  %v8755_v32 = vpop.eup %8754  ;;  %7532 = vst.msk [vmem:[%s9098_s9 + $0xb88] sm:$0x7f] %vm995_vm1, %v8753_v29  ;;  %8758 = vtanh.f32 %v874_v30  ;;  %v4717_v29 = vld [vmem:[%s9098_s9 + $0x28] sm:$0xff] (%p8929_p5)  ;;  %v4719_v30 = vld [vmem:[%s9098_s9 + $0x30] sm:$0xff] (%p8929_p5) }
 0x390   : > { %v8757_v33 = vpop.eup %8756  ;;  %7737 = vst.msk [vmem:[%s9098_s9 + $0xb90] sm:$0x7f] %vm995_vm1, %v8755_v32  ;;  %8760 = vtanh.f32 %v1798_v31  ;;  %v2722_v34 = vpop.f32.mrf.mxu2  ;;  %v4721_v31 = vld [vmem:[%s9098_s9 + $0x38] sm:$0xff] (%p8929_p5)  ;;  %v4723_v32 = vld [vmem:[%s9098_s9 + $0x40] sm:$0xff] (%p8929_p5) }
 0x391   : > { %v3646_v35 = vpop.f32.mrf.mxu3  ;;  %7942 = vst.msk [vmem:[%s9098_s9 + $0xb98] sm:$0x7f] %vm995_vm1, %v8757_v33  ;;  %8762 = vtanh.f32 %v2722_v34  ;;  %v4725_v33 = vld [vmem:[%s9098_s9 + $0x48] sm:$0xff] (%p8929_p5)  ;;  %v4727_v34 = vld [vmem:[%s9098_s9 + $0x50] sm:$0xff] (%p8929_p5) }
 0x392   : > { %8764 = vtanh.f32 %v3646_v35  ;;  %4716 = vst [vmem:[%s10485_s20 + $0x80] sm:$0xff] (%p8929_p5), %v4715_v28  ;;  %v4729_v35 = vld [vmem:[%s9098_s9 + $0x58] sm:$0xff] (%p8929_p5)  ;;  %v4843_v28 = vld [vmem:[%s9098_s9 + $0x220] sm:$0xff] (%p8929_p5) }
 0x393   : > { %4718 = vst [vmem:[%s10485_s20 + $0x88] sm:$0xff] (%p8929_p5), %v4717_v29  ;;  %v4845_v29 = vld [vmem:[%s9098_s9 + $0x228] sm:$0xff] (%p8929_p5) }
 0x394   : > { %4720 = vst [vmem:[%s10485_s20 + $0x90] sm:$0xff] (%p8929_p5), %v4719_v30  ;;  %v4847_v30 = vld [vmem:[%s9098_s9 + $0x230] sm:$0xff] (%p8929_p5) }
 0x395   : > { %v8759_v36 = vpop.eup %8758  ;;  %4722 = vst [vmem:[%s10485_s20 + $0x98] sm:$0xff] (%p8929_p5), %v4721_v31  ;;  %v4849_v31 = vld [vmem:[%s9098_s9 + $0x238] sm:$0xff] (%p8929_p5) }
 0x396   : > { %v8761_v37 = vpop.eup %8760  ;;  %1089 = vst.msk [vmem:[%s9098_s9 + $0xba0] sm:$0x7f] %vm995_vm1, %v8759_v36  ;;  %v877_v38 = vpop.f32.mrf.mxu0  ;;  %v4731_v36 = vld [vmem:[%s9098_s9 + $0x60] sm:$0xff] (%p8929_p5) }
 0x397   : > { %v1801_v39 = vpop.f32.mrf.mxu1  ;;  %v8763_v40 = vpop.eup %8762  ;;  %7533 = vst.msk [vmem:[%s9098_s9 + $0xba8] sm:$0x7f] %vm995_vm1, %v8761_v37  ;;  %8766 = vtanh.f32 %v877_v38  ;;  %v4733_v37 = vld [vmem:[%s9098_s9 + $0x68] sm:$0xff] (%p8929_p5)  ;;  %v4735_v38 = vld [vmem:[%s9098_s9 + $0x70] sm:$0xff] (%p8929_p5) }
 0x398   : > { %v8765_v41 = vpop.eup %8764  ;;  %7738 = vst.msk [vmem:[%s9098_s9 + $0xbb0] sm:$0x7f] %vm995_vm1, %v8763_v40  ;;  %8768 = vtanh.f32 %v1801_v39  ;;  %v2725_v42 = vpop.f32.mrf.mxu2  ;;  %v4737_v39 = vld [vmem:[%s9098_s9 + $0x78] sm:$0xff] (%p8929_p5)  ;;  %v4739_v40 = vld [vmem:[%s9098_s9 + $0x80] sm:$0xff] (%p8929_p5) }
 0x399   : > { %v3649_v43 = vpop.f32.mrf.mxu3  ;;  %7943 = vst.msk [vmem:[%s9098_s9 + $0xbb8] sm:$0x7f] %vm995_vm1, %v8765_v41  ;;  %8770 = vtanh.f32 %v2725_v42  ;;  %v4741_v41 = vld [vmem:[%s9098_s9 + $0x88] sm:$0xff] (%p8929_p5)  ;;  %v4743_v42 = vld [vmem:[%s9098_s9 + $0x90] sm:$0xff] (%p8929_p5) }
 0x39a   : > { %8772 = vtanh.f32 %v3649_v43  ;;  %4724 = vst [vmem:[%s10485_s20 + $0x100] sm:$0xff] (%p8929_p5), %v4723_v32  ;;  %v4745_v43 = vld [vmem:[%s9098_s9 + $0x98] sm:$0xff] (%p8929_p5)  ;;  %v4851_v32 = vld [vmem:[%s9098_s9 + $0x240] sm:$0xff] (%p8929_p5) }
 0x39b   : > { %4726 = vst [vmem:[%s10485_s20 + $0x108] sm:$0xff] (%p8929_p5), %v4725_v33  ;;  %v4853_v33 = vld [vmem:[%s9098_s9 + $0x248] sm:$0xff] (%p8929_p5) }
 0x39c   : > { %4728 = vst [vmem:[%s10485_s20 + $0x110] sm:$0xff] (%p8929_p5), %v4727_v34  ;;  %v4855_v34 = vld [vmem:[%s9098_s9 + $0x250] sm:$0xff] (%p8929_p5) }
 0x39d   : > { %v8767_v44 = vpop.eup %8766  ;;  %4730 = vst [vmem:[%s10485_s20 + $0x118] sm:$0xff] (%p8929_p5), %v4729_v35  ;;  %v4857_v35 = vld [vmem:[%s9098_s9 + $0x258] sm:$0xff] (%p8929_p5) }
 0x39e   : > { %v8769_v45 = vpop.eup %8768  ;;  %1090 = vst.msk [vmem:[%s9098_s9 + $0xbc0] sm:$0x7f] %vm995_vm1, %v8767_v44  ;;  %v880_v46 = vpop.f32.mrf.mxu0  ;;  %v4747_v44 = vld [vmem:[%s9098_s9 + $0xa0] sm:$0xff] (%p8929_p5) }
 0x39f   : > { %v1804_v47 = vpop.f32.mrf.mxu1  ;;  %v8771_v48 = vpop.eup %8770  ;;  %7534 = vst.msk [vmem:[%s9098_s9 + $0xbc8] sm:$0x7f] %vm995_vm1, %v8769_v45  ;;  %8774 = vtanh.f32 %v880_v46  ;;  %v4749_v45 = vld [vmem:[%s9098_s9 + $0xa8] sm:$0xff] (%p8929_p5)  ;;  %v4751_v46 = vld [vmem:[%s9098_s9 + $0xb0] sm:$0xff] (%p8929_p5) }
 0x3a0   : > { %v8773_v49 = vpop.eup %8772  ;;  %7739 = vst.msk [vmem:[%s9098_s9 + $0xbd0] sm:$0x7f] %vm995_vm1, %v8771_v48  ;;  %8776 = vtanh.f32 %v1804_v47  ;;  %v2728_v50 = vpop.f32.mrf.mxu2  ;;  %v4753_v47 = vld [vmem:[%s9098_s9 + $0xb8] sm:$0xff] (%p8929_p5)  ;;  %v4755_v48 = vld [vmem:[%s9098_s9 + $0xc0] sm:$0xff] (%p8929_p5) }
 0x3a1   : > { %v3652_v51 = vpop.f32.mrf.mxu3  ;;  %7944 = vst.msk [vmem:[%s9098_s9 + $0xbd8] sm:$0x7f] %vm995_vm1, %v8773_v49  ;;  %8778 = vtanh.f32 %v2728_v50  ;;  %v4757_v49 = vld [vmem:[%s9098_s9 + $0xc8] sm:$0xff] (%p8929_p5)  ;;  %v4759_v50 = vld [vmem:[%s9098_s9 + $0xd0] sm:$0xff] (%p8929_p5) }
 0x3a2   : > { %8780 = vtanh.f32 %v3652_v51  ;;  %4732 = vst [vmem:[%s10485_s20 + $0x180] sm:$0xff] (%p8929_p5), %v4731_v36  ;;  %v4761_v51 = vld [vmem:[%s9098_s9 + $0xd8] sm:$0xff] (%p8929_p5)  ;;  %v4859_v36 = vld [vmem:[%s9098_s9 + $0x260] sm:$0xff] (%p8929_p5) }
 0x3a3   : > { %4734 = vst [vmem:[%s10485_s20 + $0x188] sm:$0xff] (%p8929_p5), %v4733_v37  ;;  %v4861_v37 = vld [vmem:[%s9098_s9 + $0x268] sm:$0xff] (%p8929_p5) }
 0x3a4   : > { %4736 = vst [vmem:[%s10485_s20 + $0x190] sm:$0xff] (%p8929_p5), %v4735_v38  ;;  %v4863_v38 = vld [vmem:[%s9098_s9 + $0x270] sm:$0xff] (%p8929_p5) }
 0x3a5   : > { %v8775_v52 = vpop.eup %8774  ;;  %4738 = vst [vmem:[%s10485_s20 + $0x198] sm:$0xff] (%p8929_p5), %v4737_v39  ;;  %v4865_v39 = vld [vmem:[%s9098_s9 + $0x278] sm:$0xff] (%p8929_p5) }
 0x3a6   : > { %v8777_v53 = vpop.eup %8776  ;;  %1091 = vst.msk [vmem:[%s9098_s9 + $0xbe0] sm:$0x7f] %vm995_vm1, %v8775_v52  ;;  %v883_v54 = vpop.f32.mrf.mxu0  ;;  %v4763_v52 = vld [vmem:[%s9098_s9 + $0xe0] sm:$0xff] (%p8929_p5) }
 0x3a7   : > { %v1807_v55 = vpop.f32.mrf.mxu1  ;;  %v8779_v56 = vpop.eup %8778  ;;  %7535 = vst.msk [vmem:[%s9098_s9 + $0xbe8] sm:$0x7f] %vm995_vm1, %v8777_v53  ;;  %8782 = vtanh.f32 %v883_v54  ;;  %v4765_v53 = vld [vmem:[%s9098_s9 + $0xe8] sm:$0xff] (%p8929_p5)  ;;  %v4767_v54 = vld [vmem:[%s9098_s9 + $0xf0] sm:$0xff] (%p8929_p5) }
 0x3a8   : > { %v8781_v57 = vpop.eup %8780  ;;  %7740 = vst.msk [vmem:[%s9098_s9 + $0xbf0] sm:$0x7f] %vm995_vm1, %v8779_v56  ;;  %8784 = vtanh.f32 %v1807_v55  ;;  %v2731_v58 = vpop.f32.mrf.mxu2  ;;  %v4769_v55 = vld [vmem:[%s9098_s9 + $0xf8] sm:$0xff] (%p8929_p5)  ;;  %v4771_v56 = vld [vmem:[%s9098_s9 + $0x100] sm:$0xff] (%p8929_p5) }
 0x3a9   : > { %v3655_v59 = vpop.f32.mrf.mxu3  ;;  %7945 = vst.msk [vmem:[%s9098_s9 + $0xbf8] sm:$0x7f] %vm995_vm1, %v8781_v57  ;;  %8786 = vtanh.f32 %v2731_v58  ;;  %v4773_v57 = vld [vmem:[%s9098_s9 + $0x108] sm:$0xff] (%p8929_p5)  ;;  %v4775_v58 = vld [vmem:[%s9098_s9 + $0x110] sm:$0xff] (%p8929_p5) }
 0x3aa   : > { %8788 = vtanh.f32 %v3655_v59  ;;  %4740 = vst [vmem:[%s10485_s20 + $0x200] sm:$0xff] (%p8929_p5), %v4739_v40  ;;  %v4777_v59 = vld [vmem:[%s9098_s9 + $0x118] sm:$0xff] (%p8929_p5)  ;;  %v4867_v40 = vld [vmem:[%s9098_s9 + $0x280] sm:$0xff] (%p8929_p5) }
 0x3ab   : > { %4742 = vst [vmem:[%s10485_s20 + $0x208] sm:$0xff] (%p8929_p5), %v4741_v41  ;;  %v4869_v41 = vld [vmem:[%s9098_s9 + $0x288] sm:$0xff] (%p8929_p5) }
 0x3ac   : > { %4744 = vst [vmem:[%s10485_s20 + $0x210] sm:$0xff] (%p8929_p5), %v4743_v42  ;;  %v4871_v42 = vld [vmem:[%s9098_s9 + $0x290] sm:$0xff] (%p8929_p5) }
 0x3ad   : > { %v8783_v60 = vpop.eup %8782  ;;  %4746 = vst [vmem:[%s10485_s20 + $0x218] sm:$0xff] (%p8929_p5), %v4745_v43  ;;  %v4873_v43 = vld [vmem:[%s9098_s9 + $0x298] sm:$0xff] (%p8929_p5) }
 0x3ae   : > { %v8785_v61 = vpop.eup %8784  ;;  %1092 = vst.msk [vmem:[%s9098_s9 + $0xc00] sm:$0x7f] %vm995_vm1, %v8783_v60  ;;  %v886_v62 = vpop.f32.mrf.mxu0  ;;  %v4779_v60 = vld [vmem:[%s9098_s9 + $0x120] sm:$0xff] (%p8929_p5) }
 0x3af   : > { %v1810_v63 = vpop.f32.mrf.mxu1  ;;  %v8787_v0 = vpop.eup %8786  ;;  %7536 = vst.msk [vmem:[%s9098_s9 + $0xc08] sm:$0x7f] %vm995_vm1, %v8785_v61  ;;  %8790 = vtanh.f32 %v886_v62  ;;  %v4781_v61 = vld [vmem:[%s9098_s9 + $0x128] sm:$0xff] (%p8929_p5)  ;;  %v4783_v62 = vld [vmem:[%s9098_s9 + $0x130] sm:$0xff] (%p8929_p5) }
 0x3b0   : > { %v8789_v1 = vpop.eup %8788  ;;  %7741 = vst.msk [vmem:[%s9098_s9 + $0xc10] sm:$0x7f] %vm995_vm1, %v8787_v0  ;;  %8792 = vtanh.f32 %v1810_v63  ;;  %v2734_v2 = vpop.f32.mrf.mxu2  ;;  %v4785_v63 = vld [vmem:[%s9098_s9 + $0x138] sm:$0xff] (%p8929_p5)  ;;  %v4787_v0 = vld [vmem:[%s9098_s9 + $0x140] sm:$0xff] (%p8929_p5) }
 0x3b1   : > { %v3658_v3 = vpop.f32.mrf.mxu3  ;;  %7946 = vst.msk [vmem:[%s9098_s9 + $0xc18] sm:$0x7f] %vm995_vm1, %v8789_v1  ;;  %8794 = vtanh.f32 %v2734_v2  ;;  %v4789_v1 = vld [vmem:[%s9098_s9 + $0x148] sm:$0xff] (%p8929_p5)  ;;  %v4791_v2 = vld [vmem:[%s9098_s9 + $0x150] sm:$0xff] (%p8929_p5) }
 0x3b2   : > { %8796 = vtanh.f32 %v3658_v3  ;;  %4748 = vst [vmem:[%s10485_s20 + $0x280] sm:$0xff] (%p8929_p5), %v4747_v44  ;;  %v4793_v3 = vld [vmem:[%s9098_s9 + $0x158] sm:$0xff] (%p8929_p5)  ;;  %v4875_v44 = vld [vmem:[%s9098_s9 + $0x2a0] sm:$0xff] (%p8929_p5) }
 0x3b3   : > { %4750 = vst [vmem:[%s10485_s20 + $0x288] sm:$0xff] (%p8929_p5), %v4749_v45  ;;  %v4877_v45 = vld [vmem:[%s9098_s9 + $0x2a8] sm:$0xff] (%p8929_p5) }
 0x3b4   : > { %4752 = vst [vmem:[%s10485_s20 + $0x290] sm:$0xff] (%p8929_p5), %v4751_v46  ;;  %v4879_v46 = vld [vmem:[%s9098_s9 + $0x2b0] sm:$0xff] (%p8929_p5) }
 0x3b5   : > { %v8791_v4 = vpop.eup %8790  ;;  %4754 = vst [vmem:[%s10485_s20 + $0x298] sm:$0xff] (%p8929_p5), %v4753_v47  ;;  %v4881_v47 = vld [vmem:[%s9098_s9 + $0x2b8] sm:$0xff] (%p8929_p5) }
 0x3b6   : > { %v8793_v5 = vpop.eup %8792  ;;  %1093 = vst.msk [vmem:[%s9098_s9 + $0xc20] sm:$0x7f] %vm995_vm1, %v8791_v4  ;;  %v889_v6 = vpop.f32.mrf.mxu0  ;;  %v4795_v4 = vld [vmem:[%s9098_s9 + $0x160] sm:$0xff] (%p8929_p5) }
 0x3b7   : > { %v1813_v7 = vpop.f32.mrf.mxu1  ;;  %v8795_v8 = vpop.eup %8794  ;;  %7537 = vst.msk [vmem:[%s9098_s9 + $0xc28] sm:$0x7f] %vm995_vm1, %v8793_v5  ;;  %8798 = vtanh.f32 %v889_v6  ;;  %v4797_v5 = vld [vmem:[%s9098_s9 + $0x168] sm:$0xff] (%p8929_p5)  ;;  %v4799_v6 = vld [vmem:[%s9098_s9 + $0x170] sm:$0xff] (%p8929_p5) }
 0x3b8   : > { %v8797_v9 = vpop.eup %8796  ;;  %7742 = vst.msk [vmem:[%s9098_s9 + $0xc30] sm:$0x7f] %vm995_vm1, %v8795_v8  ;;  %8800 = vtanh.f32 %v1813_v7  ;;  %v2737_v10 = vpop.f32.mrf.mxu2  ;;  %v4801_v7 = vld [vmem:[%s9098_s9 + $0x178] sm:$0xff] (%p8929_p5)  ;;  %v4803_v8 = vld [vmem:[%s9098_s9 + $0x180] sm:$0xff] (%p8929_p5) }
 0x3b9   : > { %v3661_v11 = vpop.f32.mrf.mxu3  ;;  %7947 = vst.msk [vmem:[%s9098_s9 + $0xc38] sm:$0x7f] %vm995_vm1, %v8797_v9  ;;  %8802 = vtanh.f32 %v2737_v10  ;;  %v4805_v9 = vld [vmem:[%s9098_s9 + $0x188] sm:$0xff] (%p8929_p5)  ;;  %v4807_v10 = vld [vmem:[%s9098_s9 + $0x190] sm:$0xff] (%p8929_p5) }
 0x3ba   : > { %8804 = vtanh.f32 %v3661_v11  ;;  %4756 = vst [vmem:[%s10485_s20 + $0x300] sm:$0xff] (%p8929_p5), %v4755_v48  ;;  %v4809_v11 = vld [vmem:[%s9098_s9 + $0x198] sm:$0xff] (%p8929_p5)  ;;  %v4883_v48 = vld [vmem:[%s9098_s9 + $0x2c0] sm:$0xff] (%p8929_p5) }
 0x3bb   : > { %4758 = vst [vmem:[%s10485_s20 + $0x308] sm:$0xff] (%p8929_p5), %v4757_v49  ;;  %v4885_v49 = vld [vmem:[%s9098_s9 + $0x2c8] sm:$0xff] (%p8929_p5) }
 0x3bc   : > { %4760 = vst [vmem:[%s10485_s20 + $0x310] sm:$0xff] (%p8929_p5), %v4759_v50  ;;  %v4887_v50 = vld [vmem:[%s9098_s9 + $0x2d0] sm:$0xff] (%p8929_p5) }
 0x3bd   : > { %v8799_v12 = vpop.eup %8798  ;;  %4762 = vst [vmem:[%s10485_s20 + $0x318] sm:$0xff] (%p8929_p5), %v4761_v51  ;;  %v4889_v51 = vld [vmem:[%s9098_s9 + $0x2d8] sm:$0xff] (%p8929_p5) }
 0x3be   : > { %v8801_v13 = vpop.eup %8800  ;;  %1094 = vst.msk [vmem:[%s9098_s9 + $0xc40] sm:$0x7f] %vm995_vm1, %v8799_v12  ;;  %v892_v14 = vpop.f32.mrf.mxu0  ;;  %v4811_v12 = vld [vmem:[%s9098_s9 + $0x1a0] sm:$0xff] (%p8929_p5) }
 0x3bf   : > { %v1816_v15 = vpop.f32.mrf.mxu1  ;;  %v8803_v16 = vpop.eup %8802  ;;  %7538 = vst.msk [vmem:[%s9098_s9 + $0xc48] sm:$0x7f] %vm995_vm1, %v8801_v13  ;;  %8806 = vtanh.f32 %v892_v14  ;;  %v4813_v13 = vld [vmem:[%s9098_s9 + $0x1a8] sm:$0xff] (%p8929_p5)  ;;  %v4815_v14 = vld [vmem:[%s9098_s9 + $0x1b0] sm:$0xff] (%p8929_p5) }
 0x3c0   : > { %v8805_v17 = vpop.eup %8804  ;;  %7743 = vst.msk [vmem:[%s9098_s9 + $0xc50] sm:$0x7f] %vm995_vm1, %v8803_v16  ;;  %8808 = vtanh.f32 %v1816_v15  ;;  %v2740_v18 = vpop.f32.mrf.mxu2  ;;  %v4817_v15 = vld [vmem:[%s9098_s9 + $0x1b8] sm:$0xff] (%p8929_p5)  ;;  %v4819_v16 = vld [vmem:[%s9098_s9 + $0x1c0] sm:$0xff] (%p8929_p5) }
 0x3c1   : > { %v3664_v19 = vpop.f32.mrf.mxu3  ;;  %7948 = vst.msk [vmem:[%s9098_s9 + $0xc58] sm:$0x7f] %vm995_vm1, %v8805_v17  ;;  %8810 = vtanh.f32 %v2740_v18  ;;  %v4821_v17 = vld [vmem:[%s9098_s9 + $0x1c8] sm:$0xff] (%p8929_p5)  ;;  %v4823_v18 = vld [vmem:[%s9098_s9 + $0x1d0] sm:$0xff] (%p8929_p5) }
 0x3c2   : > { %8812 = vtanh.f32 %v3664_v19  ;;  %4764 = vst [vmem:[%s10485_s20 + $0x380] sm:$0xff] (%p8929_p5), %v4763_v52  ;;  %v4825_v19 = vld [vmem:[%s9098_s9 + $0x1d8] sm:$0xff] (%p8929_p5)  ;;  %v4891_v52 = vld [vmem:[%s9098_s9 + $0x2e0] sm:$0xff] (%p8929_p5) }
 0x3c3   : > { %4766 = vst [vmem:[%s10485_s20 + $0x388] sm:$0xff] (%p8929_p5), %v4765_v53  ;;  %v4893_v53 = vld [vmem:[%s9098_s9 + $0x2e8] sm:$0xff] (%p8929_p5) }
 0x3c4   : > { %4768 = vst [vmem:[%s10485_s20 + $0x390] sm:$0xff] (%p8929_p5), %v4767_v54  ;;  %v4895_v54 = vld [vmem:[%s9098_s9 + $0x2f0] sm:$0xff] (%p8929_p5) }
 0x3c5   : > { %v8807_v20 = vpop.eup %8806  ;;  %3874 = sbr.rel (!%p8929_p5) target bundleno = 1338 (0x53a), region = 32  ;;  %4770 = vst [vmem:[%s10485_s20 + $0x398] sm:$0xff] (%p8929_p5), %v4769_v55  ;;  %v4897_v55 = vld [vmem:[%s9098_s9 + $0x2f8] sm:$0xff] (%p8929_p5) }
 0x3c6   : > { %v8809_v21 = vpop.eup %8808  ;;  %1095 = vst.msk [vmem:[%s9098_s9 + $0xc60] sm:$0x7f] %vm995_vm1, %v8807_v20  ;;  %v4827_v20 = vld [vmem:[%s9098_s9 + $0x1e0] sm:$0xff] (%p8929_p5) }
 0x3c7   : > { %v8811_v22 = vpop.eup %8810  ;;  %7539 = vst.msk [vmem:[%s9098_s9 + $0xc68] sm:$0x7f] %vm995_vm1, %v8809_v21  ;;  %v4829_v21 = vld [vmem:[%s9098_s9 + $0x1e8] sm:$0xff] (%p8929_p5) }
 0x3c8   : > { %v8813_v23 = vpop.eup %8812  ;;  %7744 = vst.msk [vmem:[%s9098_s9 + $0xc70] sm:$0x7f] %vm995_vm1, %v8811_v22  ;;  %v4831_v22 = vld [vmem:[%s9098_s9 + $0x1f0] sm:$0xff] (%p8929_p5) }
 0x3c9   : > { %7949 = vst.msk [vmem:[%s9098_s9 + $0xc78] sm:$0x7f] %vm995_vm1, %v8813_v23  ;;  %v4833_v23 = vld [vmem:[%s9098_s9 + $0x1f8] sm:$0xff] (%p8929_p5) }
 0x3ca   : > { %4772 = vst [vmem:[%s10485_s20 + $0x400] sm:$0xff] %v4771_v56  ;;  %v4899_v56 = vld [vmem:[%s9098_s9 + $0x300] sm:$0xff] }
 0x3cb   : > { %4774 = vst [vmem:[%s10485_s20 + $0x408] sm:$0xff] %v4773_v57  ;;  %v4901_v57 = vld [vmem:[%s9098_s9 + $0x308] sm:$0xff] }
 0x3cc   : > { %4776 = vst [vmem:[%s10485_s20 + $0x410] sm:$0xff] %v4775_v58  ;;  %v4903_v58 = vld [vmem:[%s9098_s9 + $0x310] sm:$0xff] }
 0x3cd   : > { %4778 = vst [vmem:[%s10485_s20 + $0x418] sm:$0xff] %v4777_v59  ;;  %v4905_v59 = vld [vmem:[%s9098_s9 + $0x318] sm:$0xff] }
 0x3ce   : > { %4780 = vst [vmem:[%s10485_s20 + $0x480] sm:$0xff] %v4779_v60  ;;  %v4907_v60 = vld [vmem:[%s9098_s9 + $0x320] sm:$0xff] }
 0x3cf   : > { %4782 = vst [vmem:[%s10485_s20 + $0x488] sm:$0xff] %v4781_v61  ;;  %v4909_v61 = vld [vmem:[%s9098_s9 + $0x328] sm:$0xff] }
 0x3d0   : > { %4784 = vst [vmem:[%s10485_s20 + $0x490] sm:$0xff] %v4783_v62  ;;  %v4911_v62 = vld [vmem:[%s9098_s9 + $0x330] sm:$0xff] }
 0x3d1   : > { %4786 = vst [vmem:[%s10485_s20 + $0x498] sm:$0xff] %v4785_v63  ;;  %v4913_v63 = vld [vmem:[%s9098_s9 + $0x338] sm:$0xff] }
 0x3d2   : > { %4788 = vst [vmem:[%s10485_s20 + $0x500] sm:$0xff] %v4787_v0  ;;  %v4915_v0 = vld [vmem:[%s9098_s9 + $0x340] sm:$0xff] }
 0x3d3   : > { %4790 = vst [vmem:[%s10485_s20 + $0x508] sm:$0xff] %v4789_v1  ;;  %v4917_v1 = vld [vmem:[%s9098_s9 + $0x348] sm:$0xff] }
 0x3d4   : > { %4792 = vst [vmem:[%s10485_s20 + $0x510] sm:$0xff] %v4791_v2  ;;  %v4919_v2 = vld [vmem:[%s9098_s9 + $0x350] sm:$0xff] }
 0x3d5   : > { %4794 = vst [vmem:[%s10485_s20 + $0x518] sm:$0xff] %v4793_v3  ;;  %v4921_v3 = vld [vmem:[%s9098_s9 + $0x358] sm:$0xff] }
 0x3d6   : > { %4796 = vst [vmem:[%s10485_s20 + $0x580] sm:$0xff] %v4795_v4  ;;  %v4923_v4 = vld [vmem:[%s9098_s9 + $0x360] sm:$0xff] }
 0x3d7   : > { %4798 = vst [vmem:[%s10485_s20 + $0x588] sm:$0xff] %v4797_v5  ;;  %v4925_v5 = vld [vmem:[%s9098_s9 + $0x368] sm:$0xff] }
 0x3d8   : > { %4800 = vst [vmem:[%s10485_s20 + $0x590] sm:$0xff] %v4799_v6  ;;  %v4927_v6 = vld [vmem:[%s9098_s9 + $0x370] sm:$0xff] }
 0x3d9   : > { %4802 = vst [vmem:[%s10485_s20 + $0x598] sm:$0xff] %v4801_v7  ;;  %v4929_v7 = vld [vmem:[%s9098_s9 + $0x378] sm:$0xff] }
 0x3da   : > { %4804 = vst [vmem:[%s10485_s20 + $0x600] sm:$0xff] %v4803_v8  ;;  %v4931_v8 = vld [vmem:[%s9098_s9 + $0x380] sm:$0xff] }
 0x3db   : > { %4806 = vst [vmem:[%s10485_s20 + $0x608] sm:$0xff] %v4805_v9  ;;  %v4933_v9 = vld [vmem:[%s9098_s9 + $0x388] sm:$0xff] }
 0x3dc   : > { %4808 = vst [vmem:[%s10485_s20 + $0x610] sm:$0xff] %v4807_v10  ;;  %v4935_v10 = vld [vmem:[%s9098_s9 + $0x390] sm:$0xff] }
 0x3dd   : > { %4810 = vst [vmem:[%s10485_s20 + $0x618] sm:$0xff] %v4809_v11  ;;  %v4937_v11 = vld [vmem:[%s9098_s9 + $0x398] sm:$0xff] }
 0x3de   : > { %4812 = vst [vmem:[%s10485_s20 + $0x680] sm:$0xff] %v4811_v12  ;;  %v4939_v12 = vld [vmem:[%s9098_s9 + $0x3a0] sm:$0xff] }
 0x3df   : > { %4814 = vst [vmem:[%s10485_s20 + $0x688] sm:$0xff] %v4813_v13  ;;  %v4941_v13 = vld [vmem:[%s9098_s9 + $0x3a8] sm:$0xff] }
 0x3e0   : > { %4816 = vst [vmem:[%s10485_s20 + $0x690] sm:$0xff] %v4815_v14  ;;  %v4943_v14 = vld [vmem:[%s9098_s9 + $0x3b0] sm:$0xff] }
 0x3e1   : > { %4818 = vst [vmem:[%s10485_s20 + $0x698] sm:$0xff] %v4817_v15  ;;  %v4945_v15 = vld [vmem:[%s9098_s9 + $0x3b8] sm:$0xff] }
 0x3e2   : > { %4820 = vst [vmem:[%s10485_s20 + $0x700] sm:$0xff] %v4819_v16  ;;  %v4947_v16 = vld [vmem:[%s9098_s9 + $0x3c0] sm:$0xff] }
 0x3e3   : > { %4822 = vst [vmem:[%s10485_s20 + $0x708] sm:$0xff] %v4821_v17  ;;  %v4949_v17 = vld [vmem:[%s9098_s9 + $0x3c8] sm:$0xff] }
 0x3e4   : > { %4824 = vst [vmem:[%s10485_s20 + $0x710] sm:$0xff] %v4823_v18  ;;  %v4951_v18 = vld [vmem:[%s9098_s9 + $0x3d0] sm:$0xff] }
 0x3e5   : > { %4826 = vst [vmem:[%s10485_s20 + $0x718] sm:$0xff] %v4825_v19  ;;  %v4953_v19 = vld [vmem:[%s9098_s9 + $0x3d8] sm:$0xff] }
 0x3e6   : > { %4828 = vst [vmem:[%s10485_s20 + $0x780] sm:$0xff] %v4827_v20  ;;  %v4955_v20 = vld [vmem:[%s9098_s9 + $0x3e0] sm:$0xff] }
 0x3e7   : > { %4830 = vst [vmem:[%s10485_s20 + $0x788] sm:$0xff] %v4829_v21  ;;  %v4957_v21 = vld [vmem:[%s9098_s9 + $0x3e8] sm:$0xff] }
 0x3e8   : > { %4832 = vst [vmem:[%s10485_s20 + $0x790] sm:$0xff] %v4831_v22  ;;  %v4959_v22 = vld [vmem:[%s9098_s9 + $0x3f0] sm:$0xff] }
 0x3e9   : > { %4834 = vst [vmem:[%s10485_s20 + $0x798] sm:$0xff] %v4833_v23  ;;  %v4961_v23 = vld [vmem:[%s9098_s9 + $0x3f8] sm:$0xff] }
 0x3ea   : > { %4836 = vst [vmem:[%s10485_s20 + $0x800] sm:$0xff] %v4835_v24  ;;  %v4963_v24 = vld [vmem:[%s9098_s9 + $0x400] sm:$0xff] }
 0x3eb   : > { %4838 = vst [vmem:[%s10485_s20 + $0x808] sm:$0xff] %v4837_v25  ;;  %v4965_v25 = vld [vmem:[%s9098_s9 + $0x408] sm:$0xff] }
 0x3ec   : > { %4840 = vst [vmem:[%s10485_s20 + $0x810] sm:$0xff] %v4839_v26  ;;  %v4967_v26 = vld [vmem:[%s9098_s9 + $0x410] sm:$0xff] }
 0x3ed   : > { %4842 = vst [vmem:[%s10485_s20 + $0x818] sm:$0xff] %v4841_v27  ;;  %v4969_v27 = vld [vmem:[%s9098_s9 + $0x418] sm:$0xff] }
 0x3ee   : > { %4844 = vst [vmem:[%s10485_s20 + $0x880] sm:$0xff] %v4843_v28  ;;  %v4971_v28 = vld [vmem:[%s9098_s9 + $0x420] sm:$0xff] }
 0x3ef   : > { %4846 = vst [vmem:[%s10485_s20 + $0x888] sm:$0xff] %v4845_v29  ;;  %v4973_v29 = vld [vmem:[%s9098_s9 + $0x428] sm:$0xff] }
 0x3f0   : > { %4848 = vst [vmem:[%s10485_s20 + $0x890] sm:$0xff] %v4847_v30  ;;  %v4975_v30 = vld [vmem:[%s9098_s9 + $0x430] sm:$0xff] }
 0x3f1   : > { %4850 = vst [vmem:[%s10485_s20 + $0x898] sm:$0xff] %v4849_v31  ;;  %v4977_v31 = vld [vmem:[%s9098_s9 + $0x438] sm:$0xff] }
 0x3f2   : > { %4852 = vst [vmem:[%s10485_s20 + $0x900] sm:$0xff] %v4851_v32  ;;  %v4979_v32 = vld [vmem:[%s9098_s9 + $0x440] sm:$0xff] }
 0x3f3   : > { %4854 = vst [vmem:[%s10485_s20 + $0x908] sm:$0xff] %v4853_v33  ;;  %v4981_v33 = vld [vmem:[%s9098_s9 + $0x448] sm:$0xff] }
 0x3f4   : > { %4856 = vst [vmem:[%s10485_s20 + $0x910] sm:$0xff] %v4855_v34  ;;  %v4983_v34 = vld [vmem:[%s9098_s9 + $0x450] sm:$0xff] }
 0x3f5   : > { %4858 = vst [vmem:[%s10485_s20 + $0x918] sm:$0xff] %v4857_v35  ;;  %v4985_v35 = vld [vmem:[%s9098_s9 + $0x458] sm:$0xff] }
 0x3f6   : > { %4860 = vst [vmem:[%s10485_s20 + $0x980] sm:$0xff] %v4859_v36  ;;  %v4987_v36 = vld [vmem:[%s9098_s9 + $0x460] sm:$0xff] }
 0x3f7   : > { %4862 = vst [vmem:[%s10485_s20 + $0x988] sm:$0xff] %v4861_v37  ;;  %v4989_v37 = vld [vmem:[%s9098_s9 + $0x468] sm:$0xff] }
 0x3f8   : > { %4864 = vst [vmem:[%s10485_s20 + $0x990] sm:$0xff] %v4863_v38  ;;  %v4991_v38 = vld [vmem:[%s9098_s9 + $0x470] sm:$0xff] }
 0x3f9   : > { %4866 = vst [vmem:[%s10485_s20 + $0x998] sm:$0xff] %v4865_v39  ;;  %v4993_v39 = vld [vmem:[%s9098_s9 + $0x478] sm:$0xff] }
 0x3fa   : > { %4868 = vst [vmem:[%s10485_s20 + $0xa00] sm:$0xff] %v4867_v40  ;;  %v4995_v40 = vld [vmem:[%s9098_s9 + $0x480] sm:$0xff] }
 0x3fb   : > { %4870 = vst [vmem:[%s10485_s20 + $0xa08] sm:$0xff] %v4869_v41  ;;  %v4997_v41 = vld [vmem:[%s9098_s9 + $0x488] sm:$0xff] }
 0x3fc   : > { %4872 = vst [vmem:[%s10485_s20 + $0xa10] sm:$0xff] %v4871_v42  ;;  %v4999_v42 = vld [vmem:[%s9098_s9 + $0x490] sm:$0xff] }
 0x3fd   : > { %4874 = vst [vmem:[%s10485_s20 + $0xa18] sm:$0xff] %v4873_v43  ;;  %v5001_v43 = vld [vmem:[%s9098_s9 + $0x498] sm:$0xff] }
 0x3fe   : > { %4876 = vst [vmem:[%s10485_s20 + $0xa80] sm:$0xff] %v4875_v44  ;;  %v5003_v44 = vld [vmem:[%s9098_s9 + $0x4a0] sm:$0xff] }
 0x3ff   : > { %4878 = vst [vmem:[%s10485_s20 + $0xa88] sm:$0xff] %v4877_v45  ;;  %v5005_v45 = vld [vmem:[%s9098_s9 + $0x4a8] sm:$0xff] }
 0x400   : > { %4880 = vst [vmem:[%s10485_s20 + $0xa90] sm:$0xff] %v4879_v46  ;;  %v5007_v46 = vld [vmem:[%s9098_s9 + $0x4b0] sm:$0xff] }
 0x401   : > { %4882 = vst [vmem:[%s10485_s20 + $0xa98] sm:$0xff] %v4881_v47  ;;  %v5009_v47 = vld [vmem:[%s9098_s9 + $0x4b8] sm:$0xff] }
 0x402   : > { %4884 = vst [vmem:[%s10485_s20 + $0xb00] sm:$0xff] %v4883_v48  ;;  %v5011_v48 = vld [vmem:[%s9098_s9 + $0x4c0] sm:$0xff] }
 0x403   : > { %4886 = vst [vmem:[%s10485_s20 + $0xb08] sm:$0xff] %v4885_v49  ;;  %v5013_v49 = vld [vmem:[%s9098_s9 + $0x4c8] sm:$0xff] }
 0x404   : > { %4888 = vst [vmem:[%s10485_s20 + $0xb10] sm:$0xff] %v4887_v50  ;;  %v5015_v50 = vld [vmem:[%s9098_s9 + $0x4d0] sm:$0xff] }
 0x405   : > { %4890 = vst [vmem:[%s10485_s20 + $0xb18] sm:$0xff] %v4889_v51  ;;  %v5017_v51 = vld [vmem:[%s9098_s9 + $0x4d8] sm:$0xff] }
 0x406   : > { %4892 = vst [vmem:[%s10485_s20 + $0xb80] sm:$0xff] %v4891_v52  ;;  %v5019_v52 = vld [vmem:[%s9098_s9 + $0x4e0] sm:$0xff] }
 0x407   : > { %4894 = vst [vmem:[%s10485_s20 + $0xb88] sm:$0xff] %v4893_v53  ;;  %v5021_v53 = vld [vmem:[%s9098_s9 + $0x4e8] sm:$0xff] }
 0x408   : > { %4896 = vst [vmem:[%s10485_s20 + $0xb90] sm:$0xff] %v4895_v54  ;;  %v5023_v54 = vld [vmem:[%s9098_s9 + $0x4f0] sm:$0xff] }
 0x409   : > { %4898 = vst [vmem:[%s10485_s20 + $0xb98] sm:$0xff] %v4897_v55  ;;  %v5025_v55 = vld [vmem:[%s9098_s9 + $0x4f8] sm:$0xff] }
 0x40a   : > { %4900 = vst [vmem:[%s10485_s20 + $0xc00] sm:$0xff] %v4899_v56  ;;  %v5027_v56 = vld [vmem:[%s9098_s9 + $0x500] sm:$0xff] }
 0x40b   : > { %4902 = vst [vmem:[%s10485_s20 + $0xc08] sm:$0xff] %v4901_v57  ;;  %v5029_v57 = vld [vmem:[%s9098_s9 + $0x508] sm:$0xff] }
 0x40c   : > { %4904 = vst [vmem:[%s10485_s20 + $0xc10] sm:$0xff] %v4903_v58  ;;  %v5031_v58 = vld [vmem:[%s9098_s9 + $0x510] sm:$0xff] }
 0x40d   : > { %4906 = vst [vmem:[%s10485_s20 + $0xc18] sm:$0xff] %v4905_v59  ;;  %v5033_v59 = vld [vmem:[%s9098_s9 + $0x518] sm:$0xff] }
 0x40e   : > { %4908 = vst [vmem:[%s10485_s20 + $0xc80] sm:$0xff] %v4907_v60  ;;  %v5035_v60 = vld [vmem:[%s9098_s9 + $0x520] sm:$0xff] }
 0x40f   : > { %4910 = vst [vmem:[%s10485_s20 + $0xc88] sm:$0xff] %v4909_v61  ;;  %v5037_v61 = vld [vmem:[%s9098_s9 + $0x528] sm:$0xff] }
 0x410   : > { %4912 = vst [vmem:[%s10485_s20 + $0xc90] sm:$0xff] %v4911_v62  ;;  %v5039_v62 = vld [vmem:[%s9098_s9 + $0x530] sm:$0xff] }
 0x411   : > { %4914 = vst [vmem:[%s10485_s20 + $0xc98] sm:$0xff] %v4913_v63  ;;  %v5041_v63 = vld [vmem:[%s9098_s9 + $0x538] sm:$0xff] }
 0x412   : > { %4916 = vst [vmem:[%s10485_s20 + $0xd00] sm:$0xff] %v4915_v0  ;;  %v5043_v0 = vld [vmem:[%s9098_s9 + $0x540] sm:$0xff] }
 0x413   : > { %4918 = vst [vmem:[%s10485_s20 + $0xd08] sm:$0xff] %v4917_v1  ;;  %v5045_v1 = vld [vmem:[%s9098_s9 + $0x548] sm:$0xff] }
 0x414   : > { %4920 = vst [vmem:[%s10485_s20 + $0xd10] sm:$0xff] %v4919_v2  ;;  %v5047_v2 = vld [vmem:[%s9098_s9 + $0x550] sm:$0xff] }
 0x415   : > { %4922 = vst [vmem:[%s10485_s20 + $0xd18] sm:$0xff] %v4921_v3  ;;  %v5049_v3 = vld [vmem:[%s9098_s9 + $0x558] sm:$0xff] }
 0x416   : > { %4924 = vst [vmem:[%s10485_s20 + $0xd80] sm:$0xff] %v4923_v4  ;;  %v5051_v4 = vld [vmem:[%s9098_s9 + $0x560] sm:$0xff] }
 0x417   : > { %4926 = vst [vmem:[%s10485_s20 + $0xd88] sm:$0xff] %v4925_v5  ;;  %v5053_v5 = vld [vmem:[%s9098_s9 + $0x568] sm:$0xff] }
 0x418   : > { %4928 = vst [vmem:[%s10485_s20 + $0xd90] sm:$0xff] %v4927_v6  ;;  %v5055_v6 = vld [vmem:[%s9098_s9 + $0x570] sm:$0xff] }
 0x419   : > { %4930 = vst [vmem:[%s10485_s20 + $0xd98] sm:$0xff] %v4929_v7  ;;  %v5057_v7 = vld [vmem:[%s9098_s9 + $0x578] sm:$0xff] }
 0x41a   : > { %4932 = vst [vmem:[%s10485_s20 + $0xe00] sm:$0xff] %v4931_v8  ;;  %v5059_v8 = vld [vmem:[%s9098_s9 + $0x580] sm:$0xff] }
 0x41b   : > { %4934 = vst [vmem:[%s10485_s20 + $0xe08] sm:$0xff] %v4933_v9  ;;  %v5061_v9 = vld [vmem:[%s9098_s9 + $0x588] sm:$0xff] }
 0x41c   : > { %4936 = vst [vmem:[%s10485_s20 + $0xe10] sm:$0xff] %v4935_v10  ;;  %v5063_v10 = vld [vmem:[%s9098_s9 + $0x590] sm:$0xff] }
 0x41d   : > { %4938 = vst [vmem:[%s10485_s20 + $0xe18] sm:$0xff] %v4937_v11  ;;  %v5065_v11 = vld [vmem:[%s9098_s9 + $0x598] sm:$0xff] }
 0x41e   : > { %4940 = vst [vmem:[%s10485_s20 + $0xe80] sm:$0xff] %v4939_v12  ;;  %v5067_v12 = vld [vmem:[%s9098_s9 + $0x5a0] sm:$0xff] }
 0x41f   : > { %4942 = vst [vmem:[%s10485_s20 + $0xe88] sm:$0xff] %v4941_v13  ;;  %v5069_v13 = vld [vmem:[%s9098_s9 + $0x5a8] sm:$0xff] }
 0x420   : > { %4944 = vst [vmem:[%s10485_s20 + $0xe90] sm:$0xff] %v4943_v14  ;;  %v5071_v14 = vld [vmem:[%s9098_s9 + $0x5b0] sm:$0xff] }
 0x421   : > { %4946 = vst [vmem:[%s10485_s20 + $0xe98] sm:$0xff] %v4945_v15  ;;  %v5073_v15 = vld [vmem:[%s9098_s9 + $0x5b8] sm:$0xff] }
 0x422   : > { %4948 = vst [vmem:[%s10485_s20 + $0xf00] sm:$0xff] %v4947_v16  ;;  %v5075_v16 = vld [vmem:[%s9098_s9 + $0x5c0] sm:$0xff] }
 0x423   : > { %4950 = vst [vmem:[%s10485_s20 + $0xf08] sm:$0xff] %v4949_v17  ;;  %v5077_v17 = vld [vmem:[%s9098_s9 + $0x5c8] sm:$0xff] }
 0x424   : > { %4952 = vst [vmem:[%s10485_s20 + $0xf10] sm:$0xff] %v4951_v18  ;;  %v5079_v18 = vld [vmem:[%s9098_s9 + $0x5d0] sm:$0xff] }
 0x425   : > { %4954 = vst [vmem:[%s10485_s20 + $0xf18] sm:$0xff] %v4953_v19  ;;  %v5081_v19 = vld [vmem:[%s9098_s9 + $0x5d8] sm:$0xff] }
 0x426   : > { %4956 = vst [vmem:[%s10485_s20 + $0xf80] sm:$0xff] %v4955_v20  ;;  %v5083_v20 = vld [vmem:[%s9098_s9 + $0x5e0] sm:$0xff] }
 0x427   : > { %4958 = vst [vmem:[%s10485_s20 + $0xf88] sm:$0xff] %v4957_v21  ;;  %v5085_v21 = vld [vmem:[%s9098_s9 + $0x5e8] sm:$0xff] }
 0x428   : > { %4960 = vst [vmem:[%s10485_s20 + $0xf90] sm:$0xff] %v4959_v22  ;;  %v5087_v22 = vld [vmem:[%s9098_s9 + $0x5f0] sm:$0xff] }
 0x429   : > { %4962 = vst [vmem:[%s10485_s20 + $0xf98] sm:$0xff] %v4961_v23  ;;  %v5089_v23 = vld [vmem:[%s9098_s9 + $0x5f8] sm:$0xff] }
 0x42a   : > { %4964 = vst [vmem:[%s10485_s20 + $0x1000] sm:$0xff] %v4963_v24  ;;  %v5091_v24 = vld [vmem:[%s9098_s9 + $0x600] sm:$0xff] }
 0x42b   : > { %4966 = vst [vmem:[%s10485_s20 + $0x1008] sm:$0xff] %v4965_v25  ;;  %v5093_v25 = vld [vmem:[%s9098_s9 + $0x608] sm:$0xff] }
 0x42c   : > { %4968 = vst [vmem:[%s10485_s20 + $0x1010] sm:$0xff] %v4967_v26  ;;  %v5095_v26 = vld [vmem:[%s9098_s9 + $0x610] sm:$0xff] }
 0x42d   : > { %4970 = vst [vmem:[%s10485_s20 + $0x1018] sm:$0xff] %v4969_v27  ;;  %v5097_v27 = vld [vmem:[%s9098_s9 + $0x618] sm:$0xff] }
 0x42e   : > { %4972 = vst [vmem:[%s10485_s20 + $0x1080] sm:$0xff] %v4971_v28  ;;  %v5099_v28 = vld [vmem:[%s9098_s9 + $0x620] sm:$0xff] }
 0x42f   : > { %4974 = vst [vmem:[%s10485_s20 + $0x1088] sm:$0xff] %v4973_v29  ;;  %v5101_v29 = vld [vmem:[%s9098_s9 + $0x628] sm:$0xff] }
 0x430   : > { %4976 = vst [vmem:[%s10485_s20 + $0x1090] sm:$0xff] %v4975_v30  ;;  %v5103_v30 = vld [vmem:[%s9098_s9 + $0x630] sm:$0xff] }
 0x431   : > { %4978 = vst [vmem:[%s10485_s20 + $0x1098] sm:$0xff] %v4977_v31  ;;  %v5105_v31 = vld [vmem:[%s9098_s9 + $0x638] sm:$0xff] }
 0x432   : > { %4980 = vst [vmem:[%s10485_s20 + $0x1100] sm:$0xff] %v4979_v32  ;;  %v5107_v32 = vld [vmem:[%s9098_s9 + $0x640] sm:$0xff] }
 0x433   : > { %4982 = vst [vmem:[%s10485_s20 + $0x1108] sm:$0xff] %v4981_v33  ;;  %v5109_v33 = vld [vmem:[%s9098_s9 + $0x648] sm:$0xff] }
 0x434   : > { %4984 = vst [vmem:[%s10485_s20 + $0x1110] sm:$0xff] %v4983_v34  ;;  %v5111_v34 = vld [vmem:[%s9098_s9 + $0x650] sm:$0xff] }
 0x435   : > { %4986 = vst [vmem:[%s10485_s20 + $0x1118] sm:$0xff] %v4985_v35  ;;  %v5113_v35 = vld [vmem:[%s9098_s9 + $0x658] sm:$0xff] }
 0x436   : > { %4988 = vst [vmem:[%s10485_s20 + $0x1180] sm:$0xff] %v4987_v36  ;;  %v5115_v36 = vld [vmem:[%s9098_s9 + $0x660] sm:$0xff] }
 0x437   : > { %4990 = vst [vmem:[%s10485_s20 + $0x1188] sm:$0xff] %v4989_v37  ;;  %v5117_v37 = vld [vmem:[%s9098_s9 + $0x668] sm:$0xff] }
 0x438   : > { %4992 = vst [vmem:[%s10485_s20 + $0x1190] sm:$0xff] %v4991_v38  ;;  %v5119_v38 = vld [vmem:[%s9098_s9 + $0x670] sm:$0xff] }
 0x439   : > { %4994 = vst [vmem:[%s10485_s20 + $0x1198] sm:$0xff] %v4993_v39  ;;  %v5121_v39 = vld [vmem:[%s9098_s9 + $0x678] sm:$0xff] }
 0x43a   : > { %4996 = vst [vmem:[%s10485_s20 + $0x1200] sm:$0xff] %v4995_v40  ;;  %v5123_v40 = vld [vmem:[%s9098_s9 + $0x680] sm:$0xff] }
 0x43b   : > { %4998 = vst [vmem:[%s10485_s20 + $0x1208] sm:$0xff] %v4997_v41  ;;  %v5125_v41 = vld [vmem:[%s9098_s9 + $0x688] sm:$0xff] }
 0x43c   : > { %5000 = vst [vmem:[%s10485_s20 + $0x1210] sm:$0xff] %v4999_v42  ;;  %v5127_v42 = vld [vmem:[%s9098_s9 + $0x690] sm:$0xff] }
 0x43d   : > { %5002 = vst [vmem:[%s10485_s20 + $0x1218] sm:$0xff] %v5001_v43  ;;  %v5129_v43 = vld [vmem:[%s9098_s9 + $0x698] sm:$0xff] }
 0x43e   : > { %5004 = vst [vmem:[%s10485_s20 + $0x1280] sm:$0xff] %v5003_v44  ;;  %v5131_v44 = vld [vmem:[%s9098_s9 + $0x6a0] sm:$0xff] }
 0x43f   : > { %5006 = vst [vmem:[%s10485_s20 + $0x1288] sm:$0xff] %v5005_v45  ;;  %v5133_v45 = vld [vmem:[%s9098_s9 + $0x6a8] sm:$0xff] }
 0x440   : > { %5008 = vst [vmem:[%s10485_s20 + $0x1290] sm:$0xff] %v5007_v46  ;;  %v5135_v46 = vld [vmem:[%s9098_s9 + $0x6b0] sm:$0xff] }
 0x441   : > { %5010 = vst [vmem:[%s10485_s20 + $0x1298] sm:$0xff] %v5009_v47  ;;  %v5137_v47 = vld [vmem:[%s9098_s9 + $0x6b8] sm:$0xff] }
 0x442   : > { %5012 = vst [vmem:[%s10485_s20 + $0x1300] sm:$0xff] %v5011_v48  ;;  %v5139_v48 = vld [vmem:[%s9098_s9 + $0x6c0] sm:$0xff] }
 0x443   : > { %5014 = vst [vmem:[%s10485_s20 + $0x1308] sm:$0xff] %v5013_v49  ;;  %v5141_v49 = vld [vmem:[%s9098_s9 + $0x6c8] sm:$0xff] }
 0x444   : > { %5016 = vst [vmem:[%s10485_s20 + $0x1310] sm:$0xff] %v5015_v50  ;;  %v5143_v50 = vld [vmem:[%s9098_s9 + $0x6d0] sm:$0xff] }
 0x445   : > { %5018 = vst [vmem:[%s10485_s20 + $0x1318] sm:$0xff] %v5017_v51  ;;  %v5145_v51 = vld [vmem:[%s9098_s9 + $0x6d8] sm:$0xff] }
 0x446   : > { %5020 = vst [vmem:[%s10485_s20 + $0x1380] sm:$0xff] %v5019_v52  ;;  %v5147_v52 = vld [vmem:[%s9098_s9 + $0x6e0] sm:$0xff] }
 0x447   : > { %5022 = vst [vmem:[%s10485_s20 + $0x1388] sm:$0xff] %v5021_v53  ;;  %v5149_v53 = vld [vmem:[%s9098_s9 + $0x6e8] sm:$0xff] }
 0x448   : > { %5024 = vst [vmem:[%s10485_s20 + $0x1390] sm:$0xff] %v5023_v54  ;;  %v5151_v54 = vld [vmem:[%s9098_s9 + $0x6f0] sm:$0xff] }
 0x449   : > { %5026 = vst [vmem:[%s10485_s20 + $0x1398] sm:$0xff] %v5025_v55  ;;  %v5153_v55 = vld [vmem:[%s9098_s9 + $0x6f8] sm:$0xff] }
 0x44a   : > { %5028 = vst [vmem:[%s10485_s20 + $0x1400] sm:$0xff] %v5027_v56  ;;  %v5155_v56 = vld [vmem:[%s9098_s9 + $0x700] sm:$0xff] }
 0x44b   : > { %5030 = vst [vmem:[%s10485_s20 + $0x1408] sm:$0xff] %v5029_v57  ;;  %v5157_v57 = vld [vmem:[%s9098_s9 + $0x708] sm:$0xff] }
 0x44c   : > { %5032 = vst [vmem:[%s10485_s20 + $0x1410] sm:$0xff] %v5031_v58  ;;  %v5159_v58 = vld [vmem:[%s9098_s9 + $0x710] sm:$0xff] }
 0x44d   : > { %5034 = vst [vmem:[%s10485_s20 + $0x1418] sm:$0xff] %v5033_v59  ;;  %v5161_v59 = vld [vmem:[%s9098_s9 + $0x718] sm:$0xff] }
 0x44e   : > { %5036 = vst [vmem:[%s10485_s20 + $0x1480] sm:$0xff] %v5035_v60  ;;  %v5163_v60 = vld [vmem:[%s9098_s9 + $0x720] sm:$0xff] }
 0x44f   : > { %5038 = vst [vmem:[%s10485_s20 + $0x1488] sm:$0xff] %v5037_v61  ;;  %v5165_v61 = vld [vmem:[%s9098_s9 + $0x728] sm:$0xff] }
 0x450   : > { %5040 = vst [vmem:[%s10485_s20 + $0x1490] sm:$0xff] %v5039_v62  ;;  %v5167_v62 = vld [vmem:[%s9098_s9 + $0x730] sm:$0xff] }
 0x451   : > { %5042 = vst [vmem:[%s10485_s20 + $0x1498] sm:$0xff] %v5041_v63  ;;  %v5169_v63 = vld [vmem:[%s9098_s9 + $0x738] sm:$0xff] }
 0x452   : > { %5044 = vst [vmem:[%s10485_s20 + $0x1500] sm:$0xff] %v5043_v0  ;;  %v5171_v0 = vld [vmem:[%s9098_s9 + $0x740] sm:$0xff] }
 0x453   : > { %5046 = vst [vmem:[%s10485_s20 + $0x1508] sm:$0xff] %v5045_v1  ;;  %v5173_v1 = vld [vmem:[%s9098_s9 + $0x748] sm:$0xff] }
 0x454   : > { %5048 = vst [vmem:[%s10485_s20 + $0x1510] sm:$0xff] %v5047_v2  ;;  %v5175_v2 = vld [vmem:[%s9098_s9 + $0x750] sm:$0xff] }
 0x455   : > { %5050 = vst [vmem:[%s10485_s20 + $0x1518] sm:$0xff] %v5049_v3  ;;  %v5177_v3 = vld [vmem:[%s9098_s9 + $0x758] sm:$0xff] }
 0x456   : > { %5052 = vst [vmem:[%s10485_s20 + $0x1580] sm:$0xff] %v5051_v4  ;;  %v5179_v4 = vld [vmem:[%s9098_s9 + $0x760] sm:$0xff] }
 0x457   : > { %5054 = vst [vmem:[%s10485_s20 + $0x1588] sm:$0xff] %v5053_v5  ;;  %v5181_v5 = vld [vmem:[%s9098_s9 + $0x768] sm:$0xff] }
 0x458   : > { %5056 = vst [vmem:[%s10485_s20 + $0x1590] sm:$0xff] %v5055_v6  ;;  %v5183_v6 = vld [vmem:[%s9098_s9 + $0x770] sm:$0xff] }
 0x459   : > { %5058 = vst [vmem:[%s10485_s20 + $0x1598] sm:$0xff] %v5057_v7  ;;  %v5185_v7 = vld [vmem:[%s9098_s9 + $0x778] sm:$0xff] }
 0x45a   : > { %5060 = vst [vmem:[%s10485_s20 + $0x1600] sm:$0xff] %v5059_v8  ;;  %v5187_v8 = vld [vmem:[%s9098_s9 + $0x780] sm:$0xff] }
 0x45b   : > { %5062 = vst [vmem:[%s10485_s20 + $0x1608] sm:$0xff] %v5061_v9  ;;  %v5189_v9 = vld [vmem:[%s9098_s9 + $0x788] sm:$0xff] }
 0x45c   : > { %5064 = vst [vmem:[%s10485_s20 + $0x1610] sm:$0xff] %v5063_v10  ;;  %v5191_v10 = vld [vmem:[%s9098_s9 + $0x790] sm:$0xff] }
 0x45d   : > { %5066 = vst [vmem:[%s10485_s20 + $0x1618] sm:$0xff] %v5065_v11  ;;  %v5193_v11 = vld [vmem:[%s9098_s9 + $0x798] sm:$0xff] }
 0x45e   : > { %5068 = vst [vmem:[%s10485_s20 + $0x1680] sm:$0xff] %v5067_v12  ;;  %v5195_v12 = vld [vmem:[%s9098_s9 + $0x7a0] sm:$0xff] }
 0x45f   : > { %5070 = vst [vmem:[%s10485_s20 + $0x1688] sm:$0xff] %v5069_v13  ;;  %v5197_v13 = vld [vmem:[%s9098_s9 + $0x7a8] sm:$0xff] }
 0x460   : > { %5072 = vst [vmem:[%s10485_s20 + $0x1690] sm:$0xff] %v5071_v14  ;;  %v5199_v14 = vld [vmem:[%s9098_s9 + $0x7b0] sm:$0xff] }
 0x461   : > { %5074 = vst [vmem:[%s10485_s20 + $0x1698] sm:$0xff] %v5073_v15  ;;  %v5201_v15 = vld [vmem:[%s9098_s9 + $0x7b8] sm:$0xff] }
 0x462   : > { %5076 = vst [vmem:[%s10485_s20 + $0x1700] sm:$0xff] %v5075_v16  ;;  %v5203_v16 = vld [vmem:[%s9098_s9 + $0x7c0] sm:$0xff] }
 0x463   : > { %5078 = vst [vmem:[%s10485_s20 + $0x1708] sm:$0xff] %v5077_v17  ;;  %v5205_v17 = vld [vmem:[%s9098_s9 + $0x7c8] sm:$0xff] }
 0x464   : > { %5080 = vst [vmem:[%s10485_s20 + $0x1710] sm:$0xff] %v5079_v18  ;;  %v5207_v18 = vld [vmem:[%s9098_s9 + $0x7d0] sm:$0xff] }
 0x465   : > { %5082 = vst [vmem:[%s10485_s20 + $0x1718] sm:$0xff] %v5081_v19  ;;  %v5209_v19 = vld [vmem:[%s9098_s9 + $0x7d8] sm:$0xff] }
 0x466   : > { %5084 = vst [vmem:[%s10485_s20 + $0x1780] sm:$0xff] %v5083_v20  ;;  %v5211_v20 = vld [vmem:[%s9098_s9 + $0x7e0] sm:$0xff] }
 0x467   : > { %5086 = vst [vmem:[%s10485_s20 + $0x1788] sm:$0xff] %v5085_v21  ;;  %v5213_v21 = vld [vmem:[%s9098_s9 + $0x7e8] sm:$0xff] }
 0x468   : > { %5088 = vst [vmem:[%s10485_s20 + $0x1790] sm:$0xff] %v5087_v22  ;;  %v5215_v22 = vld [vmem:[%s9098_s9 + $0x7f0] sm:$0xff] }
 0x469   : > { %5090 = vst [vmem:[%s10485_s20 + $0x1798] sm:$0xff] %v5089_v23  ;;  %v5217_v23 = vld [vmem:[%s9098_s9 + $0x7f8] sm:$0xff] }
 0x46a   : > { %5092 = vst [vmem:[%s10485_s20 + $0x1800] sm:$0xff] %v5091_v24  ;;  %v5219_v24 = vld [vmem:[%s9098_s9 + $0x800] sm:$0xff] }
 0x46b   : > { %5094 = vst [vmem:[%s10485_s20 + $0x1808] sm:$0xff] %v5093_v25  ;;  %v5221_v25 = vld [vmem:[%s9098_s9 + $0x808] sm:$0xff] }
 0x46c   : > { %5096 = vst [vmem:[%s10485_s20 + $0x1810] sm:$0xff] %v5095_v26  ;;  %v5223_v26 = vld [vmem:[%s9098_s9 + $0x810] sm:$0xff] }
 0x46d   : > { %5098 = vst [vmem:[%s10485_s20 + $0x1818] sm:$0xff] %v5097_v27  ;;  %v5225_v27 = vld [vmem:[%s9098_s9 + $0x818] sm:$0xff] }
 0x46e   : > { %5100 = vst [vmem:[%s10485_s20 + $0x1880] sm:$0xff] %v5099_v28  ;;  %v5227_v28 = vld [vmem:[%s9098_s9 + $0x820] sm:$0xff] }
 0x46f   : > { %5102 = vst [vmem:[%s10485_s20 + $0x1888] sm:$0xff] %v5101_v29  ;;  %v5229_v29 = vld [vmem:[%s9098_s9 + $0x828] sm:$0xff] }
 0x470   : > { %5104 = vst [vmem:[%s10485_s20 + $0x1890] sm:$0xff] %v5103_v30  ;;  %v5231_v30 = vld [vmem:[%s9098_s9 + $0x830] sm:$0xff] }
 0x471   : > { %5106 = vst [vmem:[%s10485_s20 + $0x1898] sm:$0xff] %v5105_v31  ;;  %v5233_v31 = vld [vmem:[%s9098_s9 + $0x838] sm:$0xff] }
 0x472   : > { %5108 = vst [vmem:[%s10485_s20 + $0x1900] sm:$0xff] %v5107_v32  ;;  %v5235_v32 = vld [vmem:[%s9098_s9 + $0x840] sm:$0xff] }
 0x473   : > { %5110 = vst [vmem:[%s10485_s20 + $0x1908] sm:$0xff] %v5109_v33  ;;  %v5237_v33 = vld [vmem:[%s9098_s9 + $0x848] sm:$0xff] }
 0x474   : > { %5112 = vst [vmem:[%s10485_s20 + $0x1910] sm:$0xff] %v5111_v34  ;;  %v5239_v34 = vld [vmem:[%s9098_s9 + $0x850] sm:$0xff] }
 0x475   : > { %5114 = vst [vmem:[%s10485_s20 + $0x1918] sm:$0xff] %v5113_v35  ;;  %v5241_v35 = vld [vmem:[%s9098_s9 + $0x858] sm:$0xff] }
 0x476   : > { %5116 = vst [vmem:[%s10485_s20 + $0x1980] sm:$0xff] %v5115_v36  ;;  %v5243_v36 = vld [vmem:[%s9098_s9 + $0x860] sm:$0xff] }
 0x477   : > { %5118 = vst [vmem:[%s10485_s20 + $0x1988] sm:$0xff] %v5117_v37  ;;  %v5245_v37 = vld [vmem:[%s9098_s9 + $0x868] sm:$0xff] }
 0x478   : > { %5120 = vst [vmem:[%s10485_s20 + $0x1990] sm:$0xff] %v5119_v38  ;;  %v5247_v38 = vld [vmem:[%s9098_s9 + $0x870] sm:$0xff] }
 0x479   : > { %5122 = vst [vmem:[%s10485_s20 + $0x1998] sm:$0xff] %v5121_v39  ;;  %v5249_v39 = vld [vmem:[%s9098_s9 + $0x878] sm:$0xff] }
 0x47a   : > { %5124 = vst [vmem:[%s10485_s20 + $0x1a00] sm:$0xff] %v5123_v40  ;;  %v5251_v40 = vld [vmem:[%s9098_s9 + $0x880] sm:$0xff] }
 0x47b   : > { %5126 = vst [vmem:[%s10485_s20 + $0x1a08] sm:$0xff] %v5125_v41  ;;  %v5253_v41 = vld [vmem:[%s9098_s9 + $0x888] sm:$0xff] }
 0x47c   : > { %5128 = vst [vmem:[%s10485_s20 + $0x1a10] sm:$0xff] %v5127_v42  ;;  %v5255_v42 = vld [vmem:[%s9098_s9 + $0x890] sm:$0xff] }
 0x47d   : > { %5130 = vst [vmem:[%s10485_s20 + $0x1a18] sm:$0xff] %v5129_v43  ;;  %v5257_v43 = vld [vmem:[%s9098_s9 + $0x898] sm:$0xff] }
 0x47e   : > { %5132 = vst [vmem:[%s10485_s20 + $0x1a80] sm:$0xff] %v5131_v44  ;;  %v5259_v44 = vld [vmem:[%s9098_s9 + $0x8a0] sm:$0xff] }
 0x47f   : > { %5134 = vst [vmem:[%s10485_s20 + $0x1a88] sm:$0xff] %v5133_v45  ;;  %v5261_v45 = vld [vmem:[%s9098_s9 + $0x8a8] sm:$0xff] }
 0x480   : > { %5136 = vst [vmem:[%s10485_s20 + $0x1a90] sm:$0xff] %v5135_v46  ;;  %v5263_v46 = vld [vmem:[%s9098_s9 + $0x8b0] sm:$0xff] }
 0x481   : > { %5138 = vst [vmem:[%s10485_s20 + $0x1a98] sm:$0xff] %v5137_v47  ;;  %v5265_v47 = vld [vmem:[%s9098_s9 + $0x8b8] sm:$0xff] }
 0x482   : > { %5140 = vst [vmem:[%s10485_s20 + $0x1b00] sm:$0xff] %v5139_v48  ;;  %v5267_v48 = vld [vmem:[%s9098_s9 + $0x8c0] sm:$0xff] }
 0x483   : > { %5142 = vst [vmem:[%s10485_s20 + $0x1b08] sm:$0xff] %v5141_v49  ;;  %v5269_v49 = vld [vmem:[%s9098_s9 + $0x8c8] sm:$0xff] }
 0x484   : > { %5144 = vst [vmem:[%s10485_s20 + $0x1b10] sm:$0xff] %v5143_v50  ;;  %v5271_v50 = vld [vmem:[%s9098_s9 + $0x8d0] sm:$0xff] }
 0x485   : > { %5146 = vst [vmem:[%s10485_s20 + $0x1b18] sm:$0xff] %v5145_v51  ;;  %v5273_v51 = vld [vmem:[%s9098_s9 + $0x8d8] sm:$0xff] }
 0x486   : > { %5148 = vst [vmem:[%s10485_s20 + $0x1b80] sm:$0xff] %v5147_v52  ;;  %v5275_v52 = vld [vmem:[%s9098_s9 + $0x8e0] sm:$0xff] }
 0x487   : > { %5150 = vst [vmem:[%s10485_s20 + $0x1b88] sm:$0xff] %v5149_v53  ;;  %v5277_v53 = vld [vmem:[%s9098_s9 + $0x8e8] sm:$0xff] }
 0x488   : > { %5152 = vst [vmem:[%s10485_s20 + $0x1b90] sm:$0xff] %v5151_v54  ;;  %v5279_v54 = vld [vmem:[%s9098_s9 + $0x8f0] sm:$0xff] }
 0x489   : > { %5154 = vst [vmem:[%s10485_s20 + $0x1b98] sm:$0xff] %v5153_v55  ;;  %v5281_v55 = vld [vmem:[%s9098_s9 + $0x8f8] sm:$0xff] }
 0x48a   : > { %5156 = vst [vmem:[%s10485_s20 + $0x1c00] sm:$0xff] %v5155_v56  ;;  %v5283_v56 = vld [vmem:[%s9098_s9 + $0x900] sm:$0xff] }
 0x48b   : > { %5158 = vst [vmem:[%s10485_s20 + $0x1c08] sm:$0xff] %v5157_v57  ;;  %v5285_v57 = vld [vmem:[%s9098_s9 + $0x908] sm:$0xff] }
 0x48c   : > { %5160 = vst [vmem:[%s10485_s20 + $0x1c10] sm:$0xff] %v5159_v58  ;;  %v5287_v58 = vld [vmem:[%s9098_s9 + $0x910] sm:$0xff] }
 0x48d   : > { %5162 = vst [vmem:[%s10485_s20 + $0x1c18] sm:$0xff] %v5161_v59  ;;  %v5289_v59 = vld [vmem:[%s9098_s9 + $0x918] sm:$0xff] }
 0x48e   : > { %5164 = vst [vmem:[%s10485_s20 + $0x1c80] sm:$0xff] %v5163_v60  ;;  %v5291_v60 = vld [vmem:[%s9098_s9 + $0x920] sm:$0xff] }
 0x48f   : > { %5166 = vst [vmem:[%s10485_s20 + $0x1c88] sm:$0xff] %v5165_v61  ;;  %v5293_v61 = vld [vmem:[%s9098_s9 + $0x928] sm:$0xff] }
 0x490   : > { %5168 = vst [vmem:[%s10485_s20 + $0x1c90] sm:$0xff] %v5167_v62  ;;  %v5295_v62 = vld [vmem:[%s9098_s9 + $0x930] sm:$0xff] }
 0x491   : > { %5170 = vst [vmem:[%s10485_s20 + $0x1c98] sm:$0xff] %v5169_v63  ;;  %v5297_v63 = vld [vmem:[%s9098_s9 + $0x938] sm:$0xff] }
 0x492   : > { %5172 = vst [vmem:[%s10485_s20 + $0x1d00] sm:$0xff] %v5171_v0  ;;  %v5299_v0 = vld [vmem:[%s9098_s9 + $0x940] sm:$0xff] }
 0x493   : > { %5174 = vst [vmem:[%s10485_s20 + $0x1d08] sm:$0xff] %v5173_v1  ;;  %v5301_v1 = vld [vmem:[%s9098_s9 + $0x948] sm:$0xff] }
 0x494   : > { %5176 = vst [vmem:[%s10485_s20 + $0x1d10] sm:$0xff] %v5175_v2  ;;  %v5303_v2 = vld [vmem:[%s9098_s9 + $0x950] sm:$0xff] }
 0x495   : > { %5178 = vst [vmem:[%s10485_s20 + $0x1d18] sm:$0xff] %v5177_v3  ;;  %v5305_v3 = vld [vmem:[%s9098_s9 + $0x958] sm:$0xff] }
 0x496   : > { %5180 = vst [vmem:[%s10485_s20 + $0x1d80] sm:$0xff] %v5179_v4  ;;  %v5307_v4 = vld [vmem:[%s9098_s9 + $0x960] sm:$0xff] }
 0x497   : > { %5182 = vst [vmem:[%s10485_s20 + $0x1d88] sm:$0xff] %v5181_v5  ;;  %v5309_v5 = vld [vmem:[%s9098_s9 + $0x968] sm:$0xff] }
 0x498   : > { %5184 = vst [vmem:[%s10485_s20 + $0x1d90] sm:$0xff] %v5183_v6  ;;  %v5311_v6 = vld [vmem:[%s9098_s9 + $0x970] sm:$0xff] }
 0x499   : > { %5186 = vst [vmem:[%s10485_s20 + $0x1d98] sm:$0xff] %v5185_v7  ;;  %v5313_v7 = vld [vmem:[%s9098_s9 + $0x978] sm:$0xff] }
 0x49a   : > { %5188 = vst [vmem:[%s10485_s20 + $0x1e00] sm:$0xff] %v5187_v8  ;;  %v5315_v8 = vld [vmem:[%s9098_s9 + $0x980] sm:$0xff] }
 0x49b   : > { %5190 = vst [vmem:[%s10485_s20 + $0x1e08] sm:$0xff] %v5189_v9  ;;  %v5317_v9 = vld [vmem:[%s9098_s9 + $0x988] sm:$0xff] }
 0x49c   : > { %5192 = vst [vmem:[%s10485_s20 + $0x1e10] sm:$0xff] %v5191_v10  ;;  %v5319_v10 = vld [vmem:[%s9098_s9 + $0x990] sm:$0xff] }
 0x49d   : > { %5194 = vst [vmem:[%s10485_s20 + $0x1e18] sm:$0xff] %v5193_v11  ;;  %v5321_v11 = vld [vmem:[%s9098_s9 + $0x998] sm:$0xff] }
 0x49e   : > { %5196 = vst [vmem:[%s10485_s20 + $0x1e80] sm:$0xff] %v5195_v12  ;;  %v5323_v12 = vld [vmem:[%s9098_s9 + $0x9a0] sm:$0xff] }
 0x49f   : > { %5198 = vst [vmem:[%s10485_s20 + $0x1e88] sm:$0xff] %v5197_v13  ;;  %v5325_v13 = vld [vmem:[%s9098_s9 + $0x9a8] sm:$0xff] }
 0x4a0   : > { %5200 = vst [vmem:[%s10485_s20 + $0x1e90] sm:$0xff] %v5199_v14  ;;  %v5327_v14 = vld [vmem:[%s9098_s9 + $0x9b0] sm:$0xff] }
 0x4a1   : > { %5202 = vst [vmem:[%s10485_s20 + $0x1e98] sm:$0xff] %v5201_v15  ;;  %v5329_v15 = vld [vmem:[%s9098_s9 + $0x9b8] sm:$0xff] }
 0x4a2   : > { %5204 = vst [vmem:[%s10485_s20 + $0x1f00] sm:$0xff] %v5203_v16  ;;  %v5331_v16 = vld [vmem:[%s9098_s9 + $0x9c0] sm:$0xff] }
 0x4a3   : > { %5206 = vst [vmem:[%s10485_s20 + $0x1f08] sm:$0xff] %v5205_v17  ;;  %v5333_v17 = vld [vmem:[%s9098_s9 + $0x9c8] sm:$0xff] }
 0x4a4   : > { %5208 = vst [vmem:[%s10485_s20 + $0x1f10] sm:$0xff] %v5207_v18  ;;  %v5335_v18 = vld [vmem:[%s9098_s9 + $0x9d0] sm:$0xff] }
 0x4a5   : > { %5210 = vst [vmem:[%s10485_s20 + $0x1f18] sm:$0xff] %v5209_v19  ;;  %v5337_v19 = vld [vmem:[%s9098_s9 + $0x9d8] sm:$0xff] }
 0x4a6   : > { %5212 = vst [vmem:[%s10485_s20 + $0x1f80] sm:$0xff] %v5211_v20  ;;  %v5339_v20 = vld [vmem:[%s9098_s9 + $0x9e0] sm:$0xff] }
 0x4a7   : > { %5214 = vst [vmem:[%s10485_s20 + $0x1f88] sm:$0xff] %v5213_v21  ;;  %v5341_v21 = vld [vmem:[%s9098_s9 + $0x9e8] sm:$0xff] }
 0x4a8   : > { %5216 = vst [vmem:[%s10485_s20 + $0x1f90] sm:$0xff] %v5215_v22  ;;  %v5343_v22 = vld [vmem:[%s9098_s9 + $0x9f0] sm:$0xff] }
 0x4a9   : > { %5218 = vst [vmem:[%s10485_s20 + $0x1f98] sm:$0xff] %v5217_v23  ;;  %v5345_v23 = vld [vmem:[%s9098_s9 + $0x9f8] sm:$0xff] }
 0x4aa   : > { %5220 = vst [vmem:[%s10485_s20 + $0x2000] sm:$0xff] %v5219_v24  ;;  %v5347_v24 = vld [vmem:[%s9098_s9 + $0xa00] sm:$0xff] }
 0x4ab   : > { %5222 = vst [vmem:[%s10485_s20 + $0x2008] sm:$0xff] %v5221_v25  ;;  %v5349_v25 = vld [vmem:[%s9098_s9 + $0xa08] sm:$0xff] }
 0x4ac   : > { %5224 = vst [vmem:[%s10485_s20 + $0x2010] sm:$0xff] %v5223_v26  ;;  %v5351_v26 = vld [vmem:[%s9098_s9 + $0xa10] sm:$0xff] }
 0x4ad   : > { %5226 = vst [vmem:[%s10485_s20 + $0x2018] sm:$0xff] %v5225_v27  ;;  %v5353_v27 = vld [vmem:[%s9098_s9 + $0xa18] sm:$0xff] }
 0x4ae   : > { %5228 = vst [vmem:[%s10485_s20 + $0x2080] sm:$0xff] %v5227_v28  ;;  %v5355_v28 = vld [vmem:[%s9098_s9 + $0xa20] sm:$0xff] }
 0x4af   : > { %5230 = vst [vmem:[%s10485_s20 + $0x2088] sm:$0xff] %v5229_v29  ;;  %v5357_v29 = vld [vmem:[%s9098_s9 + $0xa28] sm:$0xff] }
 0x4b0   : > { %5232 = vst [vmem:[%s10485_s20 + $0x2090] sm:$0xff] %v5231_v30  ;;  %v5359_v30 = vld [vmem:[%s9098_s9 + $0xa30] sm:$0xff] }
 0x4b1   : > { %5234 = vst [vmem:[%s10485_s20 + $0x2098] sm:$0xff] %v5233_v31  ;;  %v5361_v31 = vld [vmem:[%s9098_s9 + $0xa38] sm:$0xff] }
 0x4b2   : > { %5236 = vst [vmem:[%s10485_s20 + $0x2100] sm:$0xff] %v5235_v32  ;;  %v5363_v32 = vld [vmem:[%s9098_s9 + $0xa40] sm:$0xff] }
 0x4b3   : > { %5238 = vst [vmem:[%s10485_s20 + $0x2108] sm:$0xff] %v5237_v33  ;;  %v5365_v33 = vld [vmem:[%s9098_s9 + $0xa48] sm:$0xff] }
 0x4b4   : > { %5240 = vst [vmem:[%s10485_s20 + $0x2110] sm:$0xff] %v5239_v34  ;;  %v5367_v34 = vld [vmem:[%s9098_s9 + $0xa50] sm:$0xff] }
 0x4b5   : > { %5242 = vst [vmem:[%s10485_s20 + $0x2118] sm:$0xff] %v5241_v35  ;;  %v5369_v35 = vld [vmem:[%s9098_s9 + $0xa58] sm:$0xff] }
 0x4b6   : > { %5244 = vst [vmem:[%s10485_s20 + $0x2180] sm:$0xff] %v5243_v36  ;;  %v5371_v36 = vld [vmem:[%s9098_s9 + $0xa60] sm:$0xff] }
 0x4b7   : > { %5246 = vst [vmem:[%s10485_s20 + $0x2188] sm:$0xff] %v5245_v37  ;;  %v5373_v37 = vld [vmem:[%s9098_s9 + $0xa68] sm:$0xff] }
 0x4b8   : > { %5248 = vst [vmem:[%s10485_s20 + $0x2190] sm:$0xff] %v5247_v38  ;;  %v5375_v38 = vld [vmem:[%s9098_s9 + $0xa70] sm:$0xff] }
 0x4b9   : > { %5250 = vst [vmem:[%s10485_s20 + $0x2198] sm:$0xff] %v5249_v39  ;;  %v5377_v39 = vld [vmem:[%s9098_s9 + $0xa78] sm:$0xff] }
 0x4ba   : > { %5252 = vst [vmem:[%s10485_s20 + $0x2200] sm:$0xff] %v5251_v40  ;;  %v5379_v40 = vld [vmem:[%s9098_s9 + $0xa80] sm:$0xff] }
 0x4bb   : > { %5254 = vst [vmem:[%s10485_s20 + $0x2208] sm:$0xff] %v5253_v41  ;;  %v5381_v41 = vld [vmem:[%s9098_s9 + $0xa88] sm:$0xff] }
 0x4bc   : > { %5256 = vst [vmem:[%s10485_s20 + $0x2210] sm:$0xff] %v5255_v42  ;;  %v5383_v42 = vld [vmem:[%s9098_s9 + $0xa90] sm:$0xff] }
 0x4bd   : > { %5258 = vst [vmem:[%s10485_s20 + $0x2218] sm:$0xff] %v5257_v43  ;;  %v5385_v43 = vld [vmem:[%s9098_s9 + $0xa98] sm:$0xff] }
 0x4be   : > { %5260 = vst [vmem:[%s10485_s20 + $0x2280] sm:$0xff] %v5259_v44  ;;  %v5387_v44 = vld [vmem:[%s9098_s9 + $0xaa0] sm:$0xff] }
 0x4bf   : > { %5262 = vst [vmem:[%s10485_s20 + $0x2288] sm:$0xff] %v5261_v45  ;;  %v5389_v45 = vld [vmem:[%s9098_s9 + $0xaa8] sm:$0xff] }
 0x4c0   : > { %5264 = vst [vmem:[%s10485_s20 + $0x2290] sm:$0xff] %v5263_v46  ;;  %v5391_v46 = vld [vmem:[%s9098_s9 + $0xab0] sm:$0xff] }
 0x4c1   : > { %5266 = vst [vmem:[%s10485_s20 + $0x2298] sm:$0xff] %v5265_v47  ;;  %v5393_v47 = vld [vmem:[%s9098_s9 + $0xab8] sm:$0xff] }
 0x4c2   : > { %5268 = vst [vmem:[%s10485_s20 + $0x2300] sm:$0xff] %v5267_v48  ;;  %v5395_v48 = vld [vmem:[%s9098_s9 + $0xac0] sm:$0xff] }
 0x4c3   : > { %5270 = vst [vmem:[%s10485_s20 + $0x2308] sm:$0xff] %v5269_v49  ;;  %v5397_v49 = vld [vmem:[%s9098_s9 + $0xac8] sm:$0xff] }
 0x4c4   : > { %5272 = vst [vmem:[%s10485_s20 + $0x2310] sm:$0xff] %v5271_v50  ;;  %v5399_v50 = vld [vmem:[%s9098_s9 + $0xad0] sm:$0xff] }
 0x4c5   : > { %5274 = vst [vmem:[%s10485_s20 + $0x2318] sm:$0xff] %v5273_v51  ;;  %v5401_v51 = vld [vmem:[%s9098_s9 + $0xad8] sm:$0xff] }
 0x4c6   : > { %5276 = vst [vmem:[%s10485_s20 + $0x2380] sm:$0xff] %v5275_v52  ;;  %v5403_v52 = vld [vmem:[%s9098_s9 + $0xae0] sm:$0xff] }
 0x4c7   : > { %5278 = vst [vmem:[%s10485_s20 + $0x2388] sm:$0xff] %v5277_v53  ;;  %v5405_v53 = vld [vmem:[%s9098_s9 + $0xae8] sm:$0xff] }
 0x4c8   : > { %5280 = vst [vmem:[%s10485_s20 + $0x2390] sm:$0xff] %v5279_v54  ;;  %v5407_v54 = vld [vmem:[%s9098_s9 + $0xaf0] sm:$0xff] }
 0x4c9   : > { %5282 = vst [vmem:[%s10485_s20 + $0x2398] sm:$0xff] %v5281_v55  ;;  %v5409_v55 = vld [vmem:[%s9098_s9 + $0xaf8] sm:$0xff] }
 0x4ca   : > { %5284 = vst [vmem:[%s10485_s20 + $0x2400] sm:$0xff] %v5283_v56  ;;  %v5411_v56 = vld [vmem:[%s9098_s9 + $0xb00] sm:$0xff] }
 0x4cb   : > { %5286 = vst [vmem:[%s10485_s20 + $0x2408] sm:$0xff] %v5285_v57  ;;  %v5413_v57 = vld [vmem:[%s9098_s9 + $0xb08] sm:$0xff] }
 0x4cc   : > { %5288 = vst [vmem:[%s10485_s20 + $0x2410] sm:$0xff] %v5287_v58  ;;  %v5415_v58 = vld [vmem:[%s9098_s9 + $0xb10] sm:$0xff] }
 0x4cd   : > { %5290 = vst [vmem:[%s10485_s20 + $0x2418] sm:$0xff] %v5289_v59  ;;  %v5417_v59 = vld [vmem:[%s9098_s9 + $0xb18] sm:$0xff] }
 0x4ce   : > { %5292 = vst [vmem:[%s10485_s20 + $0x2480] sm:$0xff] %v5291_v60  ;;  %v5419_v60 = vld [vmem:[%s9098_s9 + $0xb20] sm:$0xff] }
 0x4cf   : > { %5294 = vst [vmem:[%s10485_s20 + $0x2488] sm:$0xff] %v5293_v61  ;;  %v5421_v61 = vld [vmem:[%s9098_s9 + $0xb28] sm:$0xff] }
 0x4d0   : > { %5296 = vst [vmem:[%s10485_s20 + $0x2490] sm:$0xff] %v5295_v62  ;;  %v5423_v62 = vld [vmem:[%s9098_s9 + $0xb30] sm:$0xff] }
 0x4d1   : > { %5298 = vst [vmem:[%s10485_s20 + $0x2498] sm:$0xff] %v5297_v63  ;;  %v5425_v63 = vld [vmem:[%s9098_s9 + $0xb38] sm:$0xff] }
 0x4d2   : > { %5300 = vst [vmem:[%s10485_s20 + $0x2500] sm:$0xff] %v5299_v0  ;;  %v5427_v0 = vld [vmem:[%s9098_s9 + $0xb40] sm:$0xff] }
 0x4d3   : > { %5302 = vst [vmem:[%s10485_s20 + $0x2508] sm:$0xff] %v5301_v1  ;;  %v5429_v1 = vld [vmem:[%s9098_s9 + $0xb48] sm:$0xff] }
 0x4d4   : > { %5304 = vst [vmem:[%s10485_s20 + $0x2510] sm:$0xff] %v5303_v2  ;;  %v5431_v2 = vld [vmem:[%s9098_s9 + $0xb50] sm:$0xff] }
 0x4d5   : > { %5306 = vst [vmem:[%s10485_s20 + $0x2518] sm:$0xff] %v5305_v3  ;;  %v5433_v3 = vld [vmem:[%s9098_s9 + $0xb58] sm:$0xff] }
 0x4d6   : > { %5308 = vst [vmem:[%s10485_s20 + $0x2580] sm:$0xff] %v5307_v4  ;;  %v5435_v4 = vld [vmem:[%s9098_s9 + $0xb60] sm:$0xff] }
 0x4d7   : > { %5310 = vst [vmem:[%s10485_s20 + $0x2588] sm:$0xff] %v5309_v5  ;;  %v5437_v5 = vld [vmem:[%s9098_s9 + $0xb68] sm:$0xff] }
 0x4d8   : > { %5312 = vst [vmem:[%s10485_s20 + $0x2590] sm:$0xff] %v5311_v6  ;;  %v5439_v6 = vld [vmem:[%s9098_s9 + $0xb70] sm:$0xff] }
 0x4d9   : > { %5314 = vst [vmem:[%s10485_s20 + $0x2598] sm:$0xff] %v5313_v7  ;;  %v5441_v7 = vld [vmem:[%s9098_s9 + $0xb78] sm:$0xff] }
 0x4da   : > { %5316 = vst [vmem:[%s10485_s20 + $0x2600] sm:$0xff] %v5315_v8  ;;  %v5443_v8 = vld [vmem:[%s9098_s9 + $0xb80] sm:$0xff] }
 0x4db   : > { %5318 = vst [vmem:[%s10485_s20 + $0x2608] sm:$0xff] %v5317_v9  ;;  %v5445_v9 = vld [vmem:[%s9098_s9 + $0xb88] sm:$0xff] }
 0x4dc   : > { %5320 = vst [vmem:[%s10485_s20 + $0x2610] sm:$0xff] %v5319_v10  ;;  %v5447_v10 = vld [vmem:[%s9098_s9 + $0xb90] sm:$0xff] }
 0x4dd   : > { %5322 = vst [vmem:[%s10485_s20 + $0x2618] sm:$0xff] %v5321_v11  ;;  %v5449_v11 = vld [vmem:[%s9098_s9 + $0xb98] sm:$0xff] }
 0x4de   : > { %5324 = vst [vmem:[%s10485_s20 + $0x2680] sm:$0xff] %v5323_v12  ;;  %v5451_v12 = vld [vmem:[%s9098_s9 + $0xba0] sm:$0xff] }
 0x4df   : > { %5326 = vst [vmem:[%s10485_s20 + $0x2688] sm:$0xff] %v5325_v13  ;;  %v5453_v13 = vld [vmem:[%s9098_s9 + $0xba8] sm:$0xff] }
 0x4e0   : > { %5328 = vst [vmem:[%s10485_s20 + $0x2690] sm:$0xff] %v5327_v14  ;;  %v5455_v14 = vld [vmem:[%s9098_s9 + $0xbb0] sm:$0xff] }
 0x4e1   : > { %5330 = vst [vmem:[%s10485_s20 + $0x2698] sm:$0xff] %v5329_v15  ;;  %v5457_v15 = vld [vmem:[%s9098_s9 + $0xbb8] sm:$0xff] }
 0x4e2   : > { %5332 = vst [vmem:[%s10485_s20 + $0x2700] sm:$0xff] %v5331_v16  ;;  %v5459_v16 = vld [vmem:[%s9098_s9 + $0xbc0] sm:$0xff] }
 0x4e3   : > { %5334 = vst [vmem:[%s10485_s20 + $0x2708] sm:$0xff] %v5333_v17  ;;  %v5461_v17 = vld [vmem:[%s9098_s9 + $0xbc8] sm:$0xff] }
 0x4e4   : > { %5336 = vst [vmem:[%s10485_s20 + $0x2710] sm:$0xff] %v5335_v18  ;;  %v5463_v18 = vld [vmem:[%s9098_s9 + $0xbd0] sm:$0xff] }
 0x4e5   : > { %5338 = vst [vmem:[%s10485_s20 + $0x2718] sm:$0xff] %v5337_v19  ;;  %v5465_v19 = vld [vmem:[%s9098_s9 + $0xbd8] sm:$0xff] }
 0x4e6   : > { %5340 = vst [vmem:[%s10485_s20 + $0x2780] sm:$0xff] %v5339_v20  ;;  %v5467_v20 = vld [vmem:[%s9098_s9 + $0xbe0] sm:$0xff] }
 0x4e7   : > { %5342 = vst [vmem:[%s10485_s20 + $0x2788] sm:$0xff] %v5341_v21  ;;  %v5469_v21 = vld [vmem:[%s9098_s9 + $0xbe8] sm:$0xff] }
 0x4e8   : > { %5344 = vst [vmem:[%s10485_s20 + $0x2790] sm:$0xff] %v5343_v22  ;;  %v5471_v22 = vld [vmem:[%s9098_s9 + $0xbf0] sm:$0xff] }
 0x4e9   : > { %5346 = vst [vmem:[%s10485_s20 + $0x2798] sm:$0xff] %v5345_v23  ;;  %v5473_v23 = vld [vmem:[%s9098_s9 + $0xbf8] sm:$0xff] }
 0x4ea   : > { %5348 = vst [vmem:[%s10485_s20 + $0x2800] sm:$0xff] %v5347_v24  ;;  %v5475_v24 = vld [vmem:[%s9098_s9 + $0xc00] sm:$0xff] }
 0x4eb   : > { %5350 = vst [vmem:[%s10485_s20 + $0x2808] sm:$0xff] %v5349_v25  ;;  %v5477_v25 = vld [vmem:[%s9098_s9 + $0xc08] sm:$0xff] }
 0x4ec   : > { %5352 = vst [vmem:[%s10485_s20 + $0x2810] sm:$0xff] %v5351_v26  ;;  %v5479_v26 = vld [vmem:[%s9098_s9 + $0xc10] sm:$0xff] }
 0x4ed   : > { %5354 = vst [vmem:[%s10485_s20 + $0x2818] sm:$0xff] %v5353_v27  ;;  %v5481_v27 = vld [vmem:[%s9098_s9 + $0xc18] sm:$0xff] }
 0x4ee   : > { %5356 = vst [vmem:[%s10485_s20 + $0x2880] sm:$0xff] %v5355_v28  ;;  %v5483_v28 = vld [vmem:[%s9098_s9 + $0xc20] sm:$0xff] }
 0x4ef   : > { %5358 = vst [vmem:[%s10485_s20 + $0x2888] sm:$0xff] %v5357_v29  ;;  %v5485_v29 = vld [vmem:[%s9098_s9 + $0xc28] sm:$0xff] }
 0x4f0   : > { %5360 = vst [vmem:[%s10485_s20 + $0x2890] sm:$0xff] %v5359_v30  ;;  %v5487_v30 = vld [vmem:[%s9098_s9 + $0xc30] sm:$0xff] }
 0x4f1   : > { %5362 = vst [vmem:[%s10485_s20 + $0x2898] sm:$0xff] %v5361_v31  ;;  %v5489_v31 = vld [vmem:[%s9098_s9 + $0xc38] sm:$0xff] }
 0x4f2   : > { %5364 = vst [vmem:[%s10485_s20 + $0x2900] sm:$0xff] %v5363_v32  ;;  %v5491_v32 = vld [vmem:[%s9098_s9 + $0xc40] sm:$0xff] }
 0x4f3   : > { %5366 = vst [vmem:[%s10485_s20 + $0x2908] sm:$0xff] %v5365_v33  ;;  %v5493_v33 = vld [vmem:[%s9098_s9 + $0xc48] sm:$0xff] }
 0x4f4   : > { %5368 = vst [vmem:[%s10485_s20 + $0x2910] sm:$0xff] %v5367_v34  ;;  %v5495_v34 = vld [vmem:[%s9098_s9 + $0xc50] sm:$0xff] }
 0x4f5   : > { %5370 = vst [vmem:[%s10485_s20 + $0x2918] sm:$0xff] %v5369_v35  ;;  %v5497_v35 = vld [vmem:[%s9098_s9 + $0xc58] sm:$0xff] }
 0x4f6   : > { %5372 = vst [vmem:[%s10485_s20 + $0x2980] sm:$0xff] %v5371_v36  ;;  %v5499_v36 = vld [vmem:[%s9098_s9 + $0xc60] sm:$0xff] }
 0x4f7   : > { %5374 = vst [vmem:[%s10485_s20 + $0x2988] sm:$0xff] %v5373_v37  ;;  %v5501_v37 = vld [vmem:[%s9098_s9 + $0xc68] sm:$0xff] }
 0x4f8   : > { %5376 = vst [vmem:[%s10485_s20 + $0x2990] sm:$0xff] %v5375_v38  ;;  %v5503_v38 = vld [vmem:[%s9098_s9 + $0xc70] sm:$0xff] }
 0x4f9   : > { %5378 = vst [vmem:[%s10485_s20 + $0x2998] sm:$0xff] %v5377_v39  ;;  %v5505_v39 = vld [vmem:[%s9098_s9 + $0xc78] sm:$0xff] }
 0x4fa   : > { %5380 = vst [vmem:[%s10485_s20 + $0x2a00] sm:$0xff] %v5379_v40 }
 0x4fb   : > { %5382 = vst [vmem:[%s10485_s20 + $0x2a08] sm:$0xff] %v5381_v41 }
 0x4fc   : > { %5384 = vst [vmem:[%s10485_s20 + $0x2a10] sm:$0xff] %v5383_v42 }
 0x4fd   : > { %5386 = vst [vmem:[%s10485_s20 + $0x2a18] sm:$0xff] %v5385_v43 }
 0x4fe   : > { %5388 = vst [vmem:[%s10485_s20 + $0x2a80] sm:$0xff] %v5387_v44 }
 0x4ff   : > { %5390 = vst [vmem:[%s10485_s20 + $0x2a88] sm:$0xff] %v5389_v45 }
 0x500   : > { %5392 = vst [vmem:[%s10485_s20 + $0x2a90] sm:$0xff] %v5391_v46 }
 0x501   : > { %5394 = vst [vmem:[%s10485_s20 + $0x2a98] sm:$0xff] %v5393_v47 }
 0x502   : > { %5396 = vst [vmem:[%s10485_s20 + $0x2b00] sm:$0xff] %v5395_v48 }
 0x503   : > { %5398 = vst [vmem:[%s10485_s20 + $0x2b08] sm:$0xff] %v5397_v49 }
 0x504   : > { %5400 = vst [vmem:[%s10485_s20 + $0x2b10] sm:$0xff] %v5399_v50 }
 0x505   : > { %5402 = vst [vmem:[%s10485_s20 + $0x2b18] sm:$0xff] %v5401_v51 }
 0x506   : > { %5404 = vst [vmem:[%s10485_s20 + $0x2b80] sm:$0xff] %v5403_v52 }
 0x507   : > { %5406 = vst [vmem:[%s10485_s20 + $0x2b88] sm:$0xff] %v5405_v53 }
 0x508   : > { %5408 = vst [vmem:[%s10485_s20 + $0x2b90] sm:$0xff] %v5407_v54 }
 0x509   : > { %5410 = vst [vmem:[%s10485_s20 + $0x2b98] sm:$0xff] %v5409_v55 }
 0x50a   : > { %5412 = vst [vmem:[%s10485_s20 + $0x2c00] sm:$0xff] %v5411_v56 }
 0x50b   : > { %5414 = vst [vmem:[%s10485_s20 + $0x2c08] sm:$0xff] %v5413_v57 }
 0x50c   : > { %5416 = vst [vmem:[%s10485_s20 + $0x2c10] sm:$0xff] %v5415_v58 }
 0x50d   : > { %5418 = vst [vmem:[%s10485_s20 + $0x2c18] sm:$0xff] %v5417_v59 }
 0x50e   : > { %5420 = vst [vmem:[%s10485_s20 + $0x2c80] sm:$0xff] %v5419_v60 }
 0x50f   : > { %5422 = vst [vmem:[%s10485_s20 + $0x2c88] sm:$0xff] %v5421_v61 }
 0x510   : > { %5424 = vst [vmem:[%s10485_s20 + $0x2c90] sm:$0xff] %v5423_v62 }
 0x511   : > { %5426 = vst [vmem:[%s10485_s20 + $0x2c98] sm:$0xff] %v5425_v63 }
 0x512   : > { %5428 = vst [vmem:[%s10485_s20 + $0x2d00] sm:$0xff] %v5427_v0 }
 0x513   : > { %5430 = vst [vmem:[%s10485_s20 + $0x2d08] sm:$0xff] %v5429_v1 }
 0x514   : > { %5432 = vst [vmem:[%s10485_s20 + $0x2d10] sm:$0xff] %v5431_v2 }
 0x515   : > { %5434 = vst [vmem:[%s10485_s20 + $0x2d18] sm:$0xff] %v5433_v3 }
 0x516   : > { %5436 = vst [vmem:[%s10485_s20 + $0x2d80] sm:$0xff] %v5435_v4 }
 0x517   : > { %5438 = vst [vmem:[%s10485_s20 + $0x2d88] sm:$0xff] %v5437_v5 }
 0x518   : > { %5440 = vst [vmem:[%s10485_s20 + $0x2d90] sm:$0xff] %v5439_v6 }
 0x519   : > { %5442 = vst [vmem:[%s10485_s20 + $0x2d98] sm:$0xff] %v5441_v7 }
 0x51a   : > { %5444 = vst [vmem:[%s10485_s20 + $0x2e00] sm:$0xff] %v5443_v8 }
 0x51b   : > { %5446 = vst [vmem:[%s10485_s20 + $0x2e08] sm:$0xff] %v5445_v9 }
 0x51c   : > { %5448 = vst [vmem:[%s10485_s20 + $0x2e10] sm:$0xff] %v5447_v10 }
 0x51d   : > { %5450 = vst [vmem:[%s10485_s20 + $0x2e18] sm:$0xff] %v5449_v11 }
 0x51e   : > { %5452 = vst [vmem:[%s10485_s20 + $0x2e80] sm:$0xff] %v5451_v12 }
 0x51f   : > { %5454 = vst [vmem:[%s10485_s20 + $0x2e88] sm:$0xff] %v5453_v13 }
 0x520   : > { %5456 = vst [vmem:[%s10485_s20 + $0x2e90] sm:$0xff] %v5455_v14 }
 0x521   : > { %5458 = vst [vmem:[%s10485_s20 + $0x2e98] sm:$0xff] %v5457_v15 }
 0x522   : > { %5460 = vst [vmem:[%s10485_s20 + $0x2f00] sm:$0xff] %v5459_v16 }
 0x523   : > { %5462 = vst [vmem:[%s10485_s20 + $0x2f08] sm:$0xff] %v5461_v17 }
 0x524   : > { %5464 = vst [vmem:[%s10485_s20 + $0x2f10] sm:$0xff] %v5463_v18 }
 0x525   : > { %5466 = vst [vmem:[%s10485_s20 + $0x2f18] sm:$0xff] %v5465_v19 }
 0x526   : > { %5468 = vst [vmem:[%s10485_s20 + $0x2f80] sm:$0xff] %v5467_v20 }
 0x527   : > { %5470 = vst [vmem:[%s10485_s20 + $0x2f88] sm:$0xff] %v5469_v21 }
 0x528   : > { %5472 = vst [vmem:[%s10485_s20 + $0x2f90] sm:$0xff] %v5471_v22 }
 0x529   : > { %5474 = vst [vmem:[%s10485_s20 + $0x2f98] sm:$0xff] %v5473_v23 }
 0x52a   : > { %5476 = vst [vmem:[%s10485_s20 + $0x3000] sm:$0xff] %v5475_v24 }
 0x52b   : > { %5478 = vst [vmem:[%s10485_s20 + $0x3008] sm:$0xff] %v5477_v25 }
 0x52c   : > { %5480 = vst [vmem:[%s10485_s20 + $0x3010] sm:$0xff] %v5479_v26 }
 0x52d   : > { %5482 = vst [vmem:[%s10485_s20 + $0x3018] sm:$0xff] %v5481_v27 }
 0x52e   : > { %5484 = vst [vmem:[%s10485_s20 + $0x3080] sm:$0xff] %v5483_v28 }
 0x52f   : > { %5486 = vst [vmem:[%s10485_s20 + $0x3088] sm:$0xff] %v5485_v29 }
 0x530   : > { %5488 = vst [vmem:[%s10485_s20 + $0x3090] sm:$0xff] %v5487_v30 }
 0x531   : > { %5490 = vst [vmem:[%s10485_s20 + $0x3098] sm:$0xff] %v5489_v31 }
 0x532   : > { %5492 = vst [vmem:[%s10485_s20 + $0x3100] sm:$0xff] %v5491_v32 }
 0x533   : > { %5494 = vst [vmem:[%s10485_s20 + $0x3108] sm:$0xff] %v5493_v33 }
 0x534   : > { %5496 = vst [vmem:[%s10485_s20 + $0x3110] sm:$0xff] %v5495_v34 }
 0x535   : > { %5498 = vst [vmem:[%s10485_s20 + $0x3118] sm:$0xff] %v5497_v35 }
 0x536   : > { %5500 = vst [vmem:[%s10485_s20 + $0x3180] sm:$0xff] %v5499_v36 }
 0x537   : > { %5502 = vst [vmem:[%s10485_s20 + $0x3188] sm:$0xff] %v5501_v37 }
 0x538   : > { %5504 = vst [vmem:[%s10485_s20 + $0x3190] sm:$0xff] %v5503_v38 }
 0x539   : > { %5506 = vst [vmem:[%s10485_s20 + $0x3198] sm:$0xff] %v5505_v39 }
 0x53a PF: > { %s12_s15 = sadd.s32 1, %s8868_s15   ;;  %s11310_s9 = smov %s8848_s10 }
 0x53b   : > { %p9_p11 = scmp.ge.s32.totalorder %s12_s15, 10   ;;  %s11311_s10 = smov %s8940_s24 }
 0x53c   : > { %s11312_s11 = smov %s8860_s13  ;;  %s11313_s12 = smov %s8864_s14 }
 0x53d   : > { %s11314_s13 = smov %s11317_s16  ;;  %s11315_s14 = smov %s11321_s17 }
 0x53e   :  { %11 = sbr.rel (!%p9_p11) target bundleno = 4 (0x4), region = 122 }

</bundles_post_ra>
